<compile_context>
chip_gen: v7x
topology: tpu7x:2x2x1
jax: 0.10.0
libtpu: 0.0.40
codegen_flags: <defaults>
</compile_context>

<pallas_src>
import functools

import numpy as np
import jax
import jax.numpy as jnp
from jax import lax
from jax.experimental import pallas as pl
from jax.experimental.pallas import tpu as pltpu

# 3x3 taps in (dy, dx) = (ky-1, kx-1) order, ky-major — must match the weight
# reshape done in the wrapper (jnp.transpose(w, (2, 3, 0, 1))).
_TAPS = ((-1, -1), (-1, 0), (-1, 1),
         (0, -1),  (0, 0),  (0, 1),
         (1, -1),  (1, 0),  (1, 1))


# --------------------------------- kernel -----------------------------------
def _contact_map_head_kernel(x_ref, mask_ref, w1_ref, b1_ref, w2_ref, b2_ref,
                             w3_ref, b3_ref, w4_ref, b4_ref, out_ref, *, wp):
    """One padded image per grid step.

    x_ref:   (C_in,  Sp) f32, Sp = (H+2)*(W+2), pad ring is zero.
    mask_ref:(C_hid, Sp) f32, 1 on interior pixels, 0 on the pad ring.
    wN_ref:  (9, C_out, C_in) bf16 (tap-major), bN_ref: (C_out, 1) f32.
    out_ref: (C_out, Sp) f32 (pad ring discarded by the wrapper).
    """
    f32 = jnp.float32
    bf16 = jnp.bfloat16
    sp = x_ref.shape[-1]

    def conv3x3(v, w_ref, b_ref):
        # v: (C_in, Sp) f32 with a zeroed 1-pixel pad ring.  Tap-wise MXU
        # accumulation: tap[p] = v[p + s]; the circular wrap of the roll only
        # touches pad-ring outputs, which are re-zeroed / sliced away.
        acc = None
        for t, (dy, dx) in enumerate(_TAPS):
            s = dy * wp + dx                              # flat neighbour offset
            tap = v if s == 0 else pltpu.roll(v, (-s) % sp, 1)   # lane rotate
            contrib = jnp.dot(w_ref[t], tap.astype(bf16),
                              preferred_element_type=f32)
            acc = contrib if acc is None else acc + contrib
        return acc + b_ref[...]                           # (C_out,1) lane bcast

    def gelu(v):
        # tanh-form GELU (tanh runs on the EUP).  See TODO(synk) above.
        c = 0.7978845608028654                            # sqrt(2/pi)
        return 0.5 * v * (1.0 + jnp.tanh(c * (v + 0.044715 * v * v * v)))

    def softplus(v):
        # torch.nn.Softplus(beta=1, threshold=20)
        return jnp.where(v > 20.0, v,
                         jnp.log(1.0 + jnp.exp(jnp.minimum(v, 20.0))))

    ring = mask_ref[...]                                  # loaded once, reused
    x = x_ref[...].astype(f32)
    h = gelu(conv3x3(x, w1_ref, b1_ref)) * ring                 # conv1 -> GELU
    h = (gelu(conv3x3(h, w2_ref, b2_ref)) + h) * ring           # conv2 +res
    h = (gelu(conv3x3(h, w3_ref, b3_ref)) + h) * ring           # conv3 +res
    out_ref[...] = softplus(conv3x3(h, w4_ref, b4_ref))         # conv4 -> Softplus


# -------------------------------- wrapper ------------------------------------
@jax.jit
def contact_map_head_forward(distance_map, w1, b1, w2, b2, w3, b3, w4, b4):
    """ContactMapHead.forward.

    distance_map: (B, C_in, H, W) float32 (NCHW, as in the torch module).
    wN: torch Conv2d weights (C_out, C_in, 3, 3); bN: biases (C_out,).
    Returns the contact map (B, C_out, H, W) float32.
    """
    b, c_in, h, w = distance_map.shape
    hp, wp = h + 2, w + 2
    sp = hp * wp
    c_hid = w1.shape[0]
    c_out = w4.shape[0]

    # NCHW is already channel-major: zero-pad the spatial dims (this replaces
    # the per-tap boundary masks) and flatten them onto lanes. No transpose.
    x = jnp.pad(distance_map.astype(jnp.float32),
                ((0, 0), (0, 0), (1, 1), (1, 1))).reshape(b, c_in, sp)

    # Interior mask (1 = real pixel, 0 = pad ring), pre-broadcast to the hidden
    # width once so the kernel never re-emits broadcasts.
    hh = jnp.arange(hp)[:, None]
    ww = jnp.arange(wp)[None, :]
    interior = (hh >= 1) & (hh <= h) & (ww >= 1) & (ww <= w)
    ring_mask = jnp.broadcast_to(interior.reshape(1, sp),
                                 (c_hid, sp)).astype(jnp.float32)

    def prep_w(wt):
        # (C_out, C_in, 3, 3) -> (9, C_out, C_in), tap-major (ky, kx) order
        # matching _TAPS; bf16 operands for the MXU.
        o, i, _, _ = wt.shape
        return jnp.transpose(wt, (2, 3, 0, 1)).reshape(9, o, i).astype(jnp.bfloat16)

    def prep_b(v):
        return v.reshape(-1, 1).astype(jnp.float32)

    kernel = functools.partial(_contact_map_head_kernel, wp=wp)

    def spec3(shape):
        return pl.BlockSpec(shape, lambda i: (0, 0, 0))

    def spec2(shape):
        return pl.BlockSpec(shape, lambda i: (0, 0))

    out_padded = pl.pallas_call(
        kernel,
        grid=(b,),
        in_specs=[
            pl.BlockSpec((None, c_in, sp), lambda i: (i, 0, 0)),  # one image
            spec2((c_hid, sp)),                                   # ring mask
            spec3((9, c_hid, c_in)),  spec2((c_hid, 1)),          # conv1
            spec3((9, c_hid, c_hid)), spec2((c_hid, 1)),          # conv2
            spec3((9, c_hid, c_hid)), spec2((c_hid, 1)),          # conv3
            spec3((9, c_out, c_hid)), spec2((c_out, 1)),          # conv4
        ],
        out_specs=pl.BlockSpec((None, c_out, sp), lambda i: (i, 0, 0)),
        out_shape=jax.ShapeDtypeStruct((b, c_out, sp), jnp.float32),
        compiler_params=pltpu.CompilerParams(
            dimension_semantics=("parallel",)),   # v7x: 2 TCs split the batch
    )(x, ring_mask,
      prep_w(w1), prep_b(b1), prep_w(w2), prep_b(b2),
      prep_w(w3), prep_b(b3), prep_w(w4), prep_b(b4))

    # Lane-dense (B, C_out, Sp) -> NCHW by dropping the pad ring (cheap slice,
    # no output transpose and no extra HBM round trip of a relayout).
    return out_padded.reshape(b, c_out, hp, wp)[:, :, 1:h + 1, 1:w + 1]


# --------------------- pure-JAX reference (torch semantics) ------------------
def _reference(distance_map, w1, b1, w2, b2, w3, b3, w4, b4):
    def conv(v, wt, bias):
        out = lax.conv_general_dilated(
            v, wt, window_strides=(1, 1), padding=((1, 1), (1, 1)),
            dimension_numbers=("NCHW", "OIHW", "NCHW"),
            precision=lax.Precision.HIGHEST)
        return out + bias[None, :, None, None]

    gelu = functools.partial(jax.nn.gelu, approximate=False)  # torch default (erf)
    h = gelu(conv(distance_map, w1, b1))
    h = gelu(conv(h, w2, b2)) + h
    h = gelu(conv(h, w3, b3)) + h
    return jax.nn.softplus(conv(h, w4, b4))


# ----------------------------------- main ------------------------------------
if __name__ == "__main__":
    B, C_IN, C_HID, C_OUT, H, W = 2, 4, 32, 4, 16, 16

    key = jax.random.PRNGKey(0)
    k = jax.random.split(key, 9)

    def xavier(kk, c_out, c_in):          # xavier_uniform_, 3x3 kernel
        bound = float(np.sqrt(6.0 / (9 * c_in + 9 * c_out)))
        return jax.random.uniform(kk, (c_out, c_in, 3, 3), jnp.float32,
                                  -bound, bound)

    w1 = xavier(k[0], C_HID, C_IN)
    w2 = xavier(k[1], C_HID, C_HID)
    w3 = xavier(k[2], C_HID, C_HID)
    w4 = xavier(k[3], C_OUT, C_HID)
    # The torch init zeroes the biases; use small non-zero ones here so the
    # bias path is actually exercised by the check.
    b1 = 0.05 * jax.random.normal(k[4], (C_HID,), jnp.float32)
    b2 = 0.05 * jax.random.normal(k[5], (C_HID,), jnp.float32)
    b3 = 0.05 * jax.random.normal(k[6], (C_HID,), jnp.float32)
    b4 = 0.05 * jax.random.normal(k[7], (C_OUT,), jnp.float32)

    distance_map = jax.random.normal(k[8], (B, C_IN, H, W), jnp.float32)

    out = contact_map_head_forward(distance_map, w1, b1, w2, b2, w3, b3, w4, b4)
    out = jax.block_until_ready(out)

    ref = _reference(distance_map, w1, b1, w2, b2, w3, b3, w4, b4)

    assert out.shape == (B, C_OUT, H, W)
    # Tolerance absorbs bf16 MXU operands + tanh-form GELU (vs exact erf).
    np.testing.assert_allclose(np.asarray(out), np.asarray(ref),
                               rtol=2e-2, atol=2e-2)
    print("KERNEL_OK")
</pallas_src>

<mosaic_0001>
module attributes {stable_mosaic.version = 11 : i64} {
  func.func @_contact_map_head_kernel(%arg0: i32, %arg1: memref<1x4x324xf32, #tpu.memory_space<vmem>>, %arg2: memref<32x324xf32, #tpu.memory_space<vmem>>, %arg3: memref<9x32x4xbf16, #tpu.memory_space<vmem>>, %arg4: memref<32x1xf32, #tpu.memory_space<vmem>>, %arg5: memref<9x32x32xbf16, #tpu.memory_space<vmem>>, %arg6: memref<32x1xf32, #tpu.memory_space<vmem>>, %arg7: memref<9x32x32xbf16, #tpu.memory_space<vmem>>, %arg8: memref<32x1xf32, #tpu.memory_space<vmem>>, %arg9: memref<9x4x32xbf16, #tpu.memory_space<vmem>>, %arg10: memref<4x1xf32, #tpu.memory_space<vmem>>, %arg11: memref<1x4x324xf32, #tpu.memory_space<vmem>>) attributes {dimension_semantics = [#tpu.dimension_semantics<parallel>], iteration_bounds = array<i64: 2>, scalar_prefetch = 0 : i64, scratch_operands = 0 : i64, tpu.core_type = #tpu.core_type<tc>, window_params = [{transform_indices = @transform_0, window_bounds = array<i64: 1, 4, 324>}, {pipeline_mode = #tpu.pipeline_mode<synchronous>, transform_indices = @transform_1, window_bounds = array<i64: 32, 324>}, {pipeline_mode = #tpu.pipeline_mode<synchronous>, transform_indices = @transform_2, window_bounds = array<i64: 9, 32, 4>}, {pipeline_mode = #tpu.pipeline_mode<synchronous>, transform_indices = @transform_3, window_bounds = array<i64: 32, 1>}, {pipeline_mode = #tpu.pipeline_mode<synchronous>, transform_indices = @transform_4, window_bounds = array<i64: 9, 32, 32>}, {pipeline_mode = #tpu.pipeline_mode<synchronous>, transform_indices = @transform_5, window_bounds = array<i64: 32, 1>}, {pipeline_mode = #tpu.pipeline_mode<synchronous>, transform_indices = @transform_6, window_bounds = array<i64: 9, 32, 32>}, {pipeline_mode = #tpu.pipeline_mode<synchronous>, transform_indices = @transform_7, window_bounds = array<i64: 32, 1>}, {pipeline_mode = #tpu.pipeline_mode<synchronous>, transform_indices = @transform_8, window_bounds = array<i64: 9, 4, 32>}, {pipeline_mode = #tpu.pipeline_mode<synchronous>, transform_indices = @transform_9, window_bounds = array<i64: 4, 1>}, {transform_indices = @transform_10, window_bounds = array<i64: 1, 4, 324>}]} {
    %c0 = arith.constant 0 : index
    %c0_0 = arith.constant 0 : index
    %0 = vector.load %arg2[%c0, %c0_0] : memref<32x324xf32, #tpu.memory_space<vmem>>, vector<32x324xf32>
    %c0_1 = arith.constant 0 : index
    %c0_2 = arith.constant 0 : index
    %c0_3 = arith.constant 0 : index
    %1 = vector.load %arg1[%c0_1, %c0_2, %c0_3] : memref<1x4x324xf32, #tpu.memory_space<vmem>>, vector<1x4x324xf32>
    %2 = vector.shape_cast %1 : vector<1x4x324xf32> to vector<4x324xf32>
    %c19_i32 = arith.constant 19 : i32
    %3 = tpu.dynamic_rotate %2 by %c19_i32 dim 1 : vector<4x324xf32>, i32 -> vector<4x324xf32>
    %c0_4 = arith.constant 0 : index
    %c0_5 = arith.constant 0 : index
    %c0_6 = arith.constant 0 : index
    %4 = vector.load %arg3[%c0_4, %c0_5, %c0_6] : memref<9x32x4xbf16, #tpu.memory_space<vmem>>, vector<1x32x4xbf16>
    %5 = vector.shape_cast %4 : vector<1x32x4xbf16> to vector<32x4xbf16>
    %6 = arith.truncf %3 : vector<4x324xf32> to vector<4x324xbf16>
    %cst = arith.constant dense<0.000000e+00> : vector<32x324xf32>
    %7 = tpu.matmul %5, %6, %cst {dimension_numbers = #tpu.dot_dimension_numbers<[1], [0], [0], [1], [0, 0, 1, 1], [], []>} : vector<32x4xbf16>, vector<4x324xbf16>, vector<32x324xf32> -> vector<32x324xf32>
    %c18_i32 = arith.constant 18 : i32
    %8 = tpu.dynamic_rotate %2 by %c18_i32 dim 1 : vector<4x324xf32>, i32 -> vector<4x324xf32>
    %c1 = arith.constant 1 : index
    %c0_7 = arith.constant 0 : index
    %c0_8 = arith.constant 0 : index
    %9 = vector.load %arg3[%c1, %c0_7, %c0_8] : memref<9x32x4xbf16, #tpu.memory_space<vmem>>, vector<1x32x4xbf16>
    %10 = vector.shape_cast %9 : vector<1x32x4xbf16> to vector<32x4xbf16>
    %11 = arith.truncf %8 : vector<4x324xf32> to vector<4x324xbf16>
    %cst_9 = arith.constant dense<0.000000e+00> : vector<32x324xf32>
    %12 = tpu.matmul %10, %11, %cst_9 {dimension_numbers = #tpu.dot_dimension_numbers<[1], [0], [0], [1], [0, 0, 1, 1], [], []>} : vector<32x4xbf16>, vector<4x324xbf16>, vector<32x324xf32> -> vector<32x324xf32>
    %13 = arith.addf %7, %12 : vector<32x324xf32>
    %c17_i32 = arith.constant 17 : i32
    %14 = tpu.dynamic_rotate %2 by %c17_i32 dim 1 : vector<4x324xf32>, i32 -> vector<4x324xf32>
    %c2 = arith.constant 2 : index
    %c0_10 = arith.constant 0 : index
    %c0_11 = arith.constant 0 : index
    %15 = vector.load %arg3[%c2, %c0_10, %c0_11] : memref<9x32x4xbf16, #tpu.memory_space<vmem>>, vector<1x32x4xbf16>
    %16 = vector.shape_cast %15 : vector<1x32x4xbf16> to vector<32x4xbf16>
    %17 = arith.truncf %14 : vector<4x324xf32> to vector<4x324xbf16>
    %cst_12 = arith.constant dense<0.000000e+00> : vector<32x324xf32>
    %18 = tpu.matmul %16, %17, %cst_12 {dimension_numbers = #tpu.dot_dimension_numbers<[1], [0], [0], [1], [0, 0, 1, 1], [], []>} : vector<32x4xbf16>, vector<4x324xbf16>, vector<32x324xf32> -> vector<32x324xf32>
    %19 = arith.addf %13, %18 : vector<32x324xf32>
    %c1_i32 = arith.constant 1 : i32
    %20 = tpu.dynamic_rotate %2 by %c1_i32 dim 1 : vector<4x324xf32>, i32 -> vector<4x324xf32>
    %c3 = arith.constant 3 : index
    %c0_13 = arith.constant 0 : index
    %c0_14 = arith.constant 0 : index
    %21 = vector.load %arg3[%c3, %c0_13, %c0_14] : memref<9x32x4xbf16, #tpu.memory_space<vmem>>, vector<1x32x4xbf16>
    %22 = vector.shape_cast %21 : vector<1x32x4xbf16> to vector<32x4xbf16>
    %23 = arith.truncf %20 : vector<4x324xf32> to vector<4x324xbf16>
    %cst_15 = arith.constant dense<0.000000e+00> : vector<32x324xf32>
    %24 = tpu.matmul %22, %23, %cst_15 {dimension_numbers = #tpu.dot_dimension_numbers<[1], [0], [0], [1], [0, 0, 1, 1], [], []>} : vector<32x4xbf16>, vector<4x324xbf16>, vector<32x324xf32> -> vector<32x324xf32>
    %25 = arith.addf %19, %24 : vector<32x324xf32>
    %c4 = arith.constant 4 : index
    %c0_16 = arith.constant 0 : index
    %c0_17 = arith.constant 0 : index
    %26 = vector.load %arg3[%c4, %c0_16, %c0_17] : memref<9x32x4xbf16, #tpu.memory_space<vmem>>, vector<1x32x4xbf16>
    %27 = vector.shape_cast %26 : vector<1x32x4xbf16> to vector<32x4xbf16>
    %28 = arith.truncf %2 : vector<4x324xf32> to vector<4x324xbf16>
    %cst_18 = arith.constant dense<0.000000e+00> : vector<32x324xf32>
    %29 = tpu.matmul %27, %28, %cst_18 {dimension_numbers = #tpu.dot_dimension_numbers<[1], [0], [0], [1], [0, 0, 1, 1], [], []>} : vector<32x4xbf16>, vector<4x324xbf16>, vector<32x324xf32> -> vector<32x324xf32>
    %30 = arith.addf %25, %29 : vector<32x324xf32>
    %c323_i32 = arith.constant 323 : i32
    %31 = tpu.dynamic_rotate %2 by %c323_i32 dim 1 : vector<4x324xf32>, i32 -> vector<4x324xf32>
    %c5 = arith.constant 5 : index
    %c0_19 = arith.constant 0 : index
    %c0_20 = arith.constant 0 : index
    %32 = vector.load %arg3[%c5, %c0_19, %c0_20] : memref<9x32x4xbf16, #tpu.memory_space<vmem>>, vector<1x32x4xbf16>
    %33 = vector.shape_cast %32 : vector<1x32x4xbf16> to vector<32x4xbf16>
    %34 = arith.truncf %31 : vector<4x324xf32> to vector<4x324xbf16>
    %cst_21 = arith.constant dense<0.000000e+00> : vector<32x324xf32>
    %35 = tpu.matmul %33, %34, %cst_21 {dimension_numbers = #tpu.dot_dimension_numbers<[1], [0], [0], [1], [0, 0, 1, 1], [], []>} : vector<32x4xbf16>, vector<4x324xbf16>, vector<32x324xf32> -> vector<32x324xf32>
    %36 = arith.addf %30, %35 : vector<32x324xf32>
    %c307_i32 = arith.constant 307 : i32
    %37 = tpu.dynamic_rotate %2 by %c307_i32 dim 1 : vector<4x324xf32>, i32 -> vector<4x324xf32>
    %c6 = arith.constant 6 : index
    %c0_22 = arith.constant 0 : index
    %c0_23 = arith.constant 0 : index
    %38 = vector.load %arg3[%c6, %c0_22, %c0_23] : memref<9x32x4xbf16, #tpu.memory_space<vmem>>, vector<1x32x4xbf16>
    %39 = vector.shape_cast %38 : vector<1x32x4xbf16> to vector<32x4xbf16>
    %40 = arith.truncf %37 : vector<4x324xf32> to vector<4x324xbf16>
    %cst_24 = arith.constant dense<0.000000e+00> : vector<32x324xf32>
    %41 = tpu.matmul %39, %40, %cst_24 {dimension_numbers = #tpu.dot_dimension_numbers<[1], [0], [0], [1], [0, 0, 1, 1], [], []>} : vector<32x4xbf16>, vector<4x324xbf16>, vector<32x324xf32> -> vector<32x324xf32>
    %42 = arith.addf %36, %41 : vector<32x324xf32>
    %c306_i32 = arith.constant 306 : i32
    %43 = tpu.dynamic_rotate %2 by %c306_i32 dim 1 : vector<4x324xf32>, i32 -> vector<4x324xf32>
    %c7 = arith.constant 7 : index
    %c0_25 = arith.constant 0 : index
    %c0_26 = arith.constant 0 : index
    %44 = vector.load %arg3[%c7, %c0_25, %c0_26] : memref<9x32x4xbf16, #tpu.memory_space<vmem>>, vector<1x32x4xbf16>
    %45 = vector.shape_cast %44 : vector<1x32x4xbf16> to vector<32x4xbf16>
    %46 = arith.truncf %43 : vector<4x324xf32> to vector<4x324xbf16>
    %cst_27 = arith.constant dense<0.000000e+00> : vector<32x324xf32>
    %47 = tpu.matmul %45, %46, %cst_27 {dimension_numbers = #tpu.dot_dimension_numbers<[1], [0], [0], [1], [0, 0, 1, 1], [], []>} : vector<32x4xbf16>, vector<4x324xbf16>, vector<32x324xf32> -> vector<32x324xf32>
    %48 = arith.addf %42, %47 : vector<32x324xf32>
    %c305_i32 = arith.constant 305 : i32
    %49 = tpu.dynamic_rotate %2 by %c305_i32 dim 1 : vector<4x324xf32>, i32 -> vector<4x324xf32>
    %c8 = arith.constant 8 : index
    %c0_28 = arith.constant 0 : index
    %c0_29 = arith.constant 0 : index
    %50 = vector.load %arg3[%c8, %c0_28, %c0_29] : memref<9x32x4xbf16, #tpu.memory_space<vmem>>, vector<1x32x4xbf16>
    %51 = vector.shape_cast %50 : vector<1x32x4xbf16> to vector<32x4xbf16>
    %52 = arith.truncf %49 : vector<4x324xf32> to vector<4x324xbf16>
    %cst_30 = arith.constant dense<0.000000e+00> : vector<32x324xf32>
    %53 = tpu.matmul %51, %52, %cst_30 {dimension_numbers = #tpu.dot_dimension_numbers<[1], [0], [0], [1], [0, 0, 1, 1], [], []>} : vector<32x4xbf16>, vector<4x324xbf16>, vector<32x324xf32> -> vector<32x324xf32>
    %54 = arith.addf %48, %53 : vector<32x324xf32>
    %c0_31 = arith.constant 0 : index
    %c0_32 = arith.constant 0 : index
    %55 = vector.load %arg4[%c0_31, %c0_32] : memref<32x1xf32, #tpu.memory_space<vmem>>, vector<32x1xf32>
    %56 = vector.broadcast %55 : vector<32x1xf32> to vector<32x324xf32>
    %57 = arith.addf %54, %56 : vector<32x324xf32>
    %cst_33 = arith.constant 5.000000e-01 : f32
    %58 = vector.broadcast %cst_33 : f32 to vector<32x324xf32>
    %59 = arith.mulf %58, %57 : vector<32x324xf32>
    %cst_34 = arith.constant 4.471500e-02 : f32
    %60 = vector.broadcast %cst_34 : f32 to vector<32x324xf32>
    %61 = arith.mulf %60, %57 : vector<32x324xf32>
    %62 = arith.mulf %61, %57 : vector<32x324xf32>
    %63 = arith.mulf %62, %57 : vector<32x324xf32>
    %64 = arith.addf %57, %63 : vector<32x324xf32>
    %cst_35 = arith.constant 0.797884583 : f32
    %65 = vector.broadcast %cst_35 : f32 to vector<32x324xf32>
    %66 = arith.mulf %65, %64 : vector<32x324xf32>
    %67 = math.tanh %66 : vector<32x324xf32>
    %cst_36 = arith.constant 1.000000e+00 : f32
    %68 = vector.broadcast %cst_36 : f32 to vector<32x324xf32>
    %69 = arith.addf %68, %67 : vector<32x324xf32>
    %70 = arith.mulf %59, %69 : vector<32x324xf32>
    %71 = arith.mulf %70, %0 : vector<32x324xf32>
    %c19_i32_37 = arith.constant 19 : i32
    %72 = tpu.dynamic_rotate %71 by %c19_i32_37 dim 1 : vector<32x324xf32>, i32 -> vector<32x324xf32>
    %c0_38 = arith.constant 0 : index
    %c0_39 = arith.constant 0 : index
    %c0_40 = arith.constant 0 : index
    %73 = vector.load %arg5[%c0_38, %c0_39, %c0_40] : memref<9x32x32xbf16, #tpu.memory_space<vmem>>, vector<1x32x32xbf16>
    %74 = vector.shape_cast %73 : vector<1x32x32xbf16> to vector<32x32xbf16>
    %75 = arith.truncf %72 : vector<32x324xf32> to vector<32x324xbf16>
    %cst_41 = arith.constant dense<0.000000e+00> : vector<32x324xf32>
    %76 = tpu.matmul %74, %75, %cst_41 {dimension_numbers = #tpu.dot_dimension_numbers<[1], [0], [0], [1], [0, 0, 1, 1], [], []>} : vector<32x32xbf16>, vector<32x324xbf16>, vector<32x324xf32> -> vector<32x324xf32>
    %c18_i32_42 = arith.constant 18 : i32
    %77 = tpu.dynamic_rotate %71 by %c18_i32_42 dim 1 : vector<32x324xf32>, i32 -> vector<32x324xf32>
    %c1_43 = arith.constant 1 : index
    %c0_44 = arith.constant 0 : index
    %c0_45 = arith.constant 0 : index
    %78 = vector.load %arg5[%c1_43, %c0_44, %c0_45] : memref<9x32x32xbf16, #tpu.memory_space<vmem>>, vector<1x32x32xbf16>
    %79 = vector.shape_cast %78 : vector<1x32x32xbf16> to vector<32x32xbf16>
    %80 = arith.truncf %77 : vector<32x324xf32> to vector<32x324xbf16>
    %cst_46 = arith.constant dense<0.000000e+00> : vector<32x324xf32>
    %81 = tpu.matmul %79, %80, %cst_46 {dimension_numbers = #tpu.dot_dimension_numbers<[1], [0], [0], [1], [0, 0, 1, 1], [], []>} : vector<32x32xbf16>, vector<32x324xbf16>, vector<32x324xf32> -> vector<32x324xf32>
    %82 = arith.addf %76, %81 : vector<32x324xf32>
    %c17_i32_47 = arith.constant 17 : i32
    %83 = tpu.dynamic_rotate %71 by %c17_i32_47 dim 1 : vector<32x324xf32>, i32 -> vector<32x324xf32>
    %c2_48 = arith.constant 2 : index
    %c0_49 = arith.constant 0 : index
    %c0_50 = arith.constant 0 : index
    %84 = vector.load %arg5[%c2_48, %c0_49, %c0_50] : memref<9x32x32xbf16, #tpu.memory_space<vmem>>, vector<1x32x32xbf16>
    %85 = vector.shape_cast %84 : vector<1x32x32xbf16> to vector<32x32xbf16>
    %86 = arith.truncf %83 : vector<32x324xf32> to vector<32x324xbf16>
    %cst_51 = arith.constant dense<0.000000e+00> : vector<32x324xf32>
    %87 = tpu.matmul %85, %86, %cst_51 {dimension_numbers = #tpu.dot_dimension_numbers<[1], [0], [0], [1], [0, 0, 1, 1], [], []>} : vector<32x32xbf16>, vector<32x324xbf16>, vector<32x324xf32> -> vector<32x324xf32>
    %88 = arith.addf %82, %87 : vector<32x324xf32>
    %c1_i32_52 = arith.constant 1 : i32
    %89 = tpu.dynamic_rotate %71 by %c1_i32_52 dim 1 : vector<32x324xf32>, i32 -> vector<32x324xf32>
    %c3_53 = arith.constant 3 : index
    %c0_54 = arith.constant 0 : index
    %c0_55 = arith.constant 0 : index
    %90 = vector.load %arg5[%c3_53, %c0_54, %c0_55] : memref<9x32x32xbf16, #tpu.memory_space<vmem>>, vector<1x32x32xbf16>
    %91 = vector.shape_cast %90 : vector<1x32x32xbf16> to vector<32x32xbf16>
    %92 = arith.truncf %89 : vector<32x324xf32> to vector<32x324xbf16>
    %cst_56 = arith.constant dense<0.000000e+00> : vector<32x324xf32>
    %93 = tpu.matmul %91, %92, %cst_56 {dimension_numbers = #tpu.dot_dimension_numbers<[1], [0], [0], [1], [0, 0, 1, 1], [], []>} : vector<32x32xbf16>, vector<32x324xbf16>, vector<32x324xf32> -> vector<32x324xf32>
    %94 = arith.addf %88, %93 : vector<32x324xf32>
    %c4_57 = arith.constant 4 : index
    %c0_58 = arith.constant 0 : index
    %c0_59 = arith.constant 0 : index
    %95 = vector.load %arg5[%c4_57, %c0_58, %c0_59] : memref<9x32x32xbf16, #tpu.memory_space<vmem>>, vector<1x32x32xbf16>
    %96 = vector.shape_cast %95 : vector<1x32x32xbf16> to vector<32x32xbf16>
    %97 = arith.truncf %71 : vector<32x324xf32> to vector<32x324xbf16>
    %cst_60 = arith.constant dense<0.000000e+00> : vector<32x324xf32>
    %98 = tpu.matmul %96, %97, %cst_60 {dimension_numbers = #tpu.dot_dimension_numbers<[1], [0], [0], [1], [0, 0, 1, 1], [], []>} : vector<32x32xbf16>, vector<32x324xbf16>, vector<32x324xf32> -> vector<32x324xf32>
    %99 = arith.addf %94, %98 : vector<32x324xf32>
    %c323_i32_61 = arith.constant 323 : i32
    %100 = tpu.dynamic_rotate %71 by %c323_i32_61 dim 1 : vector<32x324xf32>, i32 -> vector<32x324xf32>
    %c5_62 = arith.constant 5 : index
    %c0_63 = arith.constant 0 : index
    %c0_64 = arith.constant 0 : index
    %101 = vector.load %arg5[%c5_62, %c0_63, %c0_64] : memref<9x32x32xbf16, #tpu.memory_space<vmem>>, vector<1x32x32xbf16>
    %102 = vector.shape_cast %101 : vector<1x32x32xbf16> to vector<32x32xbf16>
    %103 = arith.truncf %100 : vector<32x324xf32> to vector<32x324xbf16>
    %cst_65 = arith.constant dense<0.000000e+00> : vector<32x324xf32>
    %104 = tpu.matmul %102, %103, %cst_65 {dimension_numbers = #tpu.dot_dimension_numbers<[1], [0], [0], [1], [0, 0, 1, 1], [], []>} : vector<32x32xbf16>, vector<32x324xbf16>, vector<32x324xf32> -> vector<32x324xf32>
    %105 = arith.addf %99, %104 : vector<32x324xf32>
    %c307_i32_66 = arith.constant 307 : i32
    %106 = tpu.dynamic_rotate %71 by %c307_i32_66 dim 1 : vector<32x324xf32>, i32 -> vector<32x324xf32>
    %c6_67 = arith.constant 6 : index
    %c0_68 = arith.constant 0 : index
    %c0_69 = arith.constant 0 : index
    %107 = vector.load %arg5[%c6_67, %c0_68, %c0_69] : memref<9x32x32xbf16, #tpu.memory_space<vmem>>, vector<1x32x32xbf16>
    %108 = vector.shape_cast %107 : vector<1x32x32xbf16> to vector<32x32xbf16>
    %109 = arith.truncf %106 : vector<32x324xf32> to vector<32x324xbf16>
    %cst_70 = arith.constant dense<0.000000e+00> : vector<32x324xf32>
    %110 = tpu.matmul %108, %109, %cst_70 {dimension_numbers = #tpu.dot_dimension_numbers<[1], [0], [0], [1], [0, 0, 1, 1], [], []>} : vector<32x32xbf16>, vector<32x324xbf16>, vector<32x324xf32> -> vector<32x324xf32>
    %111 = arith.addf %105, %110 : vector<32x324xf32>
    %c306_i32_71 = arith.constant 306 : i32
    %112 = tpu.dynamic_rotate %71 by %c306_i32_71 dim 1 : vector<32x324xf32>, i32 -> vector<32x324xf32>
    %c7_72 = arith.constant 7 : index
    %c0_73 = arith.constant 0 : index
    %c0_74 = arith.constant 0 : index
    %113 = vector.load %arg5[%c7_72, %c0_73, %c0_74] : memref<9x32x32xbf16, #tpu.memory_space<vmem>>, vector<1x32x32xbf16>
    %114 = vector.shape_cast %113 : vector<1x32x32xbf16> to vector<32x32xbf16>
    %115 = arith.truncf %112 : vector<32x324xf32> to vector<32x324xbf16>
    %cst_75 = arith.constant dense<0.000000e+00> : vector<32x324xf32>
    %116 = tpu.matmul %114, %115, %cst_75 {dimension_numbers = #tpu.dot_dimension_numbers<[1], [0], [0], [1], [0, 0, 1, 1], [], []>} : vector<32x32xbf16>, vector<32x324xbf16>, vector<32x324xf32> -> vector<32x324xf32>
    %117 = arith.addf %111, %116 : vector<32x324xf32>
    %c305_i32_76 = arith.constant 305 : i32
    %118 = tpu.dynamic_rotate %71 by %c305_i32_76 dim 1 : vector<32x324xf32>, i32 -> vector<32x324xf32>
    %c8_77 = arith.constant 8 : index
    %c0_78 = arith.constant 0 : index
    %c0_79 = arith.constant 0 : index
    %119 = vector.load %arg5[%c8_77, %c0_78, %c0_79] : memref<9x32x32xbf16, #tpu.memory_space<vmem>>, vector<1x32x32xbf16>
    %120 = vector.shape_cast %119 : vector<1x32x32xbf16> to vector<32x32xbf16>
    %121 = arith.truncf %118 : vector<32x324xf32> to vector<32x324xbf16>
    %cst_80 = arith.constant dense<0.000000e+00> : vector<32x324xf32>
    %122 = tpu.matmul %120, %121, %cst_80 {dimension_numbers = #tpu.dot_dimension_numbers<[1], [0], [0], [1], [0, 0, 1, 1], [], []>} : vector<32x32xbf16>, vector<32x324xbf16>, vector<32x324xf32> -> vector<32x324xf32>
    %123 = arith.addf %117, %122 : vector<32x324xf32>
    %c0_81 = arith.constant 0 : index
    %c0_82 = arith.constant 0 : index
    %124 = vector.load %arg6[%c0_81, %c0_82] : memref<32x1xf32, #tpu.memory_space<vmem>>, vector<32x1xf32>
    %125 = vector.broadcast %124 : vector<32x1xf32> to vector<32x324xf32>
    %126 = arith.addf %123, %125 : vector<32x324xf32>
    %cst_83 = arith.constant 5.000000e-01 : f32
    %127 = vector.broadcast %cst_83 : f32 to vector<32x324xf32>
    %128 = arith.mulf %127, %126 : vector<32x324xf32>
    %cst_84 = arith.constant 4.471500e-02 : f32
    %129 = vector.broadcast %cst_84 : f32 to vector<32x324xf32>
    %130 = arith.mulf %129, %126 : vector<32x324xf32>
    %131 = arith.mulf %130, %126 : vector<32x324xf32>
    %132 = arith.mulf %131, %126 : vector<32x324xf32>
    %133 = arith.addf %126, %132 : vector<32x324xf32>
    %cst_85 = arith.constant 0.797884583 : f32
    %134 = vector.broadcast %cst_85 : f32 to vector<32x324xf32>
    %135 = arith.mulf %134, %133 : vector<32x324xf32>
    %136 = math.tanh %135 : vector<32x324xf32>
    %cst_86 = arith.constant 1.000000e+00 : f32
    %137 = vector.broadcast %cst_86 : f32 to vector<32x324xf32>
    %138 = arith.addf %137, %136 : vector<32x324xf32>
    %139 = arith.mulf %128, %138 : vector<32x324xf32>
    %140 = arith.addf %139, %71 : vector<32x324xf32>
    %141 = arith.mulf %140, %0 : vector<32x324xf32>
    %c19_i32_87 = arith.constant 19 : i32
    %142 = tpu.dynamic_rotate %141 by %c19_i32_87 dim 1 : vector<32x324xf32>, i32 -> vector<32x324xf32>
    %c0_88 = arith.constant 0 : index
    %c0_89 = arith.constant 0 : index
    %c0_90 = arith.constant 0 : index
    %143 = vector.load %arg7[%c0_88, %c0_89, %c0_90] : memref<9x32x32xbf16, #tpu.memory_space<vmem>>, vector<1x32x32xbf16>
    %144 = vector.shape_cast %143 : vector<1x32x32xbf16> to vector<32x32xbf16>
    %145 = arith.truncf %142 : vector<32x324xf32> to vector<32x324xbf16>
    %cst_91 = arith.constant dense<0.000000e+00> : vector<32x324xf32>
    %146 = tpu.matmul %144, %145, %cst_91 {dimension_numbers = #tpu.dot_dimension_numbers<[1], [0], [0], [1], [0, 0, 1, 1], [], []>} : vector<32x32xbf16>, vector<32x324xbf16>, vector<32x324xf32> -> vector<32x324xf32>
    %c18_i32_92 = arith.constant 18 : i32
    %147 = tpu.dynamic_rotate %141 by %c18_i32_92 dim 1 : vector<32x324xf32>, i32 -> vector<32x324xf32>
    %c1_93 = arith.constant 1 : index
    %c0_94 = arith.constant 0 : index
    %c0_95 = arith.constant 0 : index
    %148 = vector.load %arg7[%c1_93, %c0_94, %c0_95] : memref<9x32x32xbf16, #tpu.memory_space<vmem>>, vector<1x32x32xbf16>
    %149 = vector.shape_cast %148 : vector<1x32x32xbf16> to vector<32x32xbf16>
    %150 = arith.truncf %147 : vector<32x324xf32> to vector<32x324xbf16>
    %cst_96 = arith.constant dense<0.000000e+00> : vector<32x324xf32>
    %151 = tpu.matmul %149, %150, %cst_96 {dimension_numbers = #tpu.dot_dimension_numbers<[1], [0], [0], [1], [0, 0, 1, 1], [], []>} : vector<32x32xbf16>, vector<32x324xbf16>, vector<32x324xf32> -> vector<32x324xf32>
    %152 = arith.addf %146, %151 : vector<32x324xf32>
    %c17_i32_97 = arith.constant 17 : i32
    %153 = tpu.dynamic_rotate %141 by %c17_i32_97 dim 1 : vector<32x324xf32>, i32 -> vector<32x324xf32>
    %c2_98 = arith.constant 2 : index
    %c0_99 = arith.constant 0 : index
    %c0_100 = arith.constant 0 : index
    %154 = vector.load %arg7[%c2_98, %c0_99, %c0_100] : memref<9x32x32xbf16, #tpu.memory_space<vmem>>, vector<1x32x32xbf16>
    %155 = vector.shape_cast %154 : vector<1x32x32xbf16> to vector<32x32xbf16>
    %156 = arith.truncf %153 : vector<32x324xf32> to vector<32x324xbf16>
    %cst_101 = arith.constant dense<0.000000e+00> : vector<32x324xf32>
    %157 = tpu.matmul %155, %156, %cst_101 {dimension_numbers = #tpu.dot_dimension_numbers<[1], [0], [0], [1], [0, 0, 1, 1], [], []>} : vector<32x32xbf16>, vector<32x324xbf16>, vector<32x324xf32> -> vector<32x324xf32>
    %158 = arith.addf %152, %157 : vector<32x324xf32>
    %c1_i32_102 = arith.constant 1 : i32
    %159 = tpu.dynamic_rotate %141 by %c1_i32_102 dim 1 : vector<32x324xf32>, i32 -> vector<32x324xf32>
    %c3_103 = arith.constant 3 : index
    %c0_104 = arith.constant 0 : index
    %c0_105 = arith.constant 0 : index
    %160 = vector.load %arg7[%c3_103, %c0_104, %c0_105] : memref<9x32x32xbf16, #tpu.memory_space<vmem>>, vector<1x32x32xbf16>
    %161 = vector.shape_cast %160 : vector<1x32x32xbf16> to vector<32x32xbf16>
    %162 = arith.truncf %159 : vector<32x324xf32> to vector<32x324xbf16>
    %cst_106 = arith.constant dense<0.000000e+00> : vector<32x324xf32>
    %163 = tpu.matmul %161, %162, %cst_106 {dimension_numbers = #tpu.dot_dimension_numbers<[1], [0], [0], [1], [0, 0, 1, 1], [], []>} : vector<32x32xbf16>, vector<32x324xbf16>, vector<32x324xf32> -> vector<32x324xf32>
    %164 = arith.addf %158, %163 : vector<32x324xf32>
    %c4_107 = arith.constant 4 : index
    %c0_108 = arith.constant 0 : index
    %c0_109 = arith.constant 0 : index
    %165 = vector.load %arg7[%c4_107, %c0_108, %c0_109] : memref<9x32x32xbf16, #tpu.memory_space<vmem>>, vector<1x32x32xbf16>
    %166 = vector.shape_cast %165 : vector<1x32x32xbf16> to vector<32x32xbf16>
    %167 = arith.truncf %141 : vector<32x324xf32> to vector<32x324xbf16>
    %cst_110 = arith.constant dense<0.000000e+00> : vector<32x324xf32>
    %168 = tpu.matmul %166, %167, %cst_110 {dimension_numbers = #tpu.dot_dimension_numbers<[1], [0], [0], [1], [0, 0, 1, 1], [], []>} : vector<32x32xbf16>, vector<32x324xbf16>, vector<32x324xf32> -> vector<32x324xf32>
    %169 = arith.addf %164, %168 : vector<32x324xf32>
    %c323_i32_111 = arith.constant 323 : i32
    %170 = tpu.dynamic_rotate %141 by %c323_i32_111 dim 1 : vector<32x324xf32>, i32 -> vector<32x324xf32>
    %c5_112 = arith.constant 5 : index
    %c0_113 = arith.constant 0 : index
    %c0_114 = arith.constant 0 : index
    %171 = vector.load %arg7[%c5_112, %c0_113, %c0_114] : memref<9x32x32xbf16, #tpu.memory_space<vmem>>, vector<1x32x32xbf16>
    %172 = vector.shape_cast %171 : vector<1x32x32xbf16> to vector<32x32xbf16>
    %173 = arith.truncf %170 : vector<32x324xf32> to vector<32x324xbf16>
    %cst_115 = arith.constant dense<0.000000e+00> : vector<32x324xf32>
    %174 = tpu.matmul %172, %173, %cst_115 {dimension_numbers = #tpu.dot_dimension_numbers<[1], [0], [0], [1], [0, 0, 1, 1], [], []>} : vector<32x32xbf16>, vector<32x324xbf16>, vector<32x324xf32> -> vector<32x324xf32>
    %175 = arith.addf %169, %174 : vector<32x324xf32>
    %c307_i32_116 = arith.constant 307 : i32
    %176 = tpu.dynamic_rotate %141 by %c307_i32_116 dim 1 : vector<32x324xf32>, i32 -> vector<32x324xf32>
    %c6_117 = arith.constant 6 : index
    %c0_118 = arith.constant 0 : index
    %c0_119 = arith.constant 0 : index
    %177 = vector.load %arg7[%c6_117, %c0_118, %c0_119] : memref<9x32x32xbf16, #tpu.memory_space<vmem>>, vector<1x32x32xbf16>
    %178 = vector.shape_cast %177 : vector<1x32x32xbf16> to vector<32x32xbf16>
    %179 = arith.truncf %176 : vector<32x324xf32> to vector<32x324xbf16>
    %cst_120 = arith.constant dense<0.000000e+00> : vector<32x324xf32>
    %180 = tpu.matmul %178, %179, %cst_120 {dimension_numbers = #tpu.dot_dimension_numbers<[1], [0], [0], [1], [0, 0, 1, 1], [], []>} : vector<32x32xbf16>, vector<32x324xbf16>, vector<32x324xf32> -> vector<32x324xf32>
    %181 = arith.addf %175, %180 : vector<32x324xf32>
    %c306_i32_121 = arith.constant 306 : i32
    %182 = tpu.dynamic_rotate %141 by %c306_i32_121 dim 1 : vector<32x324xf32>, i32 -> vector<32x324xf32>
    %c7_122 = arith.constant 7 : index
    %c0_123 = arith.constant 0 : index
    %c0_124 = arith.constant 0 : index
    %183 = vector.load %arg7[%c7_122, %c0_123, %c0_124] : memref<9x32x32xbf16, #tpu.memory_space<vmem>>, vector<1x32x32xbf16>
    %184 = vector.shape_cast %183 : vector<1x32x32xbf16> to vector<32x32xbf16>
    %185 = arith.truncf %182 : vector<32x324xf32> to vector<32x324xbf16>
    %cst_125 = arith.constant dense<0.000000e+00> : vector<32x324xf32>
    %186 = tpu.matmul %184, %185, %cst_125 {dimension_numbers = #tpu.dot_dimension_numbers<[1], [0], [0], [1], [0, 0, 1, 1], [], []>} : vector<32x32xbf16>, vector<32x324xbf16>, vector<32x324xf32> -> vector<32x324xf32>
    %187 = arith.addf %181, %186 : vector<32x324xf32>
    %c305_i32_126 = arith.constant 305 : i32
    %188 = tpu.dynamic_rotate %141 by %c305_i32_126 dim 1 : vector<32x324xf32>, i32 -> vector<32x324xf32>
    %c8_127 = arith.constant 8 : index
    %c0_128 = arith.constant 0 : index
    %c0_129 = arith.constant 0 : index
    %189 = vector.load %arg7[%c8_127, %c0_128, %c0_129] : memref<9x32x32xbf16, #tpu.memory_space<vmem>>, vector<1x32x32xbf16>
    %190 = vector.shape_cast %189 : vector<1x32x32xbf16> to vector<32x32xbf16>
    %191 = arith.truncf %188 : vector<32x324xf32> to vector<32x324xbf16>
    %cst_130 = arith.constant dense<0.000000e+00> : vector<32x324xf32>
    %192 = tpu.matmul %190, %191, %cst_130 {dimension_numbers = #tpu.dot_dimension_numbers<[1], [0], [0], [1], [0, 0, 1, 1], [], []>} : vector<32x32xbf16>, vector<32x324xbf16>, vector<32x324xf32> -> vector<32x324xf32>
    %193 = arith.addf %187, %192 : vector<32x324xf32>
    %c0_131 = arith.constant 0 : index
    %c0_132 = arith.constant 0 : index
    %194 = vector.load %arg8[%c0_131, %c0_132] : memref<32x1xf32, #tpu.memory_space<vmem>>, vector<32x1xf32>
    %195 = vector.broadcast %194 : vector<32x1xf32> to vector<32x324xf32>
    %196 = arith.addf %193, %195 : vector<32x324xf32>
    %cst_133 = arith.constant 5.000000e-01 : f32
    %197 = vector.broadcast %cst_133 : f32 to vector<32x324xf32>
    %198 = arith.mulf %197, %196 : vector<32x324xf32>
    %cst_134 = arith.constant 4.471500e-02 : f32
    %199 = vector.broadcast %cst_134 : f32 to vector<32x324xf32>
    %200 = arith.mulf %199, %196 : vector<32x324xf32>
    %201 = arith.mulf %200, %196 : vector<32x324xf32>
    %202 = arith.mulf %201, %196 : vector<32x324xf32>
    %203 = arith.addf %196, %202 : vector<32x324xf32>
    %cst_135 = arith.constant 0.797884583 : f32
    %204 = vector.broadcast %cst_135 : f32 to vector<32x324xf32>
    %205 = arith.mulf %204, %203 : vector<32x324xf32>
    %206 = math.tanh %205 : vector<32x324xf32>
    %cst_136 = arith.constant 1.000000e+00 : f32
    %207 = vector.broadcast %cst_136 : f32 to vector<32x324xf32>
    %208 = arith.addf %207, %206 : vector<32x324xf32>
    %209 = arith.mulf %198, %208 : vector<32x324xf32>
    %210 = arith.addf %209, %141 : vector<32x324xf32>
    %211 = arith.mulf %210, %0 : vector<32x324xf32>
    %c19_i32_137 = arith.constant 19 : i32
    %212 = tpu.dynamic_rotate %211 by %c19_i32_137 dim 1 : vector<32x324xf32>, i32 -> vector<32x324xf32>
    %c0_138 = arith.constant 0 : index
    %c0_139 = arith.constant 0 : index
    %c0_140 = arith.constant 0 : index
    %213 = vector.load %arg9[%c0_138, %c0_139, %c0_140] : memref<9x4x32xbf16, #tpu.memory_space<vmem>>, vector<1x4x32xbf16>
    %214 = vector.shape_cast %213 : vector<1x4x32xbf16> to vector<4x32xbf16>
    %215 = arith.truncf %212 : vector<32x324xf32> to vector<32x324xbf16>
    %cst_141 = arith.constant dense<0.000000e+00> : vector<4x324xf32>
    %216 = tpu.matmul %214, %215, %cst_141 {dimension_numbers = #tpu.dot_dimension_numbers<[1], [0], [0], [1], [0, 0, 1, 1], [], []>} : vector<4x32xbf16>, vector<32x324xbf16>, vector<4x324xf32> -> vector<4x324xf32>
    %c18_i32_142 = arith.constant 18 : i32
    %217 = tpu.dynamic_rotate %211 by %c18_i32_142 dim 1 : vector<32x324xf32>, i32 -> vector<32x324xf32>
    %c1_143 = arith.constant 1 : index
    %c0_144 = arith.constant 0 : index
    %c0_145 = arith.constant 0 : index
    %218 = vector.load %arg9[%c1_143, %c0_144, %c0_145] : memref<9x4x32xbf16, #tpu.memory_space<vmem>>, vector<1x4x32xbf16>
    %219 = vector.shape_cast %218 : vector<1x4x32xbf16> to vector<4x32xbf16>
    %220 = arith.truncf %217 : vector<32x324xf32> to vector<32x324xbf16>
    %cst_146 = arith.constant dense<0.000000e+00> : vector<4x324xf32>
    %221 = tpu.matmul %219, %220, %cst_146 {dimension_numbers = #tpu.dot_dimension_numbers<[1], [0], [0], [1], [0, 0, 1, 1], [], []>} : vector<4x32xbf16>, vector<32x324xbf16>, vector<4x324xf32> -> vector<4x324xf32>
    %222 = arith.addf %216, %221 : vector<4x324xf32>
    %c17_i32_147 = arith.constant 17 : i32
    %223 = tpu.dynamic_rotate %211 by %c17_i32_147 dim 1 : vector<32x324xf32>, i32 -> vector<32x324xf32>
    %c2_148 = arith.constant 2 : index
    %c0_149 = arith.constant 0 : index
    %c0_150 = arith.constant 0 : index
    %224 = vector.load %arg9[%c2_148, %c0_149, %c0_150] : memref<9x4x32xbf16, #tpu.memory_space<vmem>>, vector<1x4x32xbf16>
    %225 = vector.shape_cast %224 : vector<1x4x32xbf16> to vector<4x32xbf16>
    %226 = arith.truncf %223 : vector<32x324xf32> to vector<32x324xbf16>
    %cst_151 = arith.constant dense<0.000000e+00> : vector<4x324xf32>
    %227 = tpu.matmul %225, %226, %cst_151 {dimension_numbers = #tpu.dot_dimension_numbers<[1], [0], [0], [1], [0, 0, 1, 1], [], []>} : vector<4x32xbf16>, vector<32x324xbf16>, vector<4x324xf32> -> vector<4x324xf32>
    %228 = arith.addf %222, %227 : vector<4x324xf32>
    %c1_i32_152 = arith.constant 1 : i32
    %229 = tpu.dynamic_rotate %211 by %c1_i32_152 dim 1 : vector<32x324xf32>, i32 -> vector<32x324xf32>
    %c3_153 = arith.constant 3 : index
    %c0_154 = arith.constant 0 : index
    %c0_155 = arith.constant 0 : index
    %230 = vector.load %arg9[%c3_153, %c0_154, %c0_155] : memref<9x4x32xbf16, #tpu.memory_space<vmem>>, vector<1x4x32xbf16>
    %231 = vector.shape_cast %230 : vector<1x4x32xbf16> to vector<4x32xbf16>
    %232 = arith.truncf %229 : vector<32x324xf32> to vector<32x324xbf16>
    %cst_156 = arith.constant dense<0.000000e+00> : vector<4x324xf32>
    %233 = tpu.matmul %231, %232, %cst_156 {dimension_numbers = #tpu.dot_dimension_numbers<[1], [0], [0], [1], [0, 0, 1, 1], [], []>} : vector<4x32xbf16>, vector<32x324xbf16>, vector<4x324xf32> -> vector<4x324xf32>
    %234 = arith.addf %228, %233 : vector<4x324xf32>
    %c4_157 = arith.constant 4 : index
    %c0_158 = arith.constant 0 : index
    %c0_159 = arith.constant 0 : index
    %235 = vector.load %arg9[%c4_157, %c0_158, %c0_159] : memref<9x4x32xbf16, #tpu.memory_space<vmem>>, vector<1x4x32xbf16>
    %236 = vector.shape_cast %235 : vector<1x4x32xbf16> to vector<4x32xbf16>
    %237 = arith.truncf %211 : vector<32x324xf32> to vector<32x324xbf16>
    %cst_160 = arith.constant dense<0.000000e+00> : vector<4x324xf32>
    %238 = tpu.matmul %236, %237, %cst_160 {dimension_numbers = #tpu.dot_dimension_numbers<[1], [0], [0], [1], [0, 0, 1, 1], [], []>} : vector<4x32xbf16>, vector<32x324xbf16>, vector<4x324xf32> -> vector<4x324xf32>
    %239 = arith.addf %234, %238 : vector<4x324xf32>
    %c323_i32_161 = arith.constant 323 : i32
    %240 = tpu.dynamic_rotate %211 by %c323_i32_161 dim 1 : vector<32x324xf32>, i32 -> vector<32x324xf32>
    %c5_162 = arith.constant 5 : index
    %c0_163 = arith.constant 0 : index
    %c0_164 = arith.constant 0 : index
    %241 = vector.load %arg9[%c5_162, %c0_163, %c0_164] : memref<9x4x32xbf16, #tpu.memory_space<vmem>>, vector<1x4x32xbf16>
    %242 = vector.shape_cast %241 : vector<1x4x32xbf16> to vector<4x32xbf16>
    %243 = arith.truncf %240 : vector<32x324xf32> to vector<32x324xbf16>
    %cst_165 = arith.constant dense<0.000000e+00> : vector<4x324xf32>
    %244 = tpu.matmul %242, %243, %cst_165 {dimension_numbers = #tpu.dot_dimension_numbers<[1], [0], [0], [1], [0, 0, 1, 1], [], []>} : vector<4x32xbf16>, vector<32x324xbf16>, vector<4x324xf32> -> vector<4x324xf32>
    %245 = arith.addf %239, %244 : vector<4x324xf32>
    %c307_i32_166 = arith.constant 307 : i32
    %246 = tpu.dynamic_rotate %211 by %c307_i32_166 dim 1 : vector<32x324xf32>, i32 -> vector<32x324xf32>
    %c6_167 = arith.constant 6 : index
    %c0_168 = arith.constant 0 : index
    %c0_169 = arith.constant 0 : index
    %247 = vector.load %arg9[%c6_167, %c0_168, %c0_169] : memref<9x4x32xbf16, #tpu.memory_space<vmem>>, vector<1x4x32xbf16>
    %248 = vector.shape_cast %247 : vector<1x4x32xbf16> to vector<4x32xbf16>
    %249 = arith.truncf %246 : vector<32x324xf32> to vector<32x324xbf16>
    %cst_170 = arith.constant dense<0.000000e+00> : vector<4x324xf32>
    %250 = tpu.matmul %248, %249, %cst_170 {dimension_numbers = #tpu.dot_dimension_numbers<[1], [0], [0], [1], [0, 0, 1, 1], [], []>} : vector<4x32xbf16>, vector<32x324xbf16>, vector<4x324xf32> -> vector<4x324xf32>
    %251 = arith.addf %245, %250 : vector<4x324xf32>
    %c306_i32_171 = arith.constant 306 : i32
    %252 = tpu.dynamic_rotate %211 by %c306_i32_171 dim 1 : vector<32x324xf32>, i32 -> vector<32x324xf32>
    %c7_172 = arith.constant 7 : index
    %c0_173 = arith.constant 0 : index
    %c0_174 = arith.constant 0 : index
    %253 = vector.load %arg9[%c7_172, %c0_173, %c0_174] : memref<9x4x32xbf16, #tpu.memory_space<vmem>>, vector<1x4x32xbf16>
    %254 = vector.shape_cast %253 : vector<1x4x32xbf16> to vector<4x32xbf16>
    %255 = arith.truncf %252 : vector<32x324xf32> to vector<32x324xbf16>
    %cst_175 = arith.constant dense<0.000000e+00> : vector<4x324xf32>
    %256 = tpu.matmul %254, %255, %cst_175 {dimension_numbers = #tpu.dot_dimension_numbers<[1], [0], [0], [1], [0, 0, 1, 1], [], []>} : vector<4x32xbf16>, vector<32x324xbf16>, vector<4x324xf32> -> vector<4x324xf32>
    %257 = arith.addf %251, %256 : vector<4x324xf32>
    %c305_i32_176 = arith.constant 305 : i32
    %258 = tpu.dynamic_rotate %211 by %c305_i32_176 dim 1 : vector<32x324xf32>, i32 -> vector<32x324xf32>
    %c8_177 = arith.constant 8 : index
    %c0_178 = arith.constant 0 : index
    %c0_179 = arith.constant 0 : index
    %259 = vector.load %arg9[%c8_177, %c0_178, %c0_179] : memref<9x4x32xbf16, #tpu.memory_space<vmem>>, vector<1x4x32xbf16>
    %260 = vector.shape_cast %259 : vector<1x4x32xbf16> to vector<4x32xbf16>
    %261 = arith.truncf %258 : vector<32x324xf32> to vector<32x324xbf16>
    %cst_180 = arith.constant dense<0.000000e+00> : vector<4x324xf32>
    %262 = tpu.matmul %260, %261, %cst_180 {dimension_numbers = #tpu.dot_dimension_numbers<[1], [0], [0], [1], [0, 0, 1, 1], [], []>} : vector<4x32xbf16>, vector<32x324xbf16>, vector<4x324xf32> -> vector<4x324xf32>
    %263 = arith.addf %257, %262 : vector<4x324xf32>
    %c0_181 = arith.constant 0 : index
    %c0_182 = arith.constant 0 : index
    %264 = vector.load %arg10[%c0_181, %c0_182] : memref<4x1xf32, #tpu.memory_space<vmem>>, vector<4x1xf32>
    %265 = vector.broadcast %264 : vector<4x1xf32> to vector<4x324xf32>
    %266 = arith.addf %263, %265 : vector<4x324xf32>
    %cst_183 = arith.constant 2.000000e+01 : f32
    %267 = vector.broadcast %cst_183 : f32 to vector<4x324xf32>
    %268 = arith.cmpf ogt, %266, %267 : vector<4x324xf32>
    %cst_184 = arith.constant 2.000000e+01 : f32
    %269 = vector.broadcast %cst_184 : f32 to vector<4x324xf32>
    %270 = arith.minimumf %266, %269 : vector<4x324xf32>
    %271 = math.exp %270 : vector<4x324xf32>
    %cst_185 = arith.constant 1.000000e+00 : f32
    %272 = vector.broadcast %cst_185 : f32 to vector<4x324xf32>
    %273 = arith.addf %272, %271 : vector<4x324xf32>
    %274 = math.log %273 : vector<4x324xf32>
    %275 = arith.select %268, %266, %274 : vector<4x324xi1>, vector<4x324xf32>
    %c0_186 = arith.constant 0 : index
    %c0_187 = arith.constant 0 : index
    %c0_188 = arith.constant 0 : index
    %276 = vector.load %arg11[%c0_186, %c0_187, %c0_188] : memref<1x4x324xf32, #tpu.memory_space<vmem>>, vector<1x4x324xf32>
    %277 = vector.shape_cast %276 : vector<1x4x324xf32> to vector<4x324xf32>
    %278 = vector.shape_cast %275 : vector<4x324xf32> to vector<1x4x324xf32>
    tpu.vector_store %arg11[%c0_186, %c0_187, %c0_188], %278 {strides = array<i32>} : memref<1x4x324xf32, #tpu.memory_space<vmem>>, vector<1x4x324xf32>,
    return
  }
  func.func @transform_0(%arg0: i32) -> (i32, i32, i32) {
    %c0_i32 = arith.constant 0 : i32
    %c0_i32_0 = arith.constant 0 : i32
    %c0_i32_1 = arith.constant 0 : i32
    return %arg0, %c0_i32, %c0_i32_0 : i32, i32, i32
  }
  func.func @transform_1(%arg0: i32) -> (i32, i32) {
    %c0_i32 = arith.constant 0 : i32
    %c0_i32_0 = arith.constant 0 : i32
    %c0_i32_1 = arith.constant 0 : i32
    return %c0_i32, %c0_i32_0 : i32, i32
  }
  func.func @transform_2(%arg0: i32) -> (i32, i32, i32) {
    %c0_i32 = arith.constant 0 : i32
    %c0_i32_0 = arith.constant 0 : i32
    %c0_i32_1 = arith.constant 0 : i32
    %c0_i32_2 = arith.constant 0 : i32
    return %c0_i32, %c0_i32_0, %c0_i32_1 : i32, i32, i32
  }
  func.func @transform_3(%arg0: i32) -> (i32, i32) {
    %c0_i32 = arith.constant 0 : i32
    %c0_i32_0 = arith.constant 0 : i32
    %c0_i32_1 = arith.constant 0 : i32
    return %c0_i32, %c0_i32_0 : i32, i32
  }
  func.func @transform_4(%arg0: i32) -> (i32, i32, i32) {
    %c0_i32 = arith.constant 0 : i32
    %c0_i32_0 = arith.constant 0 : i32
    %c0_i32_1 = arith.constant 0 : i32
    %c0_i32_2 = arith.constant 0 : i32
    return %c0_i32, %c0_i32_0, %c0_i32_1 : i32, i32, i32
  }
  func.func @transform_5(%arg0: i32) -> (i32, i32) {
    %c0_i32 = arith.constant 0 : i32
    %c0_i32_0 = arith.constant 0 : i32
    %c0_i32_1 = arith.constant 0 : i32
    return %c0_i32, %c0_i32_0 : i32, i32
  }
  func.func @transform_6(%arg0: i32) -> (i32, i32, i32) {
    %c0_i32 = arith.constant 0 : i32
    %c0_i32_0 = arith.constant 0 : i32
    %c0_i32_1 = arith.constant 0 : i32
    %c0_i32_2 = arith.constant 0 : i32
    return %c0_i32, %c0_i32_0, %c0_i32_1 : i32, i32, i32
  }
  func.func @transform_7(%arg0: i32) -> (i32, i32) {
    %c0_i32 = arith.constant 0 : i32
    %c0_i32_0 = arith.constant 0 : i32
    %c0_i32_1 = arith.constant 0 : i32
    return %c0_i32, %c0_i32_0 : i32, i32
  }
  func.func @transform_8(%arg0: i32) -> (i32, i32, i32) {
    %c0_i32 = arith.constant 0 : i32
    %c0_i32_0 = arith.constant 0 : i32
    %c0_i32_1 = arith.constant 0 : i32
    %c0_i32_2 = arith.constant 0 : i32
    return %c0_i32, %c0_i32_0, %c0_i32_1 : i32, i32, i32
  }
  func.func @transform_9(%arg0: i32) -> (i32, i32) {
    %c0_i32 = arith.constant 0 : i32
    %c0_i32_0 = arith.constant 0 : i32
    %c0_i32_1 = arith.constant 0 : i32
    return %c0_i32, %c0_i32_0 : i32, i32
  }
  func.func @transform_10(%arg0: i32) -> (i32, i32, i32) {
    %c0_i32 = arith.constant 0 : i32
    %c0_i32_0 = arith.constant 0 : i32
    %c0_i32_1 = arith.constant 0 : i32
    return %arg0, %c0_i32, %c0_i32_0 : i32, i32, i32
  }
}

</mosaic_0001>

<bundles_post_ra>
// kernel: contact_map_head_forward.1
= control target key start
LH: loop header
LB: loop body
LE: loop exit
PB: predicated region body
PF: predicated region fallthrough
CT: control target
= control target key end

     0   :  { %s7592_s13 = smov 0   ;;  %s9131_s0 = inlined_call_operand.vmem [shape: f32[2,4,324], index: 0, kind: input, shape index: {}]   ;;  %s9132_s1 = inlined_call_operand.vmem [shape: f32[32,324], index: 1, kind: input, shape index: {}]   ;;  %s9133_s2 = inlined_call_operand.vmem [shape: bf16[9,32,4], index: 2, kind: input, shape index: {}]   ;;  %s9134_s3 = inlined_call_operand.vmem [shape: f32[32,1], index: 3, kind: input, shape index: {}]   ;;  %s9135_s4 = inlined_call_operand.vmem [shape: bf16[9,32,32], index: 4, kind: input, shape index: {}]   ;;  %s9136_s5 = inlined_call_operand.vmem [shape: f32[32,1], index: 5, kind: input, shape index: {}]   ;;  %s9137_s6 = inlined_call_operand.vmem [shape: bf16[9,32,32], index: 6, kind: input, shape index: {}]   ;;  %s9138_s7 = inlined_call_operand.vmem [shape: f32[32,1], index: 7, kind: input, shape index: {}]   ;;  %s9139_s8 = inlined_call_operand.vmem [shape: bf16[9,4,32], index: 8, kind: input, shape index: {}]   ;;  %s9140_s9 = inlined_call_operand.vmem [shape: f32[4,1], index: 9, kind: input, shape index: {}]   ;;  %s9141_s10 = inlined_call_operand.vmem [shape: f32[2,4,324], index: 10, kind: output, shape index: {}]  }
   0x1 LB: > { %s6243_s14 = sadd.s32 4294967295, %s7523_s13   ;;  %p6247_p0 = scmp.ge.s32.totalorder %s7523_s13, 1  ;;  %s7523_s13 = sphi %s7592_s13, %s20_s13  }
   0x2   : > { %p312_p1 = scmp.lt.s32.totalorder %s7523_s13, 3 }
   0x4   : > { %p313_p2 = pnand %p6247_p0, %p312_p1 }
   0x5   : > { %p350_p3 = scmp.lt.s32.totalorder (!%p313_p2), %s6243_s14, 1  ;;  %s7525_s19 = smov (!%p313_p2), 68   ;;  %vm378_vm0 = vcmask (!%p313_p2), 1048096   ;;  %v7618_v7 = vld [vmem:[%s9133_s2 + $0x10] sm:$0xff] (!%p313_p2)   ;;  %vm422_vm1 = vcmask (!%p313_p2), 31744   ;;  %v7527_v8 = vmov (!%p313_p2), 0  }
   0x6   : > { %316 = sbr.rel (%p313_p2) target bundleno = 3078 (0xc06), region = 60  ;;  %s7526_s20 = smov (!%p313_p2), 78   ;;  %6673 = vmatprep.mubr.msk.bf16.mxu1 (!%p313_p2), %vm422_vm1, %v7618_v7  ;;  %471 = vmatprep.mubr.bf16.mxu0 (!%p313_p2), %v7527_v8  ;;  %vm429_vm2 = vcmask (!%p313_p2), 1041408   ;;  %vm419_vm3 = vcmask (!%p313_p2), 637952   ;;  %v7358_v25 = vld [vmem:[%s9133_s2 + $0x18] sm:$0xff] (!%p313_p2)   ;;  %v7359_v27 = vld [vmem:[%s9133_s2] sm:$0xff] (!%p313_p2)  }
   0x7   : > { %7264 = vset.pattern.permute.xlu1 (!%p313_p2), %v7527_v8  ;;  %7265 = vset.pattern.permute.xlu0 (!%p313_p2), %v7527_v8  ;;  %s7528_s23 = smov (!%p313_p2), 79   ;;  %s7529_s24 = smov (!%p313_p2), 77   ;;  %vm557_vm4 = vcmask (!%p313_p2), 646144   ;;  %vm698_vm5 = vcmask (!%p313_p2), 629760   ;;  %v7360_v39 = vld [vmem:[%s9133_s2 + $0x8] sm:$0xff] (!%p313_p2)   ;;  %v7361_v40 = vld [vmem:[%s9133_s2 + $0x20] sm:$0xff] (!%p313_p2)  }
   0x8   : > { %s7530_s25 = smov (!%p313_p2), 61   ;;  %s7531_s26 = smov (!%p313_p2), 127   ;;  %v1749_v41 = vld [vmem:[%s9134_s3] sm:$0xff] (!%p313_p2)  ;;  %v1750_v42 = vld [vmem:[%s9134_s3 + $0x8] sm:$0xff] (!%p313_p2)  ;;  %v1751_v45 = vld [vmem:[%s9134_s3 + $0x10] sm:$0xff] (!%p313_p2)  ;;  %vm855_vm6 = vcmask (!%p313_p2), 498688  }
   0x9   : > { %s7532_s27 = smov (!%p313_p2), 111   ;;  %s7533_s28 = smov (!%p313_p2), 110   ;;  %v1752_v51 = vld [vmem:[%s9134_s3 + $0x18] sm:$0xff] (!%p313_p2)  ;;  %v7362_v54 = vld [vmem:[%s9133_s2 + $0x28] sm:$0xff] (!%p313_p2)   ;;  %v7363_v55 = vld [vmem:[%s9133_s2 + $0x30] sm:$0xff] (!%p313_p2)   ;;  %vm1158_vm7 = vcmask (!%p313_p2), 1039360  }
   0xa   : > { %s7534_s29 = smov (!%p313_p2), 109   ;;  %vm1311_vm8 = vcmask (!%p313_p2), 908288   ;;  %vm1464_vm9 = vcmask (!%p313_p2), 900096   ;;  %vm1617_vm10 = vcmask (!%p313_p2), 891904   ;;  %vm1994_vm11 = vcmask (!%p313_p2), 261120  }
   0xb   : > { %vm7536_vm12 = vmmov (!%p313_p2), 0   ;;  %vm6186_vm13 = vcmask (!%p313_p2), 551936  }
   0xd   : > { %s9143_s14 = smov (!%p350_p3, %s6243_s14), 1 }
   0xe   : > { %s7238_s15 = smul.u32 12, %s9143_s14 }
  0x10   : > { %s354_s18 = scalar_lea.vmem %s9131_s0, %s7238_s15 }
  0x11   : > { %v373_v0 = vld [vmem:[%s354_s18] sm:$0xff]  ;;  %v7609_v1 = vld [vmem:[%s354_s18 + $0x8] sm:$0xf] }
  0x12   : > { %379 = vrot.lane.b32.xlu0 %v373_v0, %s7525_s19  ;;  %v376_v2 = vcombine.high %v373_v0, %v373_v0  ;;  %v7635_v16 = vpack.c.bf16 %v373_v0, %v373_v0  ;;  %v995_v62 = vpack.c.bf16 %v7609_v1, %v7609_v1 }
  0x14   : > { %v7639_v17 = vpack.c.bf16 %v376_v2, %v376_v2 }
  0x84   : > { %v380_v3 = vpop.permute.xlu0 %379 }
  0x85   : > { %v381_v4 = vsel %vm378_vm0, %v380_v3, %v7609_v1  ;;  %v7365_v1 = vld [vmem:[%s9133_s2 + $0x40] sm:$0xff]  }
  0x86   : > { %v392_v5 = vpack.c.bf16 %v381_v4, %v381_v4  ;;  %v7259_v6 = vpack.i.bf16 %v381_v4, %v376_v2  ;;  %v1019_v4 = vsel %vm429_vm2, %v995_v62, 0 }
  0x88   : > { %413 = vrot.lane.b32.xlu1 %v392_v5, %s7526_s20  ;;  %7260 = vrot.lane.b32.xlu0 %v7259_v6, %s7525_s19  ;;  %v1013_v6 = vsel %vm429_vm2, %v7635_v16, 0 }
  0xfa   : > { %v7261_v9 = vpop.permute.xlu0 %7260  ;;  %v414_v19 = vpop.permute.xlu1 %413 }
  0xfb   : > { %v7263_v10 = vunpack.i.h.bf16 %v7261_v9  ;;  %v7262_v11 = vunpack.i.l.bf16 %v7261_v9 }
  0xfd   : > { %v387_v12 = vsel %vm378_vm0, %v7263_v10, %v7262_v11  ;;  %v386_v13 = vsel %vm378_vm0, %v7262_v11, %v380_v3  ;;  %v835_v18 = vpack.c.bf16 %v7263_v10, %v7263_v10  ;;  %v7364_v3 = vld [vmem:[%s9133_s2 + $0x38] sm:$0xff]   ;;  %v7366_v10 = vld [vmem:[%s9133_s2 + $0x48] sm:$0xff]   ;;  %v7367_v11 = vld [vmem:[%s9133_s2 + $0x50] sm:$0xff]  }
  0xfe   : > { %v394_v14 = vpack.c.bf16 %v387_v12, %v387_v12  ;;  %v393_v15 = vpack.c.bf16 %v386_v13, %v386_v13 }
 0x100   : > { %417 = vrot.lane.b32.xlu0 %v394_v14, %s7526_s20  ;;  %415 = vrot.lane.b32.xlu1 %v393_v15, %s7526_s20 }
 0x104   : > { %553 = vrot.lane.b32.xlu0 %v393_v15, %s7528_s23  ;;  %551 = vrot.lane.b32.xlu1 %v392_v5, %s7528_s23 }
 0x108   : > { %692 = vrot.lane.b32.xlu0 %v392_v5, %s7529_s24  ;;  %555 = vrot.lane.b32.xlu1 %v394_v14, %s7528_s23 }
 0x10c   : > { %696 = vrot.lane.b32.xlu0 %v394_v14, %s7529_s24  ;;  %694 = vrot.lane.b32.xlu1 %v393_v15, %s7529_s24 }
 0x110   : > { %849 = vrot.lane.b32.xlu0 %v393_v15, %s7530_s25  ;;  %847 = vrot.lane.b32.xlu1 %v392_v5, %s7530_s25 }
 0x114   : > { %1152 = vrot.lane.b32.xlu0 %v7635_v16, %s7531_s26  ;;  %851 = vrot.lane.b32.xlu1 %v394_v14, %s7530_s25 }
 0x118   : > { %1156 = vrot.lane.b32.xlu0 %v392_v5, %s7531_s26  ;;  %1154 = vrot.lane.b32.xlu1 %v7639_v17, %s7531_s26 }
 0x11c   : > { %1307 = vrot.lane.b32.xlu0 %v7639_v17, %s7532_s27  ;;  %1305 = vrot.lane.b32.xlu1 %v7635_v16, %s7532_s27 }
 0x120   : > { %1458 = vrot.lane.b32.xlu0 %v7635_v16, %s7533_s28  ;;  %1309 = vrot.lane.b32.xlu1 %v392_v5, %s7532_s27 }
 0x124   : > { %1462 = vrot.lane.b32.xlu0 %v392_v5, %s7533_s28  ;;  %1460 = vrot.lane.b32.xlu1 %v7639_v17, %s7533_s28 }
 0x128   : > { %1613 = vrot.lane.b32.xlu0 %v7639_v17, %s7534_s29  ;;  %1611 = vrot.lane.b32.xlu1 %v7635_v16, %s7534_s29  ;;  %v7368_v16 = vld [vmem:[%s9133_s2 + $0x58] sm:$0xff]  }
 0x12c   : > { %853 = vrot.lane.b32.xlu0 %v835_v18, %s7530_s25  ;;  %1615 = vrot.lane.b32.xlu1 %v392_v5, %s7534_s29  ;;  %v7369_v18 = vld [vmem:[%s9133_s2 + $0x60] sm:$0xff]  }
 0x130   : > { %1755 = vperm.xlu1 %7264, %v1749_v41   ;;  %1760 = vperm.xlu0 %7265, %v1750_v42  }
 0x134   : > { %1765 = vperm.xlu1 %7264, %v1751_v45  }
 0x138   : > { %1770 = vperm.xlu1 %7264, %v1752_v51  }
 0x172   : > { %v418_v20 = vpop.permute.xlu0 %417  ;;  %v416_v21 = vpop.permute.xlu1 %415 }
 0x173   : > { %7229 = vmatprep.subr.msk.bf16.mxu1 %vm429_vm2, %v418_v20  ;;  %v421_v22 = vsel %vm419_vm3, %v416_v21, %v418_v20  ;;  %v437_v23 = vsel %vm429_vm2, %v418_v20, 0  ;;  %v420_v24 = vsel %vm419_vm3, %v414_v19, %v416_v21 }
 0x174   : > { %6256 = vmatprep.subr.msk.bf16.mxu0 %vm429_vm2, %v421_v22  ;;  %6672 = vmatpush3.bf16.msra.mxu1 %v437_v23  ;;  %v431_v26 = vsel %vm429_vm2, %v420_v24, 0  ;;  %v7370_v23 = vld [vmem:[%s9133_s2 + $0x68] sm:$0xff]  }
 0x175   : > { %440 = vmatpush1.bf16.msra.mxu0 %v431_v26 }
 0x176   : > { %v554_v28 = vpop.permute.xlu0 %553  ;;  %v552_v29 = vpop.permute.xlu1 %551 }
 0x177   : > { %6674 = vmatmul.mubr.msk.bf16.vlgmr.msra.gmra.mrb[0].mxu1 %vm422_vm1, %v7358_v25  ;;  %v558_v30 = vsel %vm557_vm4, %v552_v29, %v554_v28  ;;  %v7372_v29 = vld [vmem:[%s9133_s2 + $0x78] sm:$0xff]  }
 0x178   : > { %6257 = vmatmul.mubr.msk.bf16.vlgmr.msra.gmra.mrb[0].mxu0 %vm422_vm1, %v7618_v7  ;;  %6679 = vmatprep.mubr.msk.bf16.mxu1 %vm422_vm1, %v7359_v27  ;;  %v567_v35 = vsel %vm429_vm2, %v558_v30, 0  ;;  %v7373_v30 = vld [vmem:[%s9133_s2 + $0x80] sm:$0xff]  }
 0x179   : > { %481 = vmatprep.mubr.bf16.mxu0 %v7527_v8 }
 0x17a   : > { %v693_v31 = vpop.permute.xlu0 %692  ;;  %v556_v32 = vpop.permute.xlu1 %555 }
 0x17b   : > { %7230 = vmatprep.subr.msk.bf16.mxu1 %vm429_vm2, %v556_v32  ;;  %v559_v33 = vsel %vm557_vm4, %v554_v28, %v556_v32  ;;  %v573_v34 = vsel %vm429_vm2, %v556_v32, 0 }
 0x17c   : > { %6263 = vmatprep.subr.msk.bf16.mxu0 %vm429_vm2, %v559_v33  ;;  %6678 = vmatpush3.bf16.msra.mxu1 %v573_v34 }
 0x17d   : > { %576 = vmatpush1.bf16.msra.mxu0 %v567_v35  ;;  %v7374_v35 = vld [vmem:[%s9133_s2 + $0x88] sm:$0xff]  }
 0x17e   : > { %v697_v36 = vpop.permute.xlu0 %696  ;;  %v695_v37 = vpop.permute.xlu1 %694 }
 0x17f   : > { %7231 = vmatprep.subr.msk.bf16.mxu1 %vm429_vm2, %v697_v36  ;;  %v700_v38 = vsel %vm698_vm5, %v695_v37, %v697_v36  ;;  %v714_v46 = vsel %vm429_vm2, %v697_v36, 0  ;;  %v699_v47 = vsel %vm698_vm5, %v693_v31, %v695_v37 }
 0x180   : > { %6258 = vmatmul.mubr.msk.bf16.gmra.mrb[4].mxu0 %vm422_vm1, %v7358_v25  ;;  %6274 = vmatprep.subr.msk.bf16.mxu0 %vm429_vm2, %v700_v38  ;;  %v708_v52 = vsel %vm429_vm2, %v699_v47, 0  ;;  %v7371_v25 = vld [vmem:[%s9133_s2 + $0x70] sm:$0xff]  }
 0x181   : > { %607 = vmatprep.mubr.bf16.mxu0 %v7527_v8 }
 0x182   : > { %v850_v43 = vpop.permute.xlu0 %849  ;;  %v848_v44 = vpop.permute.xlu1 %847 }
 0x183   : > { %6680 = vmatmul.mubr.msk.bf16.vlgmr.msra.gmra.mrb[0].mxu1 %vm422_vm1, %v7360_v39  ;;  %v856_v58 = vsel %vm855_vm6, %v848_v44, %v850_v43 }
 0x184   : > { %6684 = vmatpush3.bf16.msra.mxu1 %v714_v46  ;;  %6685 = vmatprep.mubr.msk.bf16.mxu1 %vm422_vm1, %v7361_v40  ;;  %v866_v60 = vsel %vm429_vm2, %v856_v58, 0 }
 0x186   : > { %v7710_v48 = vpop.permute.xlu0 %1152  ;;  %v852_v49 = vpop.permute.xlu1 %851 }
 0x187   : > { %v857_v50 = vsel %vm855_vm6, %v850_v43, %v852_v49 }
 0x188   : > { %6264 = vmatmul.mubr.msk.bf16.vlgmr.msra.gmra.mrb[0].mxu0 %vm422_vm1, %v7359_v27 }
 0x189   : > { %717 = vmatpush1.bf16.msra.mxu0 %v708_v52  ;;  %617 = vmatprep.mubr.bf16.mxu0 %v7527_v8 }
 0x18a   : > { %6285 = vmatprep.subr.msk.bf16.mxu0 %vm429_vm2, %v857_v50  ;;  %v1157_v53 = vpop.permute.xlu0 %1156  ;;  %v1155_v5 = vpop.permute.xlu1 %1154 }
 0x18b   : > { %v1160_v7 = vsel %vm1158_vm7, %v1155_v5, %v1157_v53  ;;  %v1174_v12 = vsel %vm429_vm2, %v1157_v53, 0  ;;  %v1159_v14 = vsel %vm1158_vm7, %v7710_v48, %v1155_v5 }
 0x18c   : > { %v1168_v15 = vsel %vm429_vm2, %v1159_v14, 0 }
 0x18e   : > { %v7726_v56 = vpop.permute.xlu0 %1307  ;;  %v1306_v9 = vpop.permute.xlu1 %1305 }
 0x18f   : > { %6686 = vmatmul.mubr.msk.bf16.vlgmr.msra.gmra.mrb[0].mxu1 %vm422_vm1, %v7362_v54  ;;  %v1312_v21 = vsel %vm1311_vm8, %v1306_v9, %v7726_v56 }
 0x190   : > { %6265 = vmatmul.mubr.msk.bf16.gmra.mrb[4].mxu0 %vm422_vm1, %v7360_v39  ;;  %6691 = vmatprep.mubr.msk.bf16.mxu1 %vm422_vm1, %v7363_v55  ;;  %v1321_v24 = vsel %vm429_vm2, %v1312_v21, 0 }
 0x191   : > { %748 = vmatprep.mubr.bf16.mxu0 %v7527_v8 }
 0x192   : > { %v7732_v57 = vpop.permute.xlu0 %1458  ;;  %v1310_v13 = vpop.permute.xlu1 %1309 }
 0x193   : > { %v1327_v19 = vsel %vm429_vm2, %v1310_v13, 0 }
 0x196   : > { %v7735_v59 = vpop.permute.xlu0 %1462  ;;  %v1461_v20 = vpop.permute.xlu1 %1460 }
 0x197   : > { %v1480_v26 = vsel %vm429_vm2, %v7735_v59, 0  ;;  %v1466_v28 = vsel %vm1464_vm9, %v1461_v20, %v7735_v59  ;;  %v1465_v31 = vsel %vm1464_vm9, %v7732_v57, %v1461_v20 }
 0x198   : > { %6275 = vmatmul.mubr.msk.bf16.vlgmr.msra.gmra.mrb[0].mxu0 %vm422_vm1, %v7361_v40  ;;  %v1474_v33 = vsel %vm429_vm2, %v1465_v31, 0 }
 0x199   : > { %875 = vmatpush1.bf16.msra.mxu0 %v866_v60  ;;  %758 = vmatprep.mubr.bf16.mxu0 %v7527_v8 }
 0x19a   : > { %v7740_v61 = vpop.permute.xlu0 %1613  ;;  %6296 = vmatprep.subr.msk.bf16.mxu0 %vm429_vm2, %v7639_v17  ;;  %v1313_v17 = vsel %vm1311_vm8, %v7726_v56, %v1310_v13  ;;  %v1612_v22 = vpop.permute.xlu1 %1611 }
 0x19b   : > { %v1618_v36 = vsel %vm1617_vm10, %v1612_v22, %v7740_v61 }
 0x19c   : > { %v1627_v37 = vsel %vm429_vm2, %v1618_v36, 0 }
 0x19e   : > { %v854_v63 = vpop.permute.xlu0 %853  ;;  %v1616_v27 = vpop.permute.xlu1 %1615 }
 0x19f   : > { %v858_v0 = vsel %vm855_vm6, %v852_v49, %v854_v63  ;;  %v1633_v32 = vsel %vm429_vm2, %v1616_v27, 0  ;;  %v1619_v34 = vsel %vm1617_vm10, %v7740_v61, %v1616_v27 }
 0x1a0   : > { %v872_v2 = vsel %vm429_vm2, %v858_v0, 0  ;;  %6276 = vmatmul.mubr.msk.bf16.gmra.mrb[4].mxu0 %vm422_vm1, %v7362_v54  ;;  %7232 = vmatprep.subr.msk.bf16.mxu1 %vm429_vm2, %v858_v0 }
 0x1a1   : > { %6690 = vmatpush3.bf16.msra.mxu1 %v872_v2  ;;  %906 = vmatprep.mubr.bf16.mxu0 %v7527_v8 }
 0x1a2   : > { %7233 = vmatprep.subr.msk.bf16.mxu1 %vm429_vm2, %v995_v62 }
 0x1a4   : > { %6692 = vmatmul.mubr.msk.bf16.vlgmr.msra.gmra.mrb[0].mxu1 %vm422_vm1, %v7364_v3 }
 0x1a5   : > { %6696 = vmatpush3.bf16.msra.mxu1 %v1019_v4  ;;  %6697 = vmatprep.mubr.msk.bf16.mxu1 %vm422_vm1, %v7365_v1 }
 0x1a6   : > { %7234 = vmatprep.subr.msk.bf16.mxu1 %vm429_vm2, %v1157_v53 }
 0x1a8   : > { %6286 = vmatmul.mubr.msk.bf16.vlgmr.msra.gmra.mrb[0].mxu0 %vm422_vm1, %v7363_v55 }
 0x1a9   : > { %1022 = vmatpush1.bf16.msra.mxu0 %v1013_v6  ;;  %916 = vmatprep.mubr.bf16.mxu0 %v7527_v8 }
 0x1aa   : > { %6307 = vmatprep.subr.msk.bf16.mxu0 %vm429_vm2, %v1160_v7 }
 0x1af   : > { %v7865_v42 = vpop.permute.xlu1 %1755  ;;  %v7870_v46 = vpop.permute.xlu0 %1760 }
 0x1b0   : > { %6287 = vmatmul.mubr.msk.bf16.gmra.mrb[4].mxu0 %vm422_vm1, %v7364_v3  ;;  %6698 = vmatmul.mubr.msk.bf16.vlgmr.msra.gmra.mrb[0].mxu1 %vm422_vm1, %v7366_v10 }
 0x1b1   : > { %6702 = vmatpush3.bf16.msra.mxu1 %v1174_v12  ;;  %1053 = vmatprep.mubr.bf16.mxu0 %v7527_v8 }
 0x1b2   : > { %7235 = vmatprep.subr.msk.bf16.mxu1 %vm429_vm2, %v1310_v13  ;;  %6703 = vmatprep.mubr.msk.bf16.mxu1 %vm422_vm1, %v7367_v11 }
 0x1b3   : > { %v7879_v52 = vpop.permute.xlu1 %1765 }
 0x1b7   : > { %v7898_v4 = vpop.permute.xlu1 %1770 }
 0x1b8   : > { %6297 = vmatmul.mubr.msk.bf16.vlgmr.msra.gmra.mrb[0].mxu0 %vm422_vm1, %v7365_v1 }
 0x1b9   : > { %1177 = vmatpush1.bf16.msra.mxu0 %v1168_v15  ;;  %1063 = vmatprep.mubr.bf16.mxu0 %v7527_v8 }
 0x1ba   : > { %6318 = vmatprep.subr.msk.bf16.mxu0 %vm429_vm2, %v1313_v17 }
 0x1bc   : > { %6704 = vmatmul.mubr.msk.bf16.vlgmr.msra.gmra.mrb[0].mxu1 %vm422_vm1, %v7368_v16 }
 0x1bd   : > { %6708 = vmatpush3.bf16.msra.mxu1 %v1327_v19  ;;  %6709 = vmatprep.mubr.msk.bf16.mxu1 %vm422_vm1, %v7369_v18 }
 0x1be   : > { %7236 = vmatprep.subr.msk.bf16.mxu1 %vm429_vm2, %v7735_v59 }
 0x1c0   : > { %6298 = vmatmul.mubr.msk.bf16.gmra.mrb[4].mxu0 %vm422_vm1, %v7366_v10 }
 0x1c1   : > { %1208 = vmatprep.mubr.bf16.mxu0 %v7527_v8 }
 0x1c8   : > { %6308 = vmatmul.mubr.msk.bf16.vlgmr.msra.gmra.mrb[0].mxu0 %vm422_vm1, %v7367_v11  ;;  %6710 = vmatmul.mubr.msk.bf16.vlgmr.msra.gmra.mrb[0].mxu1 %vm422_vm1, %v7370_v23 }
 0x1c9   : > { %1330 = vmatpush1.bf16.msra.mxu0 %v1321_v24  ;;  %6714 = vmatpush3.bf16.msra.mxu1 %v1480_v26 }
 0x1ca   : > { %6329 = vmatprep.subr.msk.bf16.mxu0 %vm429_vm2, %v1466_v28  ;;  %7237 = vmatprep.subr.msk.bf16.mxu1 %vm429_vm2, %v1616_v27 }
 0x1cb   : > { %1218 = vmatprep.mubr.bf16.mxu0 %v7527_v8  ;;  %6715 = vmatprep.mubr.msk.bf16.mxu1 %vm422_vm1, %v7371_v25 }
 0x1d0   : > { %6309 = vmatmul.mubr.msk.bf16.gmra.mrb[4].mxu0 %vm422_vm1, %v7368_v16 }
 0x1d1   : > { %1361 = vmatprep.mubr.bf16.mxu0 %v7527_v8 }
 0x1d4   : > { %6716 = vmatmul.mubr.msk.bf16.vlgmr.msra.gmra.mrb[0].mxu1 %vm422_vm1, %v7372_v29 }
 0x1d5   : > { %6720 = vmatpush3.bf16.msra.mxu1 %v1633_v32  ;;  %6721 = vmatprep.mubr.msk.bf16.mxu1 %vm422_vm1, %v7373_v30 }
 0x1d8   : > { %6319 = vmatmul.mubr.msk.bf16.vlgmr.msra.gmra.mrb[0].mxu0 %vm422_vm1, %v7369_v18 }
 0x1d9   : > { %1483 = vmatpush1.bf16.msra.mxu0 %v1474_v33  ;;  %1371 = vmatprep.mubr.bf16.mxu0 %v7527_v8 }
 0x1da   : > { %6340 = vmatprep.subr.msk.bf16.mxu0 %vm429_vm2, %v1619_v34 }
 0x1e0   : > { %6320 = vmatmul.mubr.msk.bf16.gmra.mrb[4].mxu0 %vm422_vm1, %v7370_v23  ;;  %6722 = vmatmul.mubr.msk.bf16.vlgmr.msra.gmra.mrb[0].mxu1 %vm422_vm1, %v7374_v35 }
 0x1e1   : > { %1514 = vmatprep.mubr.bf16.mxu0 %v7527_v8  ;;  %2033 = vmatprep.mubr.bf16.mxu1 %v7527_v8 }
 0x1e8   : > { %6330 = vmatmul.mubr.msk.bf16.vlgmr.msra.gmra.mrb[0].mxu0 %vm422_vm1, %v7371_v25 }
 0x1e9   : > { %1636 = vmatpush1.bf16.msra.mxu0 %v1627_v37  ;;  %1524 = vmatprep.mubr.bf16.mxu0 %v7527_v8 }
 0x1f0   : > { %6331 = vmatmul.mubr.msk.bf16.gmra.mrb[4].mxu0 %vm422_vm1, %v7372_v29 }
 0x1f1   : > { %1667 = vmatprep.mubr.bf16.mxu0 %v7527_v8 }
 0x1f8   : > { %6341 = vmatmul.mubr.msk.bf16.vlgmr.msra.gmra.mrb[0].mxu0 %vm422_vm1, %v7373_v30 }
 0x1f9   : > { %1677 = vmatprep.mubr.bf16.mxu0 %v7527_v8 }
 0x200   : > { %6342 = vmatmul.mubr.msk.bf16.gmra.mrb[4].mxu0 %vm422_vm1, %v7374_v35 }
 0x201   : > { %3635 = vmatprep.mubr.bf16.mxu0 %v7527_v8 }
 0x2b3   : > { %v7857_v38 = vpop.f32.mrb[0].mxu1 }
 0x2b4   : > { %v7859_v39 = vpop.f32.mrb[1].mxu1 }
 0x2b5   : > { %v7861_v40 = vpop.f32.mrb[2].mxu1 }
 0x2b6   : > { %v7863_v41 = vpop.f32.mrb[3].mxu1 }
 0x2cb   : > { %v1669_v43 = vpop.f32.mrb[0].mxu0 }
 0x2cc   : > { %v7868_v44 = vadd.f32 %v7865_v42, %v1669_v43  ;;  %v1671_v45 = vpop.f32.mrb[1].mxu0 }
 0x2cd   : > { %v7873_v47 = vadd.f32 %v7865_v42, %v1671_v45  ;;  %v1673_v48 = vpop.f32.mrb[2].mxu0 }
 0x2ce   : > { %v1797_v49 = vmul.f32 0.044715, %v7868_v44  ;;  %v7877_v50 = vadd.f32 %v7870_v46, %v1673_v48  ;;  %v1675_v51 = vpop.f32.mrb[3].mxu0 }
 0x2cf   : > { %v1798_v53 = vmul.f32 0.044715, %v7873_v47  ;;  %v7883_v54 = vadd.f32 %v7870_v46, %v1675_v51 }
 0x2d0   : > { %v1809_v55 = vmul.f32 %v1797_v49, %v7868_v44  ;;  %v1800_v56 = vmul.f32 0.044715, %v7877_v50  ;;  %v1785_v49 = vmul.f32 0.5, %v7868_v44 }
 0x2d1   : > { %v1810_v57 = vmul.f32 %v1798_v53, %v7873_v47  ;;  %v1801_v58 = vmul.f32 0.044715, %v7883_v54 }
 0x2d2   : > { %v1821_v59 = vmul.f32 %v1809_v55, %v7868_v44  ;;  %v1812_v60 = vmul.f32 %v1800_v56, %v7877_v50  ;;  %v1788_v56 = vmul.f32 0.5, %v7877_v50 }
 0x2d3   : > { %v1822_v61 = vmul.f32 %v1810_v57, %v7873_v47  ;;  %v1813_v62 = vmul.f32 %v1801_v58, %v7883_v54  ;;  %v1679_v63 = vpop.f32.mrb[4].mxu0 }
 0x2d4   : > { %v1833_v0 = vadd.f32 %v1821_v59, %v7868_v44  ;;  %v1824_v2 = vmul.f32 %v1812_v60, %v7877_v50  ;;  %v7896_v3 = vadd.f32 %v7879_v52, %v1679_v63  ;;  %v1681_v1 = vpop.f32.mrb[5].mxu0  ;;  %v361_v60 = vld [vmem:[%s9132_s1] sm:$0xff] }
 0x2d5   : > { %v1834_v5 = vadd.f32 %v1822_v61, %v7873_v47  ;;  %v1825_v6 = vmul.f32 %v1813_v62, %v7883_v54  ;;  %v7903_v7 = vadd.f32 %v7879_v52, %v1681_v1  ;;  %v1683_v9 = vpop.f32.mrb[6].mxu0  ;;  %v364_v61 = vld [vmem:[%s9132_s1 + $0x18] sm:$0xff]  ;;  %v1789_v62 = vmul.f32 0.5, %v7883_v54 }
 0x2d6   : > { %v1845_v10 = vmul.f32 0.7978846, %v1833_v0  ;;  %v1836_v11 = vadd.f32 %v1824_v2, %v7877_v50  ;;  %v1803_v12 = vmul.f32 0.044715, %v7896_v3  ;;  %v7908_v13 = vadd.f32 %v7898_v4, %v1683_v9  ;;  %v1685_v14 = vpop.f32.mrb[7].mxu0  ;;  %v365_v50 = vld [vmem:[%s9132_s1 + $0x20] sm:$0xff] }
 0x2d7   : > { %v1846_v15 = vmul.f32 0.7978846, %v1834_v5  ;;  %v1837_v16 = vadd.f32 %v1825_v6, %v7883_v54  ;;  %v1804_v17 = vmul.f32 0.044715, %v7903_v7  ;;  %v7913_v18 = vadd.f32 %v7898_v4, %v1685_v14 }
 0x2d8   : > { %7411 = vtanh.f32 %v1845_v10  ;;  %v1848_v19 = vmul.f32 0.7978846, %v1836_v11  ;;  %v1815_v20 = vmul.f32 %v1803_v12, %v7896_v3  ;;  %v1806_v21 = vmul.f32 0.044715, %v7908_v13  ;;  %v362_v10 = vld [vmem:[%s9132_s1 + $0x8] sm:$0xff] }
 0x2d9   : > { %7413 = vtanh.f32 %v1846_v15  ;;  %v1849_v22 = vmul.f32 0.7978846, %v1837_v16  ;;  %v1816_v23 = vmul.f32 %v1804_v17, %v7903_v7  ;;  %v1807_v24 = vmul.f32 0.044715, %v7913_v18 }
 0x2da   : > { %7415 = vtanh.f32 %v1848_v19  ;;  %v1827_v25 = vmul.f32 %v1815_v20, %v7896_v3  ;;  %v1818_v26 = vmul.f32 %v1806_v21, %v7908_v13  ;;  %v1786_v0 = vmul.f32 0.5, %v7873_v47 }
 0x2db   : > { %7417 = vtanh.f32 %v1849_v22  ;;  %v1828_v27 = vmul.f32 %v1816_v23, %v7903_v7  ;;  %v1819_v28 = vmul.f32 %v1807_v24, %v7913_v18  ;;  %v1791_v12 = vmul.f32 0.5, %v7896_v3  ;;  %v367_v24 = vld [vmem:[%s9132_s1 + $0x30] sm:$0xff] }
 0x2dc   : > { %v1839_v29 = vadd.f32 %v1827_v25, %v7896_v3  ;;  %v1830_v30 = vmul.f32 %v1818_v26, %v7908_v13  ;;  %v1792_v16 = vmul.f32 0.5, %v7903_v7  ;;  %v1794_v21 = vmul.f32 0.5, %v7908_v13  ;;  %v370_v3 = vld [vmem:[%s9132_s1 + $0x48] sm:$0xff] }
 0x2dd   : > { %v1840_v31 = vadd.f32 %v1828_v27, %v7903_v7  ;;  %v1831_v32 = vmul.f32 %v1819_v28, %v7913_v18  ;;  %v1795_v7 = vmul.f32 0.5, %v7913_v18 }
 0x2de   : > { %v1851_v33 = vmul.f32 0.7978846, %v1839_v29  ;;  %v1842_v34 = vadd.f32 %v1830_v30, %v7908_v13  ;;  %v368_v13 = vld [vmem:[%s9132_s1 + $0x38] sm:$0xff]  ;;  %v371_v29 = vld [vmem:[%s9132_s1 + $0x50] sm:$0xff] }
 0x2df   : > { %v1852_v35 = vmul.f32 0.7978846, %v1840_v31  ;;  %v1843_v36 = vadd.f32 %v1831_v32, %v7913_v18 }
 0x2e0   : > { %7419 = vtanh.f32 %v1851_v33  ;;  %v1854_v37 = vmul.f32 0.7978846, %v1842_v34 }
 0x2e1   : > { %7421 = vtanh.f32 %v1852_v35  ;;  %v1855_v43 = vmul.f32 0.7978846, %v1843_v36  ;;  %v1775_v36 = vadd.f32 %v7865_v42, %v7859_v39 }
 0x2e2   : > { %v7412_v45 = vpop.eup %7411  ;;  %7423 = vtanh.f32 %v1854_v37  ;;  %v1778_v37 = vadd.f32 %v7870_v46, %v7863_v41 }
 0x2e3   : > { %v7414_v48 = vpop.eup %7413  ;;  %7425 = vtanh.f32 %v1855_v43  ;;  %v1869_v51 = vadd.f32 1.0, %v7412_v45  ;;  %v1799_v43 = vmul.f32 0.044715, %v1775_v36 }
 0x2e4   : > { %v7416_v53 = vpop.eup %7415  ;;  %v1870_v59 = vadd.f32 1.0, %v7414_v48  ;;  %v1802_v45 = vmul.f32 0.044715, %v1778_v37  ;;  %v1781_v48 = vadd.f32 %v7857_v38, %v7879_v52 }
 0x2e5   : > { %v7418_v55 = vpop.eup %7417  ;;  %v1872_v57 = vadd.f32 1.0, %v7416_v53  ;;  %v1881_v58 = vmul.f32 %v1869_v51, %v1785_v49  ;;  %v1811_v49 = vmul.f32 %v1799_v43, %v1775_v36  ;;  %v1784_v51 = vadd.f32 %v7861_v40, %v7898_v4 }
 0x2e6   : > { %v1873_v63 = vadd.f32 1.0, %v7418_v55  ;;  %v1882_v6 = vmul.f32 %v1870_v59, %v1786_v0  ;;  %v1814_v53 = vmul.f32 %v1802_v45, %v1778_v37  ;;  %v1805_v55 = vmul.f32 0.044715, %v1781_v48 }
 0x2e7   : > { %v1884_v44 = vmul.f32 %v1872_v57, %v1788_v56  ;;  %v7942_v1 = vmul.f32 %v1881_v58, %v361_v60  ;;  %v1823_v56 = vmul.f32 %v1811_v49, %v1775_v36  ;;  %v1808_v57 = vmul.f32 0.044715, %v1784_v51 }
 0x2e8   : > { %v1885_v2 = vmul.f32 %v1873_v63, %v1789_v62  ;;  %v7956_v20 = vmul.f32 %v1882_v6, %v362_v10  ;;  %v1826_v58 = vmul.f32 %v1814_v53, %v1778_v37  ;;  %v1817_v59 = vmul.f32 %v1805_v55, %v1781_v48 }
 0x2e9   : > { %v7944_v5 = vmul.f32 %v1884_v44, %v364_v61  ;;  %v1835_v60 = vadd.f32 %v1823_v56, %v1775_v36  ;;  %v1820_v39 = vmul.f32 %v1808_v57, %v1784_v51  ;;  %v1787_v0 = vmul.f32 0.5, %v1775_v36 }
 0x2ea   : > { %v7420_v9 = vpop.eup %7419  ;;  %v7951_v47 = vmul.f32 %v1885_v2, %v365_v50  ;;  %v1838_v42 = vadd.f32 %v1826_v58, %v1778_v37  ;;  %v1829_v61 = vmul.f32 %v1817_v59, %v1781_v48  ;;  %v1790_v50 = vmul.f32 0.5, %v1778_v37 }
 0x2eb   : > { %v7422_v54 = vpop.eup %7421  ;;  %v7266_v11 = vpack.i.bf16 %v7944_v5, %v7942_v1  ;;  %v1875_v14 = vadd.f32 1.0, %v7420_v9  ;;  %v1847_v41 = vmul.f32 0.7978846, %v1835_v60  ;;  %v1832_v46 = vmul.f32 %v1820_v39, %v1784_v51 }
 0x2ec   : > { %v7424_v15 = vpop.eup %7423  ;;  %v1876_v17 = vadd.f32 1.0, %v7422_v54  ;;  %v7276_v27 = vpack.i.bf16 %v7951_v47, %v7956_v20  ;;  %v1850_v62 = vmul.f32 0.7978846, %v1838_v42  ;;  %v1841_v63 = vadd.f32 %v1829_v61, %v1781_v48 }
 0x2ed   : > { %v7426_v19 = vpop.eup %7425  ;;  %7267 = vrot.lane.b32.xlu0 %v7266_v11, %s7525_s19  ;;  %v1878_v22 = vadd.f32 1.0, %v7424_v15  ;;  %v1887_v23 = vmul.f32 %v1875_v14, %v1791_v12  ;;  %7427 = vtanh.f32 %v1847_v41  ;;  %v1844_v38 = vadd.f32 %v1832_v46, %v1784_v51  ;;  %v363_v12 = vld [vmem:[%s9132_s1 + $0x10] sm:$0xff]  ;;  %v366_v14 = vld [vmem:[%s9132_s1 + $0x28] sm:$0xff] }
 0x2ee   : > { %v1879_v25 = vadd.f32 1.0, %v7426_v19  ;;  %v1888_v26 = vmul.f32 %v1876_v17, %v1792_v16  ;;  %7429 = vtanh.f32 %v1850_v62  ;;  %v1853_v52 = vmul.f32 0.7978846, %v1841_v63 }
 0x2ef   : > { %v1890_v28 = vmul.f32 %v1878_v22, %v1794_v21  ;;  %v7975_v31 = vmul.f32 %v1887_v23, %v367_v24  ;;  %v1856_v44 = vmul.f32 0.7978846, %v1844_v38  ;;  %v1793_v15 = vmul.f32 0.5, %v1781_v48 }
 0x2f0   : > { %v1891_v30 = vmul.f32 %v1879_v25, %v1795_v7  ;;  %v7979_v32 = vmul.f32 %v1888_v26, %v368_v13  ;;  %7431 = vtanh.f32 %v1853_v52  ;;  %v1796_v17 = vmul.f32 0.5, %v1784_v51 }
 0x2f1   : > { %7277 = vrot.lane.b32.xlu0 %v7276_v27, %s7525_s19  ;;  %v7977_v18 = vmul.f32 %v1890_v28, %v370_v3  ;;  %7433 = vtanh.f32 %v1856_v44 }
 0x2f2   : > { %v7981_v33 = vmul.f32 %v1891_v30, %v371_v29 }
 0x2f3   : > { %v7271_v34 = vpack.i.bf16 %v7977_v18, %v7975_v31 }
 0x2f4   : > { %v7281_v35 = vpack.i.bf16 %v7981_v33, %v7979_v32 }
 0x2f5   : > { %7272 = vrot.lane.b32.xlu1 %v7271_v34, %s7525_s19  ;;  %v369_v34 = vld [vmem:[%s9132_s1 + $0x40] sm:$0xff] }
 0x2f6   : > { %7282 = vrot.lane.b32.xlu0 %v7281_v35, %s7525_s19  ;;  %v372_v35 = vld [vmem:[%s9132_s1 + $0x58] sm:$0xff] }
 0x2f7   : > { %v7428_v40 = vpop.eup %7427 }
 0x2f8   : > { %v7430_v4 = vpop.eup %7429  ;;  %v1871_v2 = vadd.f32 1.0, %v7428_v40 }
 0x2f9   : > { %v1874_v6 = vadd.f32 1.0, %v7430_v4 }
 0x2fa   : > { %v7432_v9 = vpop.eup %7431  ;;  %v1883_v54 = vmul.f32 %v1871_v2, %v1787_v0 }
 0x2fb   : > { %v7434_v10 = vpop.eup %7433  ;;  %v1886_v11 = vmul.f32 %v1874_v6, %v1790_v50  ;;  %v1877_v19 = vadd.f32 1.0, %v7432_v9 }
 0x2fc   : > { %v1880_v21 = vadd.f32 1.0, %v7434_v10  ;;  %v8003_v24 = vmul.f32 %v1883_v54, %v363_v12  ;;  %v8083_v12 = vpack.c.bf16 %v7944_v5, %v7942_v1 }
 0x2fd   : > { %v8005_v3 = vmul.f32 %v1886_v11, %v366_v14  ;;  %v1889_v29 = vmul.f32 %v1877_v19, %v1793_v15  ;;  %v8075_v11 = vpack.c.bf16 %v7951_v47, %v7956_v20  ;;  %v8087_v14 = vpack.c.bf16 %v7981_v33, %v7979_v32  ;;  %v3342_v19 = vld [vmem:[%s9136_s5 + $0x10] sm:$0xff] }
 0x2fe   : > { %v1892_v30 = vmul.f32 %v1880_v21, %v1796_v17  ;;  %v8095_v15 = vpack.c.bf16 %v7977_v18, %v7975_v31  ;;  %v3341_v17 = vld [vmem:[%s9136_s5 + $0x8] sm:$0xff]  ;;  %v3343_v21 = vld [vmem:[%s9136_s5 + $0x18] sm:$0xff] }
 0x2ff   : > { %v8020_v53 = vmul.f32 %v1889_v29, %v369_v34  ;;  %v7375_v34 = vld [vmem:[%s9135_s4 + $0x10] sm:$0xff]  }
 0x300   : > { %v8022_v55 = vmul.f32 %v1892_v30, %v372_v35 }
 0x35f   : > { %v7268_v16 = vpop.permute.xlu0 %7267 }
 0x360   : > { %v7270_v22 = vunpack.i.h.bf16 %v7268_v16  ;;  %v7269_v23 = vunpack.i.l.bf16 %v7268_v16  ;;  %v3340_v16 = vld [vmem:[%s9136_s5] sm:$0xff] }
 0x362   : > { %v1907_v7 = vsel %vm378_vm0, %v7269_v23, %v8003_v24  ;;  %v1910_v25 = vsel %vm378_vm0, %v7270_v22, %v8005_v3 }
 0x363   : > { %v7278_v26 = vpop.permute.xlu0 %7277  ;;  %v7286_v27 = vpack.i.bf16 %v1910_v25, %v1907_v7  ;;  %v8025_v58 = vpack.c.bf16 %v1910_v25, %v1907_v7 }
 0x364   : > { %v7280_v28 = vunpack.i.h.bf16 %v7278_v26  ;;  %v7279_v13 = vunpack.i.l.bf16 %v7278_v26 }
 0x365   : > { %7287 = vrot.lane.b32.xlu1 %v7286_v27, %s7525_s19 }
 0x366   : > { %v1934_v36 = vsel %vm378_vm0, %v7280_v28, %v7270_v22  ;;  %v1933_v37 = vsel %vm378_vm0, %v7279_v13, %v7269_v23 }
 0x367   : > { %v7273_v43 = vpop.permute.xlu1 %7272  ;;  %v1946_v45 = vpack.c.bf16 %v1934_v36, %v1933_v37  ;;  %v7376_v37 = vld [vmem:[%s9135_s4 + $0x18] sm:$0xff]  }
 0x368   : > { %v7275_v48 = vunpack.i.h.bf16 %v7273_v43  ;;  %v7274_v49 = vunpack.i.l.bf16 %v7273_v43  ;;  %v7283_v51 = vpop.permute.xlu0 %7282 }
 0x369   : > { %v7285_v56 = vunpack.i.h.bf16 %v7283_v51  ;;  %v7284_v57 = vunpack.i.l.bf16 %v7283_v51  ;;  %1974 = vrot.lane.b32.xlu0 %v1946_v45, %s7526_s20 }
 0x36a   : > { %v1913_v59 = vsel %vm378_vm0, %v7274_v49, %v8020_v53  ;;  %v1916_v60 = vsel %vm378_vm0, %v7275_v48, %v8022_v55 }
 0x36b   : > { %v1936_v39 = vsel %vm378_vm0, %v7285_v56, %v7275_v48  ;;  %v1935_v42 = vsel %vm378_vm0, %v7284_v57, %v7274_v49  ;;  %v7291_v61 = vpack.i.bf16 %v1916_v60, %v1913_v59  ;;  %v8033_v41 = vpack.c.bf16 %v1916_v60, %v1913_v59  ;;  %v7377_v59 = vld [vmem:[%s9135_s4] sm:$0xff]  }
 0x36c   : > { %v1949_v46 = vpack.c.bf16 %v1936_v39, %v1935_v42  ;;  %v7378_v42 = vld [vmem:[%s9135_s4 + $0x8] sm:$0xff]  }
 0x36d   : > { %7292 = vrot.lane.b32.xlu1 %v7291_v61, %s7525_s19  ;;  %1972 = vrot.lane.b32.xlu0 %v8025_v58, %s7526_s20 }
 0x3d7   : > { %v7288_v62 = vpop.permute.xlu1 %7287 }
 0x3d8   : > { %v7290_v63 = vunpack.i.h.bf16 %v7288_v62  ;;  %v7289_v38 = vunpack.i.l.bf16 %v7288_v62 }
 0x3da   : > { %v1938_v52 = vsel %vm378_vm0, %v7290_v63, %v7280_v28  ;;  %v1937_v44 = vsel %vm378_vm0, %v7289_v38, %v7279_v13  ;;  %v2405_v10 = vpack.c.bf16 %v7290_v63, %v7289_v38 }
 0x3db   : > { %v1947_v40 = vpack.c.bf16 %v1938_v52, %v1937_v44  ;;  %v1975_v22 = vpop.permute.xlu0 %1974 }
 0x3dd   : > { %1976 = vrot.lane.b32.xlu1 %v1947_v40, %s7526_s20 }
 0x3df   : > { %v7293_v4 = vpop.permute.xlu1 %7292  ;;  %v1973_v23 = vpop.permute.xlu0 %1972 }
 0x3e0   : > { %v7295_v0 = vunpack.i.h.bf16 %v7293_v4  ;;  %v7294_v50 = vunpack.i.l.bf16 %v7293_v4  ;;  %v1984_v26 = vsel %vm419_vm3, %v1973_v23, %v1975_v22 }
 0x3e1   : > { %1980 = vrot.lane.b32.xlu1 %v1949_v46, %s7526_s20 }
 0x3e2   : > { %v1939_v2 = vsel %vm378_vm0, %v7294_v50, %v7284_v57  ;;  %v1940_v6 = vsel %vm378_vm0, %v7295_v0, %v7285_v56  ;;  %v2406_v54 = vpack.c.bf16 %v7295_v0, %v7294_v50  ;;  %v7380_v50 = vld [vmem:[%s9135_s4 + $0x28] sm:$0xff]  }
 0x3e3   : > { %v1950_v9 = vpack.c.bf16 %v1940_v6, %v1939_v2 }
 0x3e5   : > { %1982 = vrot.lane.b32.xlu0 %v1950_v9, %s7526_s20  ;;  %1978 = vrot.lane.b32.xlu1 %v8033_v41, %s7526_s20 }
 0x3e9   : > { %2115 = vrot.lane.b32.xlu0 %v1946_v45, %s7528_s23  ;;  %2117 = vrot.lane.b32.xlu1 %v1947_v40, %s7528_s23 }
 0x3ed   : > { %2113 = vrot.lane.b32.xlu0 %v8025_v58, %s7528_s23  ;;  %2121 = vrot.lane.b32.xlu1 %v1949_v46, %s7528_s23 }
 0x3f1   : > { %2123 = vrot.lane.b32.xlu0 %v1950_v9, %s7528_s23  ;;  %2119 = vrot.lane.b32.xlu1 %v8033_v41, %s7528_s23 }
 0x3f5   : > { %2260 = vrot.lane.b32.xlu0 %v1946_v45, %s7529_s24  ;;  %2262 = vrot.lane.b32.xlu1 %v1947_v40, %s7529_s24 }
 0x3f9   : > { %2258 = vrot.lane.b32.xlu0 %v8025_v58, %s7529_s24  ;;  %2266 = vrot.lane.b32.xlu1 %v1949_v46, %s7529_s24 }
 0x3fd   : > { %2268 = vrot.lane.b32.xlu0 %v1950_v9, %s7529_s24  ;;  %2264 = vrot.lane.b32.xlu1 %v8033_v41, %s7529_s24 }
 0x401   : > { %2421 = vrot.lane.b32.xlu0 %v1946_v45, %s7530_s25  ;;  %2423 = vrot.lane.b32.xlu1 %v1947_v40, %s7530_s25  ;;  %v7379_v40 = vld [vmem:[%s9135_s4 + $0x20] sm:$0xff]  }
 0x405   : > { %2419 = vrot.lane.b32.xlu0 %v8025_v58, %s7530_s25  ;;  %2429 = vrot.lane.b32.xlu1 %v1949_v46, %s7530_s25 }
 0x409   : > { %2431 = vrot.lane.b32.xlu0 %v1950_v9, %s7530_s25  ;;  %2427 = vrot.lane.b32.xlu1 %v8033_v41, %s7530_s25 }
 0x40d   : > { %2425 = vrot.lane.b32.xlu0 %v2405_v10, %s7530_s25  ;;  %2433 = vrot.lane.b32.xlu1 %v2406_v54, %s7530_s25 }
 0x411   : > { %2729 = vrot.lane.b32.xlu0 %v8075_v11, %s7531_s26  ;;  %2731 = vrot.lane.b32.xlu1 %v8025_v58, %s7531_s26 }
 0x415   : > { %2727 = vrot.lane.b32.xlu0 %v8083_v12, %s7531_s26  ;;  %2735 = vrot.lane.b32.xlu1 %v8087_v14, %s7531_s26 }
 0x419   : > { %2737 = vrot.lane.b32.xlu0 %v8033_v41, %s7531_s26  ;;  %2733 = vrot.lane.b32.xlu1 %v8095_v15, %s7531_s26 }
 0x41d   : > { %2886 = vrot.lane.b32.xlu0 %v8075_v11, %s7532_s27  ;;  %2888 = vrot.lane.b32.xlu1 %v8025_v58, %s7532_s27 }
 0x421   : > { %2884 = vrot.lane.b32.xlu0 %v8083_v12, %s7532_s27  ;;  %2892 = vrot.lane.b32.xlu1 %v8087_v14, %s7532_s27 }
 0x425   : > { %2894 = vrot.lane.b32.xlu0 %v8033_v41, %s7532_s27  ;;  %2890 = vrot.lane.b32.xlu1 %v8095_v15, %s7532_s27 }
 0x429   : > { %3043 = vrot.lane.b32.xlu0 %v8075_v11, %s7533_s28  ;;  %3045 = vrot.lane.b32.xlu1 %v8025_v58, %s7533_s28 }
 0x42d   : > { %3041 = vrot.lane.b32.xlu0 %v8083_v12, %s7533_s28  ;;  %3049 = vrot.lane.b32.xlu1 %v8087_v14, %s7533_s28 }
 0x431   : > { %3051 = vrot.lane.b32.xlu0 %v8033_v41, %s7533_s28  ;;  %3047 = vrot.lane.b32.xlu1 %v8095_v15, %s7533_s28 }
 0x435   : > { %3200 = vrot.lane.b32.xlu0 %v8075_v11, %s7534_s29  ;;  %3202 = vrot.lane.b32.xlu1 %v8025_v58, %s7534_s29 }
 0x439   : > { %3198 = vrot.lane.b32.xlu0 %v8083_v12, %s7534_s29  ;;  %3206 = vrot.lane.b32.xlu1 %v8087_v14, %s7534_s29 }
 0x43d   : > { %3208 = vrot.lane.b32.xlu0 %v8033_v41, %s7534_s29  ;;  %3204 = vrot.lane.b32.xlu1 %v8095_v15, %s7534_s29 }
 0x441   : > { %3346 = vperm.xlu0 %7265, %v3340_v16   ;;  %3351 = vperm.xlu1 %7264, %v3341_v17  }
 0x445   : > { %3356 = vperm.xlu0 %7265, %v3342_v19   ;;  %3361 = vperm.xlu1 %7264, %v3343_v21  }
 0x44f   : > { %v1977_v7 = vpop.permute.xlu1 %1976 }
 0x450   : > { %v1985_v25 = vsel %vm419_vm3, %v1975_v22, %v1977_v7  ;;  %v7381_v22 = vld [vmem:[%s9135_s4 + $0x30] sm:$0xff]  }
 0x451   : > { %2001 = vmatprep.subr.bf16.mxu1 %v1985_v25 }
 0x452   : > { %2002 = vmatpush1.bf16.msra.mxu1 %v1984_v26  ;;  %v7382_v26 = vld [vmem:[%s9135_s4 + $0x38] sm:$0xff]  }
 0x453   : > { %v1981_v27 = vpop.permute.xlu1 %1980 }
 0x457   : > { %v1983_v28 = vpop.permute.xlu0 %1982  ;;  %v1979_v13 = vpop.permute.xlu1 %1978 }
 0x458   : > { %v1986_v29 = vsel %vm419_vm3, %v1979_v13, %v1981_v27  ;;  %v1987_v30 = vsel %vm419_vm3, %v1981_v27, %v1983_v28  ;;  %v2574_v27 = vpack.c.bf16 %v8005_v3, %v8003_v24  ;;  %v7384_v13 = vld [vmem:[%s9135_s4 + $0x48] sm:$0xff]  }
 0x459   : > { %2003 = vmatprep.subr.bf16.mxu1 %v1987_v30 }
 0x45a   : > { %2004 = vmatpush1.bf16.msra.mxu1 %v1986_v29 }
 0x45b   : > { %6725 = vmatprep.subr.bf16.mxu1 %v1977_v7  ;;  %v2116_v35 = vpop.permute.xlu0 %2115  ;;  %v2118_v36 = vpop.permute.xlu1 %2117 }
 0x45c   : > { %v2126_v43 = vsel %vm557_vm4, %v2116_v35, %v2118_v36 }
 0x45d   : > { %6351 = vmatmul.mubr.msk.bf16.vlgmr.msra.gmra.mrb[4].mxu1 %vm1994_vm11, %v7375_v34 }
 0x45e   : > { %6726 = vmatpush3.bf16.msra.mxu1 %v1977_v7  ;;  %2043 = vmatprep.mubr.bf16.mxu1 %v7527_v8 }
 0x45f   : > { %6727 = vmatprep.subr.bf16.mxu1 %v1983_v28  ;;  %v2114_v45 = vpop.permute.xlu0 %2113  ;;  %v2122_v48 = vpop.permute.xlu1 %2121 }
 0x460   : > { %v2125_v51 = vsel %vm557_vm4, %v2114_v45, %v2116_v35  ;;  %v7385_v45 = vld [vmem:[%s9135_s4 + $0x50] sm:$0xff]  }
 0x462   : > { %6728 = vmatpush3.bf16.msra.mxu1 %v1983_v28  ;;  %v7383_v28 = vld [vmem:[%s9135_s4 + $0x40] sm:$0xff]  }
 0x463   : > { %2141 = vmatprep.subr.bf16.mxu1 %v2126_v43  ;;  %v2124_v49 = vpop.permute.xlu0 %2123  ;;  %v2120_v56 = vpop.permute.xlu1 %2119 }
 0x464   : > { %v2128_v57 = vsel %vm557_vm4, %v2122_v48, %v2124_v49  ;;  %v2127_v58 = vsel %vm557_vm4, %v2120_v56, %v2122_v48 }
 0x465   : > { %6352 = vmatmul.mubr.msk.bf16.gmra.mrb[8].mxu1 %vm1994_vm11, %v7376_v37 }
 0x466   : > { %6729 = vmatprep.mubr.msk.bf16.mxu1 %vm1994_vm11, %v7375_v34 }
 0x467   : > { %v2261_v60 = vpop.permute.xlu0 %2260  ;;  %v2263_v39 = vpop.permute.xlu1 %2262 }
 0x468   : > { %v2271_v61 = vsel %vm698_vm5, %v2261_v60, %v2263_v39 }
 0x46b   : > { %v2259_v41 = vpop.permute.xlu0 %2258  ;;  %v2267_v46 = vpop.permute.xlu1 %2266 }
 0x46c   : > { %v2270_v63 = vsel %vm698_vm5, %v2259_v41, %v2261_v60  ;;  %v7387_v41 = vld [vmem:[%s9135_s4 + $0x60] sm:$0xff]  }
 0x46d   : > { %6730 = vmatmul.mubr.msk.bf16.vlgmr.msra.gmra.mrb[12].mxu1 %vm1994_vm11, %v7376_v37 }
 0x46e   : > { %2142 = vmatpush1.bf16.msra.mxu1 %v2125_v51  ;;  %2173 = vmatprep.mubr.bf16.mxu1 %v7527_v8  ;;  %v7386_v51 = vld [vmem:[%s9135_s4 + $0x58] sm:$0xff]  }
 0x46f   : > { %2143 = vmatprep.subr.bf16.mxu1 %v2128_v57  ;;  %v2269_v62 = vpop.permute.xlu0 %2268  ;;  %v2265_v38 = vpop.permute.xlu1 %2264 }
 0x470   : > { %v2273_v52 = vsel %vm698_vm5, %v2267_v46, %v2269_v62  ;;  %v2272_v44 = vsel %vm698_vm5, %v2265_v38, %v2267_v46 }
 0x472   : > { %2144 = vmatpush1.bf16.msra.mxu1 %v2127_v58 }
 0x473   : > { %6733 = vmatprep.subr.bf16.mxu1 %v2118_v36  ;;  %v2422_v4 = vpop.permute.xlu0 %2421  ;;  %v2424_v0 = vpop.permute.xlu1 %2423 }
 0x474   : > { %v2436_v2 = vsel %vm855_vm6, %v2422_v4, %v2424_v0 }
 0x475   : > { %6357 = vmatmul.mubr.msk.bf16.vlgmr.msra.gmra.mrb[4].mxu1 %vm1994_vm11, %v7377_v59 }
 0x476   : > { %6734 = vmatpush3.bf16.msra.mxu1 %v2118_v36  ;;  %2183 = vmatprep.mubr.bf16.mxu1 %v7527_v8 }
 0x477   : > { %6735 = vmatprep.subr.bf16.mxu1 %v2124_v49  ;;  %v2420_v6 = vpop.permute.xlu0 %2419  ;;  %v2430_v9 = vpop.permute.xlu1 %2429 }
 0x478   : > { %v2435_v54 = vsel %vm855_vm6, %v2420_v6, %v2422_v4  ;;  %v7389_v6 = vld [vmem:[%s9135_s4 + $0x70] sm:$0xff]  }
 0x47a   : > { %6736 = vmatpush3.bf16.msra.mxu1 %v2124_v49 }
 0x47b   : > { %2286 = vmatprep.subr.bf16.mxu1 %v2271_v61  ;;  %v2432_v10 = vpop.permute.xlu0 %2431  ;;  %v2428_v16 = vpop.permute.xlu1 %2427 }
 0x47c   : > { %v2439_v17 = vsel %vm855_vm6, %v2430_v9, %v2432_v10  ;;  %v2438_v21 = vsel %vm855_vm6, %v2428_v16, %v2430_v9 }
 0x47d   : > { %6358 = vmatmul.mubr.msk.bf16.gmra.mrb[8].mxu1 %vm1994_vm11, %v7378_v42 }
 0x47e   : > { %6737 = vmatprep.mubr.msk.bf16.mxu1 %vm1994_vm11, %v7377_v59 }
 0x47f   : > { %v2426_v19 = vpop.permute.xlu0 %2425  ;;  %v2434_v7 = vpop.permute.xlu1 %2433 }
 0x480   : > { %v2437_v23 = vsel %vm855_vm6, %v2424_v0, %v2426_v19  ;;  %v2440_v25 = vsel %vm855_vm6, %v2432_v10, %v2434_v7 }
 0x485   : > { %6738 = vmatmul.mubr.msk.bf16.vlgmr.msra.gmra.mrb[12].mxu1 %vm1994_vm11, %v7378_v42 }
 0x486   : > { %2287 = vmatpush1.bf16.msra.mxu1 %v2270_v63  ;;  %2318 = vmatprep.mubr.bf16.mxu1 %v7527_v8  ;;  %v7388_v63 = vld [vmem:[%s9135_s4 + $0x68] sm:$0xff]  }
 0x487   : > { %2288 = vmatprep.subr.bf16.mxu1 %v2273_v52 }
 0x48a   : > { %2289 = vmatpush1.bf16.msra.mxu1 %v2272_v44 }
 0x48b   : > { %6741 = vmatprep.subr.bf16.mxu1 %v2263_v39 }
 0x48d   : > { %6367 = vmatmul.mubr.msk.bf16.vlgmr.msra.gmra.mrb[4].mxu1 %vm1994_vm11, %v7379_v40 }
 0x48e   : > { %6742 = vmatpush3.bf16.msra.mxu1 %v2263_v39  ;;  %2328 = vmatprep.mubr.bf16.mxu1 %v7527_v8 }
 0x48f   : > { %6743 = vmatprep.subr.bf16.mxu1 %v2269_v62 }
 0x492   : > { %6744 = vmatpush3.bf16.msra.mxu1 %v2269_v62 }
 0x493   : > { %2453 = vmatprep.subr.bf16.mxu1 %v2436_v2 }
 0x495   : > { %6368 = vmatmul.mubr.msk.bf16.gmra.mrb[8].mxu1 %vm1994_vm11, %v7380_v50 }
 0x496   : > { %6745 = vmatprep.mubr.msk.bf16.mxu1 %vm1994_vm11, %v7379_v40 }
 0x49d   : > { %6746 = vmatmul.mubr.msk.bf16.vlgmr.msra.gmra.mrb[12].mxu1 %vm1994_vm11, %v7380_v50 }
 0x49e   : > { %2454 = vmatpush1.bf16.msra.mxu1 %v2435_v54  ;;  %2485 = vmatprep.mubr.bf16.mxu1 %v7527_v8  ;;  %v7390_v54 = vld [vmem:[%s9135_s4 + $0x78] sm:$0xff]  }
 0x49f   : > { %2455 = vmatprep.subr.bf16.mxu1 %v2439_v17 }
 0x4a2   : > { %2456 = vmatpush1.bf16.msra.mxu1 %v2438_v21 }
 0x4a3   : > { %6749 = vmatprep.subr.bf16.mxu1 %v2437_v23 }
 0x4a5   : > { %6377 = vmatmul.mubr.msk.bf16.vlgmr.msra.gmra.mrb[4].mxu1 %vm1994_vm11, %v7381_v22 }
 0x4a6   : > { %6750 = vmatpush3.bf16.msra.mxu1 %v2437_v23  ;;  %2495 = vmatprep.mubr.bf16.mxu1 %v7527_v8 }
 0x4a7   : > { %6751 = vmatprep.subr.bf16.mxu1 %v2440_v25 }
 0x4aa   : > { %6752 = vmatpush3.bf16.msra.mxu1 %v2440_v25 }
 0x4ab   : > { %2594 = vmatprep.subr.bf16.mxu1 %v8075_v11  ;;  %v2577_v11 = vpack.c.bf16 %v8022_v55, %v8020_v53 }
 0x4ad   : > { %6378 = vmatmul.mubr.msk.bf16.gmra.mrb[8].mxu1 %vm1994_vm11, %v7382_v26 }
 0x4ae   : > { %6753 = vmatprep.mubr.msk.bf16.mxu1 %vm1994_vm11, %v7381_v22 }
 0x4b5   : > { %6754 = vmatmul.mubr.msk.bf16.vlgmr.msra.gmra.mrb[12].mxu1 %vm1994_vm11, %v7382_v26  ;;  %v7391_v26 = vld [vmem:[%s9135_s4 + $0x80] sm:$0xff]  }
 0x4b6   : > { %2595 = vmatpush1.bf16.msra.mxu1 %v8083_v12  ;;  %2626 = vmatprep.mubr.bf16.mxu1 %v7527_v8  ;;  %v2730_v12 = vpop.permute.xlu0 %2729 }
 0x4b7   : > { %2596 = vmatprep.subr.bf16.mxu1 %v8087_v14  ;;  %v2732_v14 = vpop.permute.xlu1 %2731 }
 0x4b8   : > { %v2740_v29 = vsel %vm1158_vm7, %v2730_v12, %v2732_v14 }
 0x4ba   : > { %2597 = vmatpush1.bf16.msra.mxu1 %v8095_v15  ;;  %v2728_v15 = vpop.permute.xlu0 %2727 }
 0x4bb   : > { %6757 = vmatprep.subr.bf16.mxu1 %v2574_v27  ;;  %v2736_v30 = vpop.permute.xlu1 %2735  ;;  %v2739_v35 = vsel %vm1158_vm7, %v2728_v15, %v2730_v12 }
 0x4bd   : > { %6387 = vmatmul.mubr.msk.bf16.vlgmr.msra.gmra.mrb[4].mxu1 %vm1994_vm11, %v7383_v28 }
 0x4be   : > { %6758 = vmatpush3.bf16.msra.mxu1 %v2574_v27  ;;  %2636 = vmatprep.mubr.bf16.mxu1 %v7527_v8  ;;  %v2738_v34 = vpop.permute.xlu0 %2737  ;;  %v7392_v27 = vld [vmem:[%s9135_s4 + $0x88] sm:$0xff]  }
 0x4bf   : > { %6759 = vmatprep.subr.bf16.mxu1 %v2577_v11  ;;  %v2734_v36 = vpop.permute.xlu1 %2733  ;;  %v2742_v37 = vsel %vm1158_vm7, %v2736_v30, %v2738_v34 }
 0x4c0   : > { %v2741_v43 = vsel %vm1158_vm7, %v2734_v36, %v2736_v30 }
 0x4c2   : > { %6760 = vmatpush3.bf16.msra.mxu1 %v2577_v11  ;;  %v2887_v48 = vpop.permute.xlu0 %2886 }
 0x4c3   : > { %2755 = vmatprep.subr.bf16.mxu1 %v2740_v29  ;;  %v2889_v49 = vpop.permute.xlu1 %2888 }
 0x4c4   : > { %v2897_v56 = vsel %vm1311_vm8, %v2887_v48, %v2889_v49 }
 0x4c5   : > { %6388 = vmatmul.mubr.msk.bf16.gmra.mrb[8].mxu1 %vm1994_vm11, %v7384_v13 }
 0x4c6   : > { %6761 = vmatprep.mubr.msk.bf16.mxu1 %vm1994_vm11, %v7383_v28  ;;  %v2885_v57 = vpop.permute.xlu0 %2884 }
 0x4c7   : > { %v2893_v58 = vpop.permute.xlu1 %2892  ;;  %v2896_v60 = vsel %vm1311_vm8, %v2885_v57, %v2887_v48 }
 0x4ca   : > { %v2895_v59 = vpop.permute.xlu0 %2894 }
 0x4cb   : > { %v2891_v39 = vpop.permute.xlu1 %2890  ;;  %v2899_v42 = vsel %vm1311_vm8, %v2893_v58, %v2895_v59 }
 0x4cc   : > { %v2898_v61 = vsel %vm1311_vm8, %v2891_v39, %v2893_v58 }
 0x4cd   : > { %6762 = vmatmul.mubr.msk.bf16.vlgmr.msra.gmra.mrb[12].mxu1 %vm1994_vm11, %v7384_v13 }
 0x4ce   : > { %2756 = vmatpush1.bf16.msra.mxu1 %v2739_v35  ;;  %2787 = vmatprep.mubr.bf16.mxu1 %v7527_v8  ;;  %v3044_v46 = vpop.permute.xlu0 %3043 }
 0x4cf   : > { %2757 = vmatprep.subr.bf16.mxu1 %v2742_v37  ;;  %v3046_v62 = vpop.permute.xlu1 %3045 }
 0x4d0   : > { %v3054_v38 = vsel %vm1464_vm9, %v3044_v46, %v3046_v62 }
 0x4d2   : > { %2758 = vmatpush1.bf16.msra.mxu1 %v2741_v43  ;;  %v3042_v52 = vpop.permute.xlu0 %3041 }
 0x4d3   : > { %6765 = vmatprep.subr.bf16.mxu1 %v2732_v14  ;;  %v3050_v44 = vpop.permute.xlu1 %3049  ;;  %v3053_v4 = vsel %vm1464_vm9, %v3042_v52, %v3044_v46 }
 0x4d5   : > { %6397 = vmatmul.mubr.msk.bf16.vlgmr.msra.gmra.mrb[4].mxu1 %vm1994_vm11, %v7385_v45 }
 0x4d6   : > { %6766 = vmatpush3.bf16.msra.mxu1 %v2732_v14  ;;  %2797 = vmatprep.mubr.bf16.mxu1 %v7527_v8  ;;  %v3052_v40 = vpop.permute.xlu0 %3051 }
 0x4d7   : > { %6767 = vmatprep.subr.bf16.mxu1 %v2738_v34  ;;  %v3048_v0 = vpop.permute.xlu1 %3047  ;;  %v3056_v50 = vsel %vm1464_vm9, %v3050_v44, %v3052_v40 }
 0x4d8   : > { %v3055_v2 = vsel %vm1464_vm9, %v3048_v0, %v3050_v44 }
 0x4da   : > { %6768 = vmatpush3.bf16.msra.mxu1 %v2738_v34  ;;  %v3201_v9 = vpop.permute.xlu0 %3200 }
 0x4db   : > { %2912 = vmatprep.subr.bf16.mxu1 %v2897_v56  ;;  %v3203_v10 = vpop.permute.xlu1 %3202 }
 0x4dc   : > { %v3211_v16 = vsel %vm1617_vm10, %v3201_v9, %v3203_v10 }
 0x4dd   : > { %6398 = vmatmul.mubr.msk.bf16.gmra.mrb[8].mxu1 %vm1994_vm11, %v7386_v51 }
 0x4de   : > { %6769 = vmatprep.mubr.msk.bf16.mxu1 %vm1994_vm11, %v7385_v45  ;;  %v3199_v17 = vpop.permute.xlu0 %3198 }
 0x4df   : > { %v3207_v19 = vpop.permute.xlu1 %3206  ;;  %v3210_v22 = vsel %vm1617_vm10, %v3199_v17, %v3201_v9 }
 0x4e2   : > { %v3209_v21 = vpop.permute.xlu0 %3208 }
 0x4e3   : > { %v3205_v23 = vpop.permute.xlu1 %3204  ;;  %v3213_v7 = vsel %vm1617_vm10, %v3207_v19, %v3209_v21 }
 0x4e4   : > { %v3212_v25 = vsel %vm1617_vm10, %v3205_v23, %v3207_v19 }
 0x4e5   : > { %6770 = vmatmul.mubr.msk.bf16.vlgmr.msra.gmra.mrb[12].mxu1 %vm1994_vm11, %v7386_v51 }
 0x4e6   : > { %2913 = vmatpush1.bf16.msra.mxu1 %v2896_v60  ;;  %2944 = vmatprep.mubr.bf16.mxu1 %v7527_v8  ;;  %v8299_v28 = vpop.permute.xlu0 %3346 }
 0x4e7   : > { %2914 = vmatprep.subr.bf16.mxu1 %v2899_v42  ;;  %v8304_v13 = vpop.permute.xlu1 %3351 }
 0x4ea   : > { %2915 = vmatpush1.bf16.msra.mxu1 %v2898_v61  ;;  %v8323_v57 = vpop.permute.xlu0 %3356 }
 0x4eb   : > { %6773 = vmatprep.subr.bf16.mxu1 %v2889_v49  ;;  %v8339_v0 = vpop.permute.xlu1 %3361 }
 0x4ed   : > { %6407 = vmatmul.mubr.msk.bf16.vlgmr.msra.gmra.mrb[4].mxu1 %vm1994_vm11, %v7387_v41 }
 0x4ee   : > { %6774 = vmatpush3.bf16.msra.mxu1 %v2889_v49  ;;  %2954 = vmatprep.mubr.bf16.mxu1 %v7527_v8 }
 0x4ef   : > { %6775 = vmatprep.subr.bf16.mxu1 %v2895_v59 }
 0x4f2   : > { %6776 = vmatpush3.bf16.msra.mxu1 %v2895_v59 }
 0x4f3   : > { %3069 = vmatprep.subr.bf16.mxu1 %v3054_v38 }
 0x4f5   : > { %6408 = vmatmul.mubr.msk.bf16.gmra.mrb[8].mxu1 %vm1994_vm11, %v7388_v63 }
 0x4f6   : > { %6777 = vmatprep.mubr.msk.bf16.mxu1 %vm1994_vm11, %v7387_v41 }
 0x4fd   : > { %6778 = vmatmul.mubr.msk.bf16.vlgmr.msra.gmra.mrb[12].mxu1 %vm1994_vm11, %v7388_v63 }
 0x4fe   : > { %3070 = vmatpush1.bf16.msra.mxu1 %v3053_v4  ;;  %3101 = vmatprep.mubr.bf16.mxu1 %v7527_v8 }
 0x4ff   : > { %3071 = vmatprep.subr.bf16.mxu1 %v3056_v50 }
 0x502   : > { %3072 = vmatpush1.bf16.msra.mxu1 %v3055_v2 }
 0x503   : > { %6781 = vmatprep.subr.bf16.mxu1 %v3046_v62 }
 0x505   : > { %6417 = vmatmul.mubr.msk.bf16.vlgmr.msra.gmra.mrb[4].mxu1 %vm1994_vm11, %v7389_v6 }
 0x506   : > { %6782 = vmatpush3.bf16.msra.mxu1 %v3046_v62  ;;  %3111 = vmatprep.mubr.bf16.mxu1 %v7527_v8 }
 0x507   : > { %6783 = vmatprep.subr.bf16.mxu1 %v3052_v40 }
 0x50a   : > { %6784 = vmatpush3.bf16.msra.mxu1 %v3052_v40 }
 0x50b   : > { %3226 = vmatprep.subr.bf16.mxu1 %v3211_v16 }
 0x50d   : > { %6418 = vmatmul.mubr.msk.bf16.gmra.mrb[8].mxu1 %vm1994_vm11, %v7390_v54 }
 0x50e   : > { %6785 = vmatprep.mubr.msk.bf16.mxu1 %vm1994_vm11, %v7389_v6 }
 0x515   : > { %6786 = vmatmul.mubr.msk.bf16.vlgmr.msra.gmra.mrb[12].mxu1 %vm1994_vm11, %v7390_v54 }
 0x516   : > { %3227 = vmatpush1.bf16.msra.mxu1 %v3210_v22  ;;  %3258 = vmatprep.mubr.bf16.mxu1 %v7527_v8 }
 0x517   : > { %3228 = vmatprep.subr.bf16.mxu1 %v3213_v7 }
 0x51a   : > { %3229 = vmatpush1.bf16.msra.mxu1 %v3212_v25 }
 0x51b   : > { %6789 = vmatprep.subr.bf16.mxu1 %v3203_v10 }
 0x51d   : > { %6427 = vmatmul.mubr.msk.bf16.vlgmr.msra.gmra.mrb[4].mxu1 %vm1994_vm11, %v7391_v26 }
 0x51e   : > { %6790 = vmatpush3.bf16.msra.mxu1 %v3203_v10  ;;  %3268 = vmatprep.mubr.bf16.mxu1 %v7527_v8 }
 0x51f   : > { %6791 = vmatprep.subr.bf16.mxu1 %v3209_v21 }
 0x522   : > { %6792 = vmatpush3.bf16.msra.mxu1 %v3209_v21 }
 0x525   : > { %6428 = vmatmul.mubr.msk.bf16.gmra.mrb[8].mxu1 %vm1994_vm11, %v7392_v27 }
 0x526   : > { %6793 = vmatprep.mubr.msk.bf16.mxu1 %vm1994_vm11, %v7391_v26 }
 0x52d   : > { %6794 = vmatmul.mubr.msk.bf16.vlgmr.msra.gmra.mrb[12].mxu1 %vm1994_vm11, %v7392_v27 }
 0x52e   : > { %5218 = vmatprep.mubr.bf16.mxu1 %v7527_v8 }
 0x5f0   : > { %v3260_v11 = vpop.f32.mrb[4].mxu1 }
 0x5f1   : > { %v8302_v12 = vadd.f32 %v8299_v28, %v3260_v11  ;;  %v3262_v14 = vpop.f32.mrb[5].mxu1 }
 0x5f2   : > { %v8307_v29 = vadd.f32 %v8299_v28, %v3262_v14  ;;  %v3264_v15 = vpop.f32.mrb[6].mxu1 }
 0x5f3   : > { %v3388_v30 = vmul.f32 0.044715, %v8302_v12  ;;  %v8311_v34 = vadd.f32 %v8304_v13, %v3264_v15  ;;  %v3266_v35 = vpop.f32.mrb[7].mxu1 }
 0x5f4   : > { %v3389_v36 = vmul.f32 0.044715, %v8307_v29  ;;  %v8315_v37 = vadd.f32 %v8304_v13, %v3266_v35 }
 0x5f5   : > { %v3400_v43 = vmul.f32 %v3388_v30, %v8302_v12  ;;  %v3391_v45 = vmul.f32 0.044715, %v8311_v34 }
 0x5f6   : > { %v3401_v48 = vmul.f32 %v3389_v36, %v8307_v29  ;;  %v3392_v49 = vmul.f32 0.044715, %v8315_v37 }
 0x5f7   : > { %v3412_v51 = vmul.f32 %v3400_v43, %v8302_v12  ;;  %v3403_v56 = vmul.f32 %v3391_v45, %v8311_v34 }
 0x5f8   : > { %v3413_v58 = vmul.f32 %v3401_v48, %v8307_v29  ;;  %v3404_v59 = vmul.f32 %v3392_v49, %v8315_v37  ;;  %v3270_v60 = vpop.f32.mrb[8].mxu1 }
 0x5f9   : > { %v3424_v39 = vadd.f32 %v3412_v51, %v8302_v12  ;;  %v3415_v42 = vmul.f32 %v3403_v56, %v8311_v34  ;;  %v8330_v61 = vadd.f32 %v8323_v57, %v3270_v60  ;;  %v3272_v41 = vpop.f32.mrb[9].mxu1 }
 0x5fa   : > { %v3425_v46 = vadd.f32 %v3413_v58, %v8307_v29  ;;  %v3416_v62 = vmul.f32 %v3404_v59, %v8315_v37  ;;  %v8335_v63 = vadd.f32 %v8323_v57, %v3272_v41  ;;  %v3274_v38 = vpop.f32.mrb[10].mxu1 }
 0x5fb   : > { %v3436_v52 = vmul.f32 0.7978846, %v3424_v39  ;;  %v3427_v44 = vadd.f32 %v3415_v42, %v8311_v34  ;;  %v3394_v40 = vmul.f32 0.044715, %v8330_v61  ;;  %v3276_v4 = vpop.f32.mrb[11].mxu1  ;;  %v8345_v54 = vadd.f32 %v8339_v0, %v3274_v38 }
 0x5fc   : > { %v3437_v50 = vmul.f32 0.7978846, %v3425_v46  ;;  %v3428_v2 = vadd.f32 %v3416_v62, %v8315_v37  ;;  %v3395_v6 = vmul.f32 0.044715, %v8335_v63  ;;  %v8349_v19 = vadd.f32 %v8339_v0, %v3276_v4 }
 0x5fd   : > { %7435 = vtanh.f32 %v3436_v52  ;;  %v3439_v9 = vmul.f32 0.7978846, %v3427_v44  ;;  %v3406_v10 = vmul.f32 %v3394_v40, %v8330_v61  ;;  %v3397_v22 = vmul.f32 0.044715, %v8345_v54 }
 0x5fe   : > { %7437 = vtanh.f32 %v3437_v50  ;;  %v3440_v16 = vmul.f32 0.7978846, %v3428_v2  ;;  %v3407_v17 = vmul.f32 %v3395_v6, %v8335_v63  ;;  %v3398_v7 = vmul.f32 0.044715, %v8349_v19 }
 0x5ff   : > { %7439 = vtanh.f32 %v3439_v9  ;;  %v3418_v21 = vmul.f32 %v3406_v10, %v8330_v61  ;;  %v3409_v27 = vmul.f32 %v3397_v22, %v8345_v54  ;;  %v3376_v42 = vmul.f32 0.5, %v8302_v12 }
 0x600   : > { %7441 = vtanh.f32 %v3440_v16  ;;  %v3419_v23 = vmul.f32 %v3407_v17, %v8335_v63  ;;  %v8355_v25 = vpop.f32.mrb[12].mxu1  ;;  %v3410_v15 = vmul.f32 %v3398_v7, %v8349_v19  ;;  %v3379_v62 = vmul.f32 0.5, %v8311_v34  ;;  %v7495_v34 = vld [vmem:[%s9132_s1] sm:$0xff] }
 0x601   : > { %v3430_v26 = vadd.f32 %v3418_v21, %v8330_v61  ;;  %v8359_v11 = vpop.f32.mrb[13].mxu1  ;;  %v3421_v36 = vmul.f32 %v3409_v27, %v8345_v54  ;;  %v3377_v52 = vmul.f32 0.5, %v8307_v29  ;;  %v3380_v4 = vmul.f32 0.5, %v8315_v37  ;;  %v7496_v37 = vld [vmem:[%s9132_s1 + $0x18] sm:$0xff]  ;;  %v7497_v27 = vld [vmem:[%s9132_s1 + $0x20] sm:$0xff] }
 0x602   : > { %v3431_v14 = vadd.f32 %v3419_v23, %v8335_v63  ;;  %v8363_v30 = vpop.f32.mrb[14].mxu1  ;;  %v3422_v48 = vmul.f32 %v3410_v15, %v8349_v19  ;;  %v3382_v17 = vmul.f32 0.5, %v8330_v61  ;;  %v3383_v61 = vmul.f32 0.5, %v8335_v63 }
 0x603   : > { %v3442_v35 = vmul.f32 0.7978846, %v3430_v26  ;;  %v8366_v43 = vpop.f32.mrb[15].mxu1  ;;  %v3433_v49 = vadd.f32 %v3421_v36, %v8345_v54 }
 0x604   : > { %v3443_v45 = vmul.f32 0.7978846, %v3431_v14  ;;  %v3434_v51 = vadd.f32 %v3422_v48, %v8349_v19 }
 0x605   : > { %7443 = vtanh.f32 %v3442_v35  ;;  %v3445_v58 = vmul.f32 0.7978846, %v3433_v49  ;;  %v3386_v49 = vmul.f32 0.5, %v8349_v19  ;;  %v7499_v19 = vld [vmem:[%s9132_s1 + $0x30] sm:$0xff] }
 0x606   : > { %7445 = vtanh.f32 %v3443_v45  ;;  %v3446_v60 = vmul.f32 0.7978846, %v3434_v51 }
 0x607   : > { %v7436_v56 = vpop.eup %7435  ;;  %7447 = vtanh.f32 %v3445_v58 }
 0x608   : > { %v7438_v59 = vpop.eup %7437  ;;  %v3460_v41 = vadd.f32 1.0, %v7436_v56  ;;  %7449 = vtanh.f32 %v3446_v60 }
 0x609   : > { %v7440_v39 = vpop.eup %7439  ;;  %v3461_v40 = vadd.f32 1.0, %v7438_v59 }
 0x60a   : > { %v7442_v46 = vpop.eup %7441  ;;  %v3463_v38 = vadd.f32 1.0, %v7440_v39  ;;  %v3472_v44 = vmul.f32 %v3460_v41, %v3376_v42 }
 0x60b   : > { %v3464_v2 = vadd.f32 1.0, %v7442_v46  ;;  %v3473_v9 = vmul.f32 %v3461_v40, %v3377_v52  ;;  %v7500_v46 = vld [vmem:[%s9132_s1 + $0x48] sm:$0xff]  ;;  %v3369_v40 = vadd.f32 %v8304_v13, %v8366_v43 }
 0x60c   : > { %v3475_v50 = vmul.f32 %v3463_v38, %v3379_v62  ;;  %v3484_v6 = vadd.f32 %v3472_v44, %v7942_v1  ;;  %v3366_v44 = vadd.f32 %v8299_v28, %v8359_v11 }
 0x60d   : > { %v3476_v10 = vmul.f32 %v3464_v2, %v3380_v4  ;;  %v3485_v1 = vadd.f32 %v3473_v9, %v7956_v20  ;;  %v3385_v20 = vmul.f32 0.5, %v8345_v54  ;;  %v3372_v9 = vadd.f32 %v8355_v25, %v8323_v57 }
 0x60e   : > { %v3487_v12 = vadd.f32 %v3475_v50, %v7944_v5  ;;  %v8381_v29 = vmul.f32 %v7495_v34, %v3484_v6  ;;  %v3390_v4 = vmul.f32 0.044715, %v3366_v44  ;;  %v3393_v50 = vmul.f32 0.044715, %v3369_v40 }
 0x60f   : > { %v7444_v16 = vpop.eup %7443  ;;  %v3488_v5 = vadd.f32 %v3476_v10, %v7951_v47  ;;  %v7498_v47 = vld [vmem:[%s9132_s1 + $0x8] sm:$0xff] }
 0x610   : > { %v7446_v21 = vpop.eup %7445  ;;  %v8386_v22 = vmul.f32 %v7496_v37, %v3487_v12  ;;  %v3466_v23 = vadd.f32 1.0, %v7444_v16  ;;  %v8403_v63 = vmul.f32 %v7498_v47, %v3485_v1  ;;  %v3402_v2 = vmul.f32 %v3390_v4, %v3366_v44 }
 0x611   : > { %v3467_v7 = vadd.f32 1.0, %v7446_v21  ;;  %v8396_v14 = vmul.f32 %v7497_v27, %v3488_v5  ;;  %v7448_v35 = vpop.eup %7447  ;;  %v3405_v6 = vmul.f32 %v3393_v50, %v3369_v40  ;;  %v3375_v12 = vadd.f32 %v8363_v30, %v8339_v0 }
 0x612   : > { %v7296_v26 = vpack.i.bf16 %v8386_v22, %v8381_v29  ;;  %v3478_v15 = vmul.f32 %v3466_v23, %v3382_v17  ;;  %v7450_v45 = vpop.eup %7449  ;;  %v3469_v48 = vadd.f32 1.0, %v7448_v35  ;;  %v3414_v10 = vmul.f32 %v3402_v2, %v3366_v44 }
 0x613   : > { %v3479_v36 = vmul.f32 %v3467_v7, %v3383_v61  ;;  %v3470_v51 = vadd.f32 1.0, %v7450_v45  ;;  %v7306_v56 = vpack.i.bf16 %v8396_v14, %v8403_v63  ;;  %v3417_v16 = vmul.f32 %v3405_v6, %v3369_v40 }
 0x614   : > { %7297 = vrot.lane.b32.xlu0 %v7296_v26, %s7525_s19  ;;  %v3481_v58 = vmul.f32 %v3469_v48, %v3385_v20  ;;  %v3490_v59 = vadd.f32 %v3478_v15, %v7975_v31  ;;  %v3396_v17 = vmul.f32 0.044715, %v3372_v9  ;;  %v3399_v34 = vmul.f32 0.044715, %v3375_v12 }
 0x615   : > { %v3482_v60 = vmul.f32 %v3470_v51, %v3386_v49  ;;  %v3491_v54 = vadd.f32 %v3479_v36, %v7979_v32  ;;  %v7501_v32 = vld [vmem:[%s9132_s1 + $0x38] sm:$0xff]  ;;  %v3426_v21 = vadd.f32 %v3414_v10, %v3366_v44  ;;  %v3429_v37 = vadd.f32 %v3417_v16, %v3369_v40 }
 0x616   : > { %v3493_v39 = vadd.f32 %v3481_v58, %v7977_v18  ;;  %v8416_v41 = vmul.f32 %v7499_v19, %v3490_v59  ;;  %v7502_v18 = vld [vmem:[%s9132_s1 + $0x50] sm:$0xff]  ;;  %v3408_v28 = vmul.f32 %v3396_v17, %v3372_v9  ;;  %v3411_v11 = vmul.f32 %v3399_v34, %v3375_v12  ;;  %v7504_v19 = vld [vmem:[%s9132_s1 + $0x28] sm:$0xff]  ;;  %v8472_v34 = vld [vmem:[%s9132_s1 + $0x40] sm:$0xff] }
 0x617   : > { %v3494_v42 = vadd.f32 %v3482_v60, %v7981_v33  ;;  %v8426_v62 = vmul.f32 %v7501_v32, %v3491_v54  ;;  %v3438_v1 = vmul.f32 0.7978846, %v3426_v21  ;;  %v3441_v13 = vmul.f32 0.7978846, %v3429_v37 }
 0x618   : > { %7307 = vrot.lane.b32.xlu0 %v7306_v56, %s7525_s19  ;;  %v8421_v31 = vmul.f32 %v7500_v46, %v3493_v39  ;;  %v3420_v43 = vmul.f32 %v3408_v28, %v3372_v9  ;;  %v3423_v5 = vmul.f32 %v3411_v11, %v3375_v12  ;;  %v3378_v27 = vmul.f32 0.5, %v3366_v44  ;;  %v7503_v39 = vld [vmem:[%s9132_s1 + $0x10] sm:$0xff] }
 0x619   : > { %v8431_v33 = vmul.f32 %v7502_v18, %v3494_v42  ;;  %7451 = vtanh.f32 %v3438_v1  ;;  %v3381_v15 = vmul.f32 0.5, %v3369_v40  ;;  %v3384_v56 = vmul.f32 0.5, %v3372_v9 }
 0x61a   : > { %v7301_v38 = vpack.i.bf16 %v8421_v31, %v8416_v41  ;;  %7453 = vtanh.f32 %v3441_v13  ;;  %v3432_v23 = vadd.f32 %v3420_v43, %v3372_v9  ;;  %v3435_v61 = vadd.f32 %v3423_v5, %v3375_v12 }
 0x61b   : > { %v7311_v52 = vpack.i.bf16 %v8431_v33, %v8426_v62  ;;  %v3387_v58 = vmul.f32 0.5, %v3375_v12 }
 0x61c   : > { %7302 = vrot.lane.b32.xlu1 %v7301_v38, %s7525_s19  ;;  %v3444_v57 = vmul.f32 0.7978846, %v3432_v23  ;;  %v3447_v25 = vmul.f32 0.7978846, %v3435_v61 }
 0x61d   : > { %7312 = vrot.lane.b32.xlu0 %v7311_v52, %s7525_s19 }
 0x61e   : > { %7455 = vtanh.f32 %v3444_v57 }
 0x61f   : > { %7457 = vtanh.f32 %v3447_v25 }
 0x623   : > { %v7452_v7 = vpop.eup %7451 }
 0x624   : > { %v7454_v0 = vpop.eup %7453  ;;  %v3462_v30 = vadd.f32 1.0, %v7452_v7 }
 0x625   : > { %v3465_v26 = vadd.f32 1.0, %v7454_v0 }
 0x626   : > { %v3474_v35 = vmul.f32 %v3462_v30, %v3378_v27 }
 0x627   : > { %v3477_v36 = vmul.f32 %v3465_v26, %v3381_v15 }
 0x628   : > { %v7456_v45 = vpop.eup %7455  ;;  %v3486_v47 = vadd.f32 %v3474_v35, %v8003_v24 }
 0x629   : > { %v7458_v20 = vpop.eup %7457  ;;  %v3489_v48 = vadd.f32 %v3477_v36, %v8005_v3  ;;  %v3468_v49 = vadd.f32 1.0, %v7456_v45 }
 0x62a   : > { %v3471_v51 = vadd.f32 1.0, %v7458_v20  ;;  %v8452_v42 = vmul.f32 %v7503_v39, %v3486_v47  ;;  %v4945_v39 = vld [vmem:[%s9138_s7 + $0x18] sm:$0xff] }
 0x62b   : > { %v8457_v24 = vmul.f32 %v7504_v19, %v3489_v48  ;;  %v3480_v32 = vmul.f32 %v3468_v49, %v3384_v56  ;;  %v8543_v56 = vpack.c.bf16 %v8431_v33, %v8426_v62  ;;  %v4944_v19 = vld [vmem:[%s9138_s7 + $0x10] sm:$0xff] }
 0x62c   : > { %v3483_v18 = vmul.f32 %v3471_v51, %v3387_v58  ;;  %v8537_v51 = vpack.c.bf16 %v8396_v14, %v8403_v63  ;;  %v8549_v58 = vpack.c.bf16 %v8386_v22, %v8381_v29 }
 0x62d   : > { %v3492_v2 = vadd.f32 %v3480_v32, %v8020_v53  ;;  %v8480_v53 = vld [vmem:[%s9132_s1 + $0x58] sm:$0xff] }
 0x62e   : > { %v3495_v6 = vadd.f32 %v3483_v18, %v8022_v55 }
 0x62f   : > { %v8475_v21 = vmul.f32 %v8472_v34, %v3492_v2  ;;  %v7393_v2 = vld [vmem:[%s9137_s6 + $0x10] sm:$0xff]  }
 0x630   : > { %v8483_v55 = vmul.f32 %v8480_v53, %v3495_v6 }
 0x686   : > { %v7298_v59 = vpop.permute.xlu0 %7297 }
 0x687   : > { %v7300_v60 = vunpack.i.h.bf16 %v7298_v59  ;;  %v7299_v54 = vunpack.i.l.bf16 %v7298_v59  ;;  %v8555_v59 = vpack.c.bf16 %v8421_v31, %v8416_v41 }
 0x689   : > { %v3510_v3 = vsel %vm378_vm0, %v7299_v54, %v8452_v42  ;;  %v3513_v46 = vsel %vm378_vm0, %v7300_v60, %v8457_v24 }
 0x68a   : > { %v7308_v38 = vpop.permute.xlu0 %7307  ;;  %v7316_v52 = vpack.i.bf16 %v3513_v46, %v3510_v3  ;;  %v8485_v37 = vpack.c.bf16 %v3513_v46, %v3510_v3 }
 0x68b   : > { %v7310_v44 = vunpack.i.h.bf16 %v7308_v38  ;;  %v7309_v40 = vunpack.i.l.bf16 %v7308_v38 }
 0x68c   : > { %7317 = vrot.lane.b32.xlu1 %v7316_v52, %s7525_s19 }
 0x68d   : > { %v3537_v4 = vsel %vm378_vm0, %v7310_v44, %v7300_v60  ;;  %v3536_v50 = vsel %vm378_vm0, %v7309_v40, %v7299_v54  ;;  %v4943_v60 = vld [vmem:[%s9138_s7 + $0x8] sm:$0xff]  ;;  %v4942_v54 = vld [vmem:[%s9138_s7] sm:$0xff] }
 0x68e   : > { %v3549_v9 = vpack.c.bf16 %v3537_v4, %v3536_v50  ;;  %v7303_v12 = vpop.permute.xlu1 %7302 }
 0x68f   : > { %v7305_v10 = vunpack.i.h.bf16 %v7303_v12  ;;  %v7304_v16 = vunpack.i.l.bf16 %v7303_v12  ;;  %v7313_v17 = vpop.permute.xlu0 %7312  ;;  %v7394_v12 = vld [vmem:[%s9137_s6 + $0x18] sm:$0xff]  }
 0x690   : > { %3577 = vrot.lane.b32.xlu0 %v3549_v9, %s7526_s20  ;;  %v7315_v28 = vunpack.i.h.bf16 %v7313_v17  ;;  %v7314_v11 = vunpack.i.l.bf16 %v7313_v17 }
 0x691   : > { %v3516_v1 = vsel %vm378_vm0, %v7304_v16, %v8475_v21  ;;  %v3519_v13 = vsel %vm378_vm0, %v7305_v10, %v8483_v55 }
 0x692   : > { %v3539_v43 = vsel %vm378_vm0, %v7315_v28, %v7305_v10  ;;  %v3538_v5 = vsel %vm378_vm0, %v7314_v11, %v7304_v16  ;;  %v7321_v23 = vpack.i.bf16 %v3519_v13, %v3516_v1  ;;  %v8493_v61 = vpack.c.bf16 %v3519_v13, %v3516_v1 }
 0x693   : > { %v3552_v57 = vpack.c.bf16 %v3539_v43, %v3538_v5  ;;  %v7395_v43 = vld [vmem:[%s9137_s6] sm:$0xff]  }
 0x694   : > { %3575 = vrot.lane.b32.xlu0 %v8485_v37, %s7526_s20  ;;  %7322 = vrot.lane.b32.xlu1 %v7321_v23, %s7525_s19 }
 0x6fe   : > { %v7318_v25 = vpop.permute.xlu1 %7317 }
 0x6ff   : > { %v7320_v7 = vunpack.i.h.bf16 %v7318_v25  ;;  %v7319_v0 = vunpack.i.l.bf16 %v7318_v25 }
 0x701   : > { %v3541_v30 = vsel %vm378_vm0, %v7320_v7, %v7310_v44  ;;  %v3540_v26 = vsel %vm378_vm0, %v7319_v0, %v7309_v40  ;;  %v4007_v49 = vpack.c.bf16 %v7320_v7, %v7319_v0 }
 0x702   : > { %v3550_v27 = vpack.c.bf16 %v3541_v30, %v3540_v26  ;;  %v3578_v3 = vpop.permute.xlu0 %3577 }
 0x704   : > { %3579 = vrot.lane.b32.xlu1 %v3550_v27, %s7526_s20 }
 0x706   : > { %v7323_v15 = vpop.permute.xlu1 %7322  ;;  %v3576_v46 = vpop.permute.xlu0 %3575 }
 0x707   : > { %v7325_v35 = vunpack.i.h.bf16 %v7323_v15  ;;  %v7324_v36 = vunpack.i.l.bf16 %v7323_v15  ;;  %v3587_v38 = vsel %vm419_vm3, %v3576_v46, %v3578_v3 }
 0x708   : > { %3583 = vrot.lane.b32.xlu1 %v3552_v57, %s7526_s20 }
 0x709   : > { %v3543_v45 = vsel %vm378_vm0, %v7325_v35, %v7315_v28  ;;  %v3542_v20 = vsel %vm378_vm0, %v7324_v36, %v7314_v11  ;;  %v4008_v48 = vpack.c.bf16 %v7325_v35, %v7324_v36  ;;  %v7397_v35 = vld [vmem:[%s9137_s6 + $0x20] sm:$0xff]  }
 0x70a   : > { %v3553_v47 = vpack.c.bf16 %v3543_v45, %v3542_v20  ;;  %v7398_v20 = vld [vmem:[%s9137_s6 + $0x28] sm:$0xff]  }
 0x70c   : > { %3581 = vrot.lane.b32.xlu1 %v8493_v61, %s7526_s20  ;;  %3585 = vrot.lane.b32.xlu0 %v3553_v47, %s7526_s20 }
 0x710   : > { %3719 = vrot.lane.b32.xlu1 %v3550_v27, %s7528_s23  ;;  %3717 = vrot.lane.b32.xlu0 %v3549_v9, %s7528_s23 }
 0x714   : > { %3723 = vrot.lane.b32.xlu1 %v3552_v57, %s7528_s23  ;;  %3715 = vrot.lane.b32.xlu0 %v8485_v37, %s7528_s23 }
 0x718   : > { %3721 = vrot.lane.b32.xlu1 %v8493_v61, %s7528_s23  ;;  %3725 = vrot.lane.b32.xlu0 %v3553_v47, %s7528_s23 }
 0x71c   : > { %3864 = vrot.lane.b32.xlu1 %v3550_v27, %s7529_s24  ;;  %3862 = vrot.lane.b32.xlu0 %v3549_v9, %s7529_s24 }
 0x720   : > { %3868 = vrot.lane.b32.xlu1 %v3552_v57, %s7529_s24  ;;  %3860 = vrot.lane.b32.xlu0 %v8485_v37, %s7529_s24 }
 0x724   : > { %3866 = vrot.lane.b32.xlu1 %v8493_v61, %s7529_s24  ;;  %3870 = vrot.lane.b32.xlu0 %v3553_v47, %s7529_s24 }
 0x728   : > { %4025 = vrot.lane.b32.xlu1 %v3550_v27, %s7530_s25  ;;  %4023 = vrot.lane.b32.xlu0 %v3549_v9, %s7530_s25 }
 0x72c   : > { %4031 = vrot.lane.b32.xlu1 %v3552_v57, %s7530_s25  ;;  %4021 = vrot.lane.b32.xlu0 %v8485_v37, %s7530_s25 }
 0x730   : > { %4029 = vrot.lane.b32.xlu1 %v8493_v61, %s7530_s25  ;;  %4033 = vrot.lane.b32.xlu0 %v3553_v47, %s7530_s25 }
 0x734   : > { %4035 = vrot.lane.b32.xlu1 %v4008_v48, %s7530_s25  ;;  %4027 = vrot.lane.b32.xlu0 %v4007_v49, %s7530_s25 }
 0x738   : > { %4333 = vrot.lane.b32.xlu1 %v8485_v37, %s7531_s26  ;;  %4331 = vrot.lane.b32.xlu0 %v8537_v51, %s7531_s26 }
 0x73c   : > { %4337 = vrot.lane.b32.xlu1 %v8543_v56, %s7531_s26  ;;  %4329 = vrot.lane.b32.xlu0 %v8549_v58, %s7531_s26 }
 0x740   : > { %4335 = vrot.lane.b32.xlu1 %v8555_v59, %s7531_s26  ;;  %4339 = vrot.lane.b32.xlu0 %v8493_v61, %s7531_s26 }
 0x744   : > { %4490 = vrot.lane.b32.xlu1 %v8485_v37, %s7532_s27  ;;  %4488 = vrot.lane.b32.xlu0 %v8537_v51, %s7532_s27 }
 0x748   : > { %4494 = vrot.lane.b32.xlu1 %v8543_v56, %s7532_s27  ;;  %4486 = vrot.lane.b32.xlu0 %v8549_v58, %s7532_s27 }
 0x74c   : > { %4492 = vrot.lane.b32.xlu1 %v8555_v59, %s7532_s27  ;;  %4496 = vrot.lane.b32.xlu0 %v8493_v61, %s7532_s27 }
 0x750   : > { %4647 = vrot.lane.b32.xlu1 %v8485_v37, %s7533_s28  ;;  %4645 = vrot.lane.b32.xlu0 %v8537_v51, %s7533_s28 }
 0x754   : > { %4651 = vrot.lane.b32.xlu1 %v8543_v56, %s7533_s28  ;;  %4643 = vrot.lane.b32.xlu0 %v8549_v58, %s7533_s28 }
 0x758   : > { %4649 = vrot.lane.b32.xlu1 %v8555_v59, %s7533_s28  ;;  %4653 = vrot.lane.b32.xlu0 %v8493_v61, %s7533_s28 }
 0x75c   : > { %4804 = vrot.lane.b32.xlu1 %v8485_v37, %s7534_s29  ;;  %4802 = vrot.lane.b32.xlu0 %v8537_v51, %s7534_s29 }
 0x760   : > { %4808 = vrot.lane.b32.xlu1 %v8543_v56, %s7534_s29  ;;  %4800 = vrot.lane.b32.xlu0 %v8549_v58, %s7534_s29 }
 0x764   : > { %4806 = vrot.lane.b32.xlu1 %v8555_v59, %s7534_s29  ;;  %4810 = vrot.lane.b32.xlu0 %v8493_v61, %s7534_s29  ;;  %v7396_v61 = vld [vmem:[%s9137_s6 + $0x8] sm:$0xff]  }
 0x768   : > { %4953 = vperm.xlu1 %7264, %v4943_v60   ;;  %4948 = vperm.xlu0 %7265, %v4942_v54  }
 0x76c   : > { %4963 = vperm.xlu1 %7264, %v4945_v39   ;;  %4958 = vperm.xlu0 %7265, %v4944_v19  }
 0x776   : > { %v3580_v32 = vpop.permute.xlu1 %3579 }
 0x777   : > { %v3588_v18 = vsel %vm419_vm3, %v3578_v3, %v3580_v32 }
 0x778   : > { %3603 = vmatprep.subr.bf16.mxu0 %v3588_v18 }
 0x779   : > { %3604 = vmatpush1.bf16.msra.mxu0 %v3587_v38 }
 0x77a   : > { %v3584_v52 = vpop.permute.xlu1 %3583 }
 0x77e   : > { %v3582_v44 = vpop.permute.xlu1 %3581  ;;  %v3586_v4 = vpop.permute.xlu0 %3585 }
 0x77f   : > { %v3589_v40 = vsel %vm419_vm3, %v3582_v44, %v3584_v52  ;;  %v3590_v50 = vsel %vm419_vm3, %v3584_v52, %v3586_v4  ;;  %v7400_v44 = vld [vmem:[%s9137_s6 + $0x38] sm:$0xff]  }
 0x780   : > { %3605 = vmatprep.subr.bf16.mxu0 %v3590_v50  ;;  %v7402_v50 = vld [vmem:[%s9137_s6 + $0x48] sm:$0xff]  }
 0x781   : > { %3606 = vmatpush1.bf16.msra.mxu0 %v3589_v40  ;;  %v4176_v40 = vpack.c.bf16 %v8457_v24, %v8452_v42 }
 0x782   : > { %6797 = vmatprep.subr.bf16.mxu0 %v3580_v32  ;;  %v3720_v6 = vpop.permute.xlu1 %3719  ;;  %v3718_v9 = vpop.permute.xlu0 %3717 }
 0x783   : > { %v3728_v10 = vsel %vm557_vm4, %v3718_v9, %v3720_v6 }
 0x784   : > { %6437 = vmatmul.mubr.msk.bf16.vlgmr.msra.gmra.mrb[8].mxu0 %vm1994_vm11, %v7393_v2 }
 0x785   : > { %6798 = vmatpush3.bf16.msra.mxu0 %v3580_v32  ;;  %3645 = vmatprep.mubr.bf16.mxu0 %v7527_v8  ;;  %v7399_v32 = vld [vmem:[%s9137_s6 + $0x30] sm:$0xff]  }
 0x786   : > { %6799 = vmatprep.subr.bf16.mxu0 %v3586_v4  ;;  %v3716_v16 = vpop.permute.xlu0 %3715  ;;  %v3724_v17 = vpop.permute.xlu1 %3723 }
 0x787   : > { %v3727_v28 = vsel %vm557_vm4, %v3716_v16, %v3718_v9 }
 0x789   : > { %6800 = vmatpush3.bf16.msra.mxu0 %v3586_v4  ;;  %v7401_v4 = vld [vmem:[%s9137_s6 + $0x40] sm:$0xff]  }
 0x78a   : > { %3743 = vmatprep.subr.bf16.mxu0 %v3728_v10  ;;  %v3726_v37 = vpop.permute.xlu0 %3725  ;;  %v3722_v11 = vpop.permute.xlu1 %3721 }
 0x78b   : > { %v3730_v1 = vsel %vm557_vm4, %v3724_v17, %v3726_v37  ;;  %v3729_v13 = vsel %vm557_vm4, %v3722_v11, %v3724_v17 }
 0x78c   : > { %6438 = vmatmul.mubr.msk.bf16.gmra.mrb[12].mxu0 %vm1994_vm11, %v7394_v12 }
 0x78d   : > { %6801 = vmatprep.mubr.msk.bf16.mxu0 %vm1994_vm11, %v7393_v2 }
 0x78e   : > { %v3865_v5 = vpop.permute.xlu1 %3864  ;;  %v3863_v23 = vpop.permute.xlu0 %3862 }
 0x78f   : > { %v3873_v57 = vsel %vm698_vm5, %v3863_v23, %v3865_v5 }
 0x792   : > { %v3861_v25 = vpop.permute.xlu0 %3860  ;;  %v3869_v7 = vpop.permute.xlu1 %3868 }
 0x793   : > { %v3872_v30 = vsel %vm698_vm5, %v3861_v25, %v3863_v23 }
 0x794   : > { %6802 = vmatmul.mubr.msk.bf16.vlgmr.msra.gmra.mrb[16].mxu0 %vm1994_vm11, %v7394_v12 }
 0x795   : > { %3744 = vmatpush1.bf16.msra.mxu0 %v3727_v28  ;;  %3775 = vmatprep.mubr.bf16.mxu0 %v7527_v8 }
 0x796   : > { %3745 = vmatprep.subr.bf16.mxu0 %v3730_v1  ;;  %v3871_v0 = vpop.permute.xlu0 %3870  ;;  %v3867_v26 = vpop.permute.xlu1 %3866  ;;  %v7404_v1 = vld [vmem:[%s9137_s6 + $0x58] sm:$0xff]  }
 0x797   : > { %v3875_v27 = vsel %vm698_vm5, %v3869_v7, %v3871_v0  ;;  %v3874_v15 = vsel %vm698_vm5, %v3867_v26, %v3869_v7 }
 0x799   : > { %3746 = vmatpush1.bf16.msra.mxu0 %v3729_v13 }
 0x79a   : > { %6805 = vmatprep.subr.bf16.mxu0 %v3720_v6  ;;  %v4024_v36 = vpop.permute.xlu0 %4023  ;;  %v4026_v45 = vpop.permute.xlu1 %4025 }
 0x79b   : > { %v4038_v47 = vsel %vm855_vm6, %v4024_v36, %v4026_v45 }
 0x79c   : > { %6443 = vmatmul.mubr.msk.bf16.vlgmr.msra.gmra.mrb[8].mxu0 %vm1994_vm11, %v7395_v43 }
 0x79d   : > { %6806 = vmatpush3.bf16.msra.mxu0 %v3720_v6  ;;  %3785 = vmatprep.mubr.bf16.mxu0 %v7527_v8 }
 0x79e   : > { %6807 = vmatprep.subr.bf16.mxu0 %v3726_v37  ;;  %v4022_v48 = vpop.permute.xlu0 %4021  ;;  %v4032_v49 = vpop.permute.xlu1 %4031 }
 0x79f   : > { %v4037_v54 = vsel %vm855_vm6, %v4022_v48, %v4024_v36 }
 0x7a1   : > { %6808 = vmatpush3.bf16.msra.mxu0 %v3726_v37  ;;  %v7403_v37 = vld [vmem:[%s9137_s6 + $0x50] sm:$0xff]  }
 0x7a2   : > { %3888 = vmatprep.subr.bf16.mxu0 %v3873_v57  ;;  %v4034_v60 = vpop.permute.xlu0 %4033  ;;  %v4030_v39 = vpop.permute.xlu1 %4029 }
 0x7a3   : > { %v4041_v19 = vsel %vm855_vm6, %v4032_v49, %v4034_v60  ;;  %v4040_v46 = vsel %vm855_vm6, %v4030_v39, %v4032_v49 }
 0x7a4   : > { %6444 = vmatmul.mubr.msk.bf16.gmra.mrb[12].mxu0 %vm1994_vm11, %v7396_v61 }
 0x7a5   : > { %6809 = vmatprep.mubr.msk.bf16.mxu0 %vm1994_vm11, %v7395_v43 }
 0x7a6   : > { %v4028_v3 = vpop.permute.xlu0 %4027  ;;  %v4036_v38 = vpop.permute.xlu1 %4035 }
 0x7a7   : > { %v4039_v18 = vsel %vm855_vm6, %v4026_v45, %v4028_v3  ;;  %v4042_v52 = vsel %vm855_vm6, %v4034_v60, %v4036_v38  ;;  %v7407_v60 = vld [vmem:[%s9137_s6 + $0x70] sm:$0xff]  }
 0x7ac   : > { %6810 = vmatmul.mubr.msk.bf16.vlgmr.msra.gmra.mrb[16].mxu0 %vm1994_vm11, %v7396_v61 }
 0x7ad   : > { %3889 = vmatpush1.bf16.msra.mxu0 %v3872_v30  ;;  %3920 = vmatprep.mubr.bf16.mxu0 %v7527_v8 }
 0x7ae   : > { %3890 = vmatprep.subr.bf16.mxu0 %v3875_v27  ;;  %v7406_v27 = vld [vmem:[%s9137_s6 + $0x68] sm:$0xff]  }
 0x7b1   : > { %3891 = vmatpush1.bf16.msra.mxu0 %v3874_v15 }
 0x7b2   : > { %6813 = vmatprep.subr.bf16.mxu0 %v3865_v5 }
 0x7b4   : > { %6453 = vmatmul.mubr.msk.bf16.vlgmr.msra.gmra.mrb[8].mxu0 %vm1994_vm11, %v7397_v35 }
 0x7b5   : > { %6814 = vmatpush3.bf16.msra.mxu0 %v3865_v5  ;;  %3930 = vmatprep.mubr.bf16.mxu0 %v7527_v8 }
 0x7b6   : > { %6815 = vmatprep.subr.bf16.mxu0 %v3871_v0 }
 0x7b9   : > { %6816 = vmatpush3.bf16.msra.mxu0 %v3871_v0  ;;  %v7405_v0 = vld [vmem:[%s9137_s6 + $0x60] sm:$0xff]  }
 0x7ba   : > { %4055 = vmatprep.subr.bf16.mxu0 %v4038_v47 }
 0x7bc   : > { %6454 = vmatmul.mubr.msk.bf16.gmra.mrb[12].mxu0 %vm1994_vm11, %v7398_v20 }
 0x7bd   : > { %6817 = vmatprep.mubr.msk.bf16.mxu0 %vm1994_vm11, %v7397_v35 }
 0x7c4   : > { %6818 = vmatmul.mubr.msk.bf16.vlgmr.msra.gmra.mrb[16].mxu0 %vm1994_vm11, %v7398_v20 }
 0x7c5   : > { %4056 = vmatpush1.bf16.msra.mxu0 %v4037_v54  ;;  %4087 = vmatprep.mubr.bf16.mxu0 %v7527_v8 }
 0x7c6   : > { %4057 = vmatprep.subr.bf16.mxu0 %v4041_v19  ;;  %v7408_v19 = vld [vmem:[%s9137_s6 + $0x78] sm:$0xff]  }
 0x7c9   : > { %4058 = vmatpush1.bf16.msra.mxu0 %v4040_v46 }
 0x7ca   : > { %6821 = vmatprep.subr.bf16.mxu0 %v4039_v18 }
 0x7cc   : > { %6463 = vmatmul.mubr.msk.bf16.vlgmr.msra.gmra.mrb[8].mxu0 %vm1994_vm11, %v7399_v32 }
 0x7cd   : > { %6822 = vmatpush3.bf16.msra.mxu0 %v4039_v18  ;;  %4097 = vmatprep.mubr.bf16.mxu0 %v7527_v8 }
 0x7ce   : > { %6823 = vmatprep.subr.bf16.mxu0 %v4042_v52 }
 0x7d1   : > { %6824 = vmatpush3.bf16.msra.mxu0 %v4042_v52 }
 0x7d2   : > { %4196 = vmatprep.subr.bf16.mxu0 %v8537_v51  ;;  %v4179_v51 = vpack.c.bf16 %v8483_v55, %v8475_v21 }
 0x7d4   : > { %6464 = vmatmul.mubr.msk.bf16.gmra.mrb[12].mxu0 %vm1994_vm11, %v7400_v44 }
 0x7d5   : > { %6825 = vmatprep.mubr.msk.bf16.mxu0 %vm1994_vm11, %v7399_v32 }
 0x7dc   : > { %6826 = vmatmul.mubr.msk.bf16.vlgmr.msra.gmra.mrb[16].mxu0 %vm1994_vm11, %v7400_v44 }
 0x7dd   : > { %4197 = vmatpush1.bf16.msra.mxu0 %v8549_v58  ;;  %4228 = vmatprep.mubr.bf16.mxu0 %v7527_v8  ;;  %v4334_v58 = vpop.permute.xlu1 %4333 }
 0x7de   : > { %4198 = vmatprep.subr.bf16.mxu0 %v8543_v56  ;;  %v4332_v56 = vpop.permute.xlu0 %4331 }
 0x7df   : > { %v4342_v2 = vsel %vm1158_vm7, %v4332_v56, %v4334_v58 }
 0x7e1   : > { %4199 = vmatpush1.bf16.msra.mxu0 %v8555_v59  ;;  %v4338_v6 = vpop.permute.xlu1 %4337 }
 0x7e2   : > { %6829 = vmatprep.subr.bf16.mxu0 %v4176_v40  ;;  %v4330_v59 = vpop.permute.xlu0 %4329 }
 0x7e3   : > { %v4341_v12 = vsel %vm1158_vm7, %v4330_v59, %v4332_v56 }
 0x7e4   : > { %6473 = vmatmul.mubr.msk.bf16.vlgmr.msra.gmra.mrb[8].mxu0 %vm1994_vm11, %v7401_v4 }
 0x7e5   : > { %6830 = vmatpush3.bf16.msra.mxu0 %v4176_v40  ;;  %4238 = vmatprep.mubr.bf16.mxu0 %v7527_v8  ;;  %v4336_v10 = vpop.permute.xlu1 %4335 }
 0x7e6   : > { %6831 = vmatprep.subr.bf16.mxu0 %v4179_v51  ;;  %v4340_v9 = vpop.permute.xlu0 %4339  ;;  %v4343_v17 = vsel %vm1158_vm7, %v4336_v10, %v4338_v6 }
 0x7e7   : > { %v4344_v16 = vsel %vm1158_vm7, %v4338_v6, %v4340_v9 }
 0x7e9   : > { %6832 = vmatpush3.bf16.msra.mxu0 %v4179_v51  ;;  %v4491_v28 = vpop.permute.xlu1 %4490  ;;  %v7410_v51 = vld [vmem:[%s9137_s6 + $0x88] sm:$0xff]  }
 0x7ea   : > { %4357 = vmatprep.subr.bf16.mxu0 %v4342_v2  ;;  %v4489_v11 = vpop.permute.xlu0 %4488 }
 0x7eb   : > { %v4499_v13 = vsel %vm1311_vm8, %v4489_v11, %v4491_v28 }
 0x7ec   : > { %6474 = vmatmul.mubr.msk.bf16.gmra.mrb[12].mxu0 %vm1994_vm11, %v7402_v50 }
 0x7ed   : > { %6833 = vmatprep.mubr.msk.bf16.mxu0 %vm1994_vm11, %v7401_v4  ;;  %v4495_v5 = vpop.permute.xlu1 %4494  ;;  %v7409_v4 = vld [vmem:[%s9137_s6 + $0x80] sm:$0xff]  }
 0x7ee   : > { %v4487_v43 = vpop.permute.xlu0 %4486 }
 0x7ef   : > { %v4498_v61 = vsel %vm1311_vm8, %v4487_v43, %v4489_v11 }
 0x7f1   : > { %v4493_v57 = vpop.permute.xlu1 %4492 }
 0x7f2   : > { %v4497_v23 = vpop.permute.xlu0 %4496  ;;  %v4500_v7 = vsel %vm1311_vm8, %v4493_v57, %v4495_v5 }
 0x7f3   : > { %v4501_v25 = vsel %vm1311_vm8, %v4495_v5, %v4497_v23 }
 0x7f4   : > { %6834 = vmatmul.mubr.msk.bf16.vlgmr.msra.gmra.mrb[16].mxu0 %vm1994_vm11, %v7402_v50 }
 0x7f5   : > { %4358 = vmatpush1.bf16.msra.mxu0 %v4341_v12  ;;  %4389 = vmatprep.mubr.bf16.mxu0 %v7527_v8  ;;  %v4648_v30 = vpop.permute.xlu1 %4647 }
 0x7f6   : > { %4359 = vmatprep.subr.bf16.mxu0 %v4344_v16  ;;  %v4646_v26 = vpop.permute.xlu0 %4645 }
 0x7f7   : > { %v4656_v15 = vsel %vm1464_vm9, %v4646_v26, %v4648_v30 }
 0x7f9   : > { %4360 = vmatpush1.bf16.msra.mxu0 %v4343_v17  ;;  %v4652_v36 = vpop.permute.xlu1 %4651 }
 0x7fa   : > { %6837 = vmatprep.subr.bf16.mxu0 %v4334_v58  ;;  %v4644_v35 = vpop.permute.xlu0 %4643 }
 0x7fb   : > { %v4655_v20 = vsel %vm1464_vm9, %v4644_v35, %v4646_v26 }
 0x7fc   : > { %6483 = vmatmul.mubr.msk.bf16.vlgmr.msra.gmra.mrb[8].mxu0 %vm1994_vm11, %v7403_v37 }
 0x7fd   : > { %6838 = vmatpush3.bf16.msra.mxu0 %v4334_v58  ;;  %4399 = vmatprep.mubr.bf16.mxu0 %v7527_v8  ;;  %v4650_v47 = vpop.permute.xlu1 %4649  ;;  %v7535_v58 = vmov 0.0  }
 0x7fe   : > { %6839 = vmatprep.subr.bf16.mxu0 %v4340_v9  ;;  %v4654_v45 = vpop.permute.xlu0 %4653  ;;  %v4657_v49 = vsel %vm1464_vm9, %v4650_v47, %v4652_v36 }
 0x7ff   : > { %v4658_v48 = vsel %vm1464_vm9, %v4652_v36, %v4654_v45 }
 0x801   : > { %6840 = vmatpush3.bf16.msra.mxu0 %v4340_v9  ;;  %v4805_v54 = vpop.permute.xlu1 %4804 }
 0x802   : > { %4514 = vmatprep.subr.bf16.mxu0 %v4499_v13  ;;  %v4803_v39 = vpop.permute.xlu0 %4802 }
 0x803   : > { %v4813_v3 = vsel %vm1617_vm10, %v4803_v39, %v4805_v54 }
 0x804   : > { %6484 = vmatmul.mubr.msk.bf16.gmra.mrb[12].mxu0 %vm1994_vm11, %v7404_v1 }
 0x805   : > { %6841 = vmatprep.mubr.msk.bf16.mxu0 %vm1994_vm11, %v7403_v37  ;;  %v4809_v32 = vpop.permute.xlu1 %4808 }
 0x806   : > { %v4801_v46 = vpop.permute.xlu0 %4800 }
 0x807   : > { %v4812_v38 = vsel %vm1617_vm10, %v4801_v46, %v4803_v39 }
 0x809   : > { %v4807_v52 = vpop.permute.xlu1 %4806 }
 0x80a   : > { %v4811_v18 = vpop.permute.xlu0 %4810  ;;  %v4814_v40 = vsel %vm1617_vm10, %v4807_v52, %v4809_v32 }
 0x80b   : > { %v4815_v44 = vsel %vm1617_vm10, %v4809_v32, %v4811_v18 }
 0x80c   : > { %6842 = vmatmul.mubr.msk.bf16.vlgmr.msra.gmra.mrb[16].mxu0 %vm1994_vm11, %v7404_v1 }
 0x80d   : > { %4515 = vmatpush1.bf16.msra.mxu0 %v4498_v61  ;;  %4546 = vmatprep.mubr.bf16.mxu0 %v7527_v8  ;;  %v8759_v6 = vpop.permute.xlu1 %4953 }
 0x80e   : > { %4516 = vmatprep.subr.bf16.mxu0 %v4501_v25  ;;  %v4949_v56 = vpop.permute.xlu0 %4948 }
 0x811   : > { %4517 = vmatpush1.bf16.msra.mxu0 %v4500_v7 }
 0x812   : > { %6845 = vmatprep.subr.bf16.mxu0 %v4491_v28  ;;  %v4959_v61 = vpop.permute.xlu0 %4958 }
 0x814   : > { %6493 = vmatmul.mubr.msk.bf16.vlgmr.msra.gmra.mrb[8].mxu0 %vm1994_vm11, %v7405_v0 }
 0x815   : > { %6846 = vmatpush3.bf16.msra.mxu0 %v4491_v28  ;;  %4556 = vmatprep.mubr.bf16.mxu0 %v7527_v8 }
 0x816   : > { %6847 = vmatprep.subr.bf16.mxu0 %v4497_v23 }
 0x819   : > { %6848 = vmatpush3.bf16.msra.mxu0 %v4497_v23 }
 0x81a   : > { %4671 = vmatprep.subr.bf16.mxu0 %v4656_v15 }
 0x81c   : > { %6494 = vmatmul.mubr.msk.bf16.gmra.mrb[12].mxu0 %vm1994_vm11, %v7406_v27 }
 0x81d   : > { %6849 = vmatprep.mubr.msk.bf16.mxu0 %vm1994_vm11, %v7405_v0 }
 0x824   : > { %6850 = vmatmul.mubr.msk.bf16.vlgmr.msra.gmra.mrb[16].mxu0 %vm1994_vm11, %v7406_v27 }
 0x825   : > { %4672 = vmatpush1.bf16.msra.mxu0 %v4655_v20  ;;  %4703 = vmatprep.mubr.bf16.mxu0 %v7527_v8 }
 0x826   : > { %4673 = vmatprep.subr.bf16.mxu0 %v4658_v48 }
 0x829   : > { %4674 = vmatpush1.bf16.msra.mxu0 %v4657_v49 }
 0x82a   : > { %6853 = vmatprep.subr.bf16.mxu0 %v4648_v30 }
 0x82c   : > { %6503 = vmatmul.mubr.msk.bf16.vlgmr.msra.gmra.mrb[8].mxu0 %vm1994_vm11, %v7407_v60 }
 0x82d   : > { %6854 = vmatpush3.bf16.msra.mxu0 %v4648_v30  ;;  %4713 = vmatprep.mubr.bf16.mxu0 %v7527_v8 }
 0x82e   : > { %6855 = vmatprep.subr.bf16.mxu0 %v4654_v45 }
 0x831   : > { %6856 = vmatpush3.bf16.msra.mxu0 %v4654_v45 }
 0x832   : > { %4828 = vmatprep.subr.bf16.mxu0 %v4813_v3 }
 0x834   : > { %6504 = vmatmul.mubr.msk.bf16.gmra.mrb[12].mxu0 %vm1994_vm11, %v7408_v19 }
 0x835   : > { %6857 = vmatprep.mubr.msk.bf16.mxu0 %vm1994_vm11, %v7407_v60  ;;  %v4964_v60 = vpop.permute.xlu1 %4963 }
 0x83c   : > { %6858 = vmatmul.mubr.msk.bf16.vlgmr.msra.gmra.mrb[16].mxu0 %vm1994_vm11, %v7408_v19 }
 0x83d   : > { %4829 = vmatpush1.bf16.msra.mxu0 %v4812_v38  ;;  %4860 = vmatprep.mubr.bf16.mxu0 %v7527_v8 }
 0x83e   : > { %4830 = vmatprep.subr.bf16.mxu0 %v4815_v44 }
 0x841   : > { %4831 = vmatpush1.bf16.msra.mxu0 %v4814_v40 }
 0x842   : > { %6861 = vmatprep.subr.bf16.mxu0 %v4805_v54 }
 0x844   : > { %6513 = vmatmul.mubr.msk.bf16.vlgmr.msra.gmra.mrb[8].mxu0 %vm1994_vm11, %v7409_v4 }
 0x845   : > { %6862 = vmatpush3.bf16.msra.mxu0 %v4805_v54  ;;  %4870 = vmatprep.mubr.bf16.mxu0 %v7527_v8 }
 0x846   : > { %6863 = vmatprep.subr.bf16.mxu0 %v4811_v18 }
 0x849   : > { %6864 = vmatpush3.bf16.msra.mxu0 %v4811_v18 }
 0x84a   : > { %6901 = vmatprep.subr.bf16.mxu0 %v7535_v58 }
 0x84c   : > { %6514 = vmatmul.mubr.msk.bf16.gmra.mrb[12].mxu0 %vm1994_vm11, %v7410_v51 }
 0x84d   : > { %6865 = vmatprep.mubr.msk.bf16.mxu0 %vm1994_vm11, %v7409_v4 }
 0x854   : > { %6866 = vmatmul.mubr.msk.bf16.vlgmr.msra.gmra.mrb[16].mxu0 %vm1994_vm11, %v7410_v51 }
 0x855   : > { %6905 = vmatprep.mubr.msk.bf16.mxu0 %vm7536_vm12, %v7535_v58 }
 0x917   : > { %v4862_v50 = vpop.f32.mrb[8].mxu0 }
 0x918   : > { %v4966_v2 = vadd.f32 %v4949_v56, %v4862_v50  ;;  %v4864_v59 = vpop.f32.mrb[9].mxu0 }
 0x919   : > { %v4967_v9 = vadd.f32 %v4949_v56, %v4864_v59  ;;  %v4866_v12 = vpop.f32.mrb[10].mxu0 }
 0x91a   : > { %v4990_v10 = vmul.f32 0.044715, %v4966_v2  ;;  %v8762_v16 = vadd.f32 %v8759_v6, %v4866_v12  ;;  %v4868_v17 = vpop.f32.mrb[11].mxu0 }
 0x91b   : > { %v4991_v37 = vmul.f32 0.044715, %v4967_v9  ;;  %v8765_v28 = vadd.f32 %v8759_v6, %v4868_v17 }
 0x91c   : > { %v5002_v11 = vmul.f32 %v4990_v10, %v4966_v2  ;;  %v4993_v1 = vmul.f32 0.044715, %v8762_v16 }
 0x91d   : > { %v5003_v13 = vmul.f32 %v4991_v37, %v4967_v9  ;;  %v4994_v43 = vmul.f32 0.044715, %v8765_v28 }
 0x91e   : > { %v5014_v5 = vmul.f32 %v5002_v11, %v4966_v2  ;;  %v5005_v23 = vmul.f32 %v4993_v1, %v8762_v16 }
 0x91f   : > { %v5015_v57 = vmul.f32 %v5003_v13, %v4967_v9  ;;  %v5006_v25 = vmul.f32 %v4994_v43, %v8765_v28  ;;  %v4872_v7 = vpop.f32.mrb[12].mxu0  ;;  %v4978_v43 = vmul.f32 0.5, %v4966_v2 }
 0x920   : > { %v5026_v0 = vadd.f32 %v5014_v5, %v4966_v2  ;;  %v5017_v30 = vmul.f32 %v5005_v23, %v8762_v16  ;;  %v8772_v26 = vadd.f32 %v4959_v61, %v4872_v7  ;;  %v4874_v27 = vpop.f32.mrb[13].mxu0  ;;  %v4979_v7 = vmul.f32 0.5, %v4967_v9 }
 0x921   : > { %v5027_v15 = vadd.f32 %v5015_v57, %v4967_v9  ;;  %v5018_v35 = vmul.f32 %v5006_v25, %v8765_v28  ;;  %v8775_v36 = vadd.f32 %v4959_v61, %v4874_v27  ;;  %v4876_v45 = vpop.f32.mrb[14].mxu0 }
 0x922   : > { %v5038_v20 = vmul.f32 0.7978846, %v5026_v0  ;;  %v5029_v47 = vadd.f32 %v5017_v30, %v8762_v16  ;;  %v4996_v48 = vmul.f32 0.044715, %v8772_v26  ;;  %v4878_v49 = vpop.f32.mrb[15].mxu0  ;;  %v8782_v32 = vadd.f32 %v4964_v60, %v4876_v45 }
 0x923   : > { %v5039_v54 = vmul.f32 0.7978846, %v5027_v15  ;;  %v5030_v39 = vadd.f32 %v5018_v35, %v8765_v28  ;;  %v4997_v19 = vmul.f32 0.044715, %v8775_v36  ;;  %v8785_v52 = vadd.f32 %v4964_v60, %v4878_v49 }
 0x924   : > { %7459 = vtanh.f32 %v5038_v20  ;;  %v5041_v3 = vmul.f32 0.7978846, %v5029_v47  ;;  %v5008_v46 = vmul.f32 %v4996_v48, %v8772_v26  ;;  %v4999_v40 = vmul.f32 0.044715, %v8782_v32 }
 0x925   : > { %7461 = vtanh.f32 %v5039_v54  ;;  %v5042_v18 = vmul.f32 0.7978846, %v5030_v39  ;;  %v5009_v38 = vmul.f32 %v4997_v19, %v8775_v36  ;;  %v5000_v51 = vmul.f32 0.044715, %v8785_v52 }
 0x926   : > { %7463 = vtanh.f32 %v5041_v3  ;;  %v5020_v44 = vmul.f32 %v5008_v46, %v8772_v26  ;;  %v5011_v12 = vmul.f32 %v4999_v40, %v8782_v32  ;;  %v4981_v20 = vmul.f32 0.5, %v8762_v16 }
 0x927   : > { %7465 = vtanh.f32 %v5042_v18  ;;  %v5021_v4 = vmul.f32 %v5009_v38, %v8775_v36  ;;  %v6867_v50 = vpop.f32.mrb[16].mxu0  ;;  %v5012_v11 = vmul.f32 %v5000_v51, %v8785_v52 }
 0x928   : > { %v5032_v59 = vadd.f32 %v5020_v44, %v8772_v26  ;;  %v8793_v10 = vadd.f32 %v6867_v50, %v4959_v61  ;;  %v4915_v17 = vpop.f32.mrb[17].mxu0  ;;  %v5023_v23 = vmul.f32 %v5011_v12, %v8782_v32 }
 0x929   : > { %v5033_v37 = vadd.f32 %v5021_v4, %v8775_v36  ;;  %v8797_v1 = vadd.f32 %v4949_v56, %v4915_v17  ;;  %v6868_v13 = vpop.f32.mrb[18].mxu0  ;;  %v5024_v61 = vmul.f32 %v5012_v11, %v8785_v52 }
 0x92a   : > { %v5044_v5 = vmul.f32 0.7978846, %v5032_v59  ;;  %v4998_v57 = vmul.f32 0.044715, %v8793_v10  ;;  %v4918_v25 = vpop.f32.mrb[19].mxu0  ;;  %v5035_v27 = vadd.f32 %v5023_v23, %v8782_v32  ;;  %v8805_v15 = vadd.f32 %v6868_v13, %v4964_v60 }
 0x92b   : > { %v5045_v0 = vmul.f32 0.7978846, %v5033_v37  ;;  %v4992_v30 = vmul.f32 0.044715, %v8797_v1  ;;  %v5036_v2 = vadd.f32 %v5024_v61, %v8785_v52  ;;  %v8810_v45 = vadd.f32 %v8759_v6, %v4918_v25 }
 0x92c   : > { %7467 = vtanh.f32 %v5044_v5  ;;  %v5010_v56 = vmul.f32 %v4998_v57, %v8793_v10  ;;  %v5047_v47 = vmul.f32 0.7978846, %v5035_v27  ;;  %v5001_v49 = vmul.f32 0.044715, %v8805_v15  ;;  %v7507_v27 = vld [vmem:[%s9132_s1] sm:$0xff] }
 0x92d   : > { %7469 = vtanh.f32 %v5045_v0  ;;  %v5004_v35 = vmul.f32 %v4992_v30, %v8797_v1  ;;  %v4982_v60 = vmul.f32 0.5, %v8765_v28  ;;  %v5048_v39 = vmul.f32 0.7978846, %v5036_v2 }
 0x92e   : > { %v7460_v9 = vpop.eup %7459  ;;  %v5022_v48 = vmul.f32 %v5010_v56, %v8793_v10  ;;  %v4995_v3 = vmul.f32 0.044715, %v8810_v45  ;;  %7471 = vtanh.f32 %v5047_v47  ;;  %v5013_v18 = vmul.f32 %v5001_v49, %v8805_v15  ;;  %v7509_v47 = vld [vmem:[%s9132_s1 + $0x8] sm:$0xff] }
 0x92f   : > { %v7462_v54 = vpop.eup %7461  ;;  %v5016_v19 = vmul.f32 %v5004_v35, %v8797_v1  ;;  %v5062_v16 = vadd.f32 1.0, %v7460_v9  ;;  %7473 = vtanh.f32 %v5048_v39 }
 0x930   : > { %v7464_v46 = vpop.eup %7463  ;;  %v5034_v6 = vadd.f32 %v5022_v48, %v8793_v10  ;;  %v5007_v40 = vmul.f32 %v4995_v3, %v8810_v45  ;;  %v5025_v51 = vmul.f32 %v5013_v18, %v8805_v15  ;;  %v5063_v59 = vadd.f32 1.0, %v7462_v54 }
 0x931   : > { %v7466_v38 = vpop.eup %7465  ;;  %v5028_v44 = vadd.f32 %v5016_v19, %v8797_v1  ;;  %v5065_v4 = vadd.f32 1.0, %v7464_v46  ;;  %v5074_v50 = vmul.f32 %v5062_v16, %v4978_v43  ;;  %v4984_v43 = vmul.f32 0.5, %v8772_v26 }
 0x932   : > { %v5046_v28 = vmul.f32 0.7978846, %v5034_v6  ;;  %v5019_v17 = vmul.f32 %v5007_v40, %v8810_v45  ;;  %v5066_v11 = vadd.f32 1.0, %v7466_v38  ;;  %v5037_v13 = vadd.f32 %v5025_v51, %v8805_v15 }
 0x933   : > { %v5040_v12 = vmul.f32 0.7978846, %v5028_v44  ;;  %v5077_v37 = vmul.f32 %v5065_v4, %v4981_v20  ;;  %v5086_v5 = vadd.f32 %v5074_v50, %v8381_v29  ;;  %v5075_v23 = vmul.f32 %v5063_v59, %v4979_v7  ;;  %v7508_v7 = vld [vmem:[%s9132_s1 + $0x18] sm:$0xff] }
 0x934   : > { %7475 = vtanh.f32 %v5046_v28  ;;  %v5031_v57 = vadd.f32 %v5019_v17, %v8810_v45  ;;  %v5078_v0 = vmul.f32 %v5066_v11, %v4982_v60  ;;  %v5049_v30 = vmul.f32 0.7978846, %v5037_v13  ;;  %v7510_v60 = vld [vmem:[%s9132_s1 + $0x20] sm:$0xff] }
 0x935   : > { %7477 = vtanh.f32 %v5040_v12  ;;  %v5089_v25 = vadd.f32 %v5077_v37, %v8386_v22  ;;  %v5098_v56 = vmul.f32 %v7507_v27, %v5086_v5  ;;  %v5087_v2 = vadd.f32 %v5075_v23, %v8403_v63 }
 0x936   : > { %v7468_v61 = vpop.eup %7467  ;;  %v5043_v29 = vmul.f32 0.7978846, %v5031_v57  ;;  %v5090_v22 = vadd.f32 %v5078_v0, %v8396_v14  ;;  %v4985_v26 = vmul.f32 0.5, %v8775_v36  ;;  %7479 = vtanh.f32 %v5049_v30 }
 0x937   : > { %v7470_v35 = vpop.eup %7469  ;;  %v5101_v9 = vmul.f32 %v7508_v7, %v5089_v25  ;;  %v5068_v20 = vadd.f32 1.0, %v7468_v61  ;;  %v5099_v48 = vmul.f32 %v7509_v47, %v5087_v2  ;;  %v4987_v46 = vmul.f32 0.5, %v8782_v32  ;;  %v7516_v47 = vld [vmem:[%s9132_s1 + $0x28] sm:$0xff] }
 0x938   : > { %v5069_v49 = vadd.f32 1.0, %v7470_v35  ;;  %7481 = vtanh.f32 %v5043_v29  ;;  %v5102_v39 = vmul.f32 %v7510_v60, %v5090_v22  ;;  %v7472_v14 = vpop.eup %7471  ;;  %v4988_v38 = vmul.f32 0.5, %v8785_v52 }
 0x939   : > { %v7326_v63 = vpack.i.bf16 %v5101_v9, %v5098_v56  ;;  %v8841_v54 = vpack.c.bf16 %v5101_v9, %v5098_v56  ;;  %v5080_v19 = vmul.f32 %v5068_v20, %v4984_v43  ;;  %v7474_v36 = vpop.eup %7473  ;;  %v5071_v16 = vadd.f32 1.0, %v7472_v14 }
 0x93a   : > { %v5081_v3 = vmul.f32 %v5069_v49, %v4985_v26  ;;  %v7336_v6 = vpack.i.bf16 %v5102_v39, %v5099_v48  ;;  %v8848_v18 = vpack.c.bf16 %v5102_v39, %v5099_v48  ;;  %v5072_v44 = vadd.f32 1.0, %v7474_v36 }
 0x93b   : > { %7327 = vrot.lane.b32.xlu0 %v7326_v63, %s7525_s19  ;;  %v5083_v40 = vmul.f32 %v5071_v16, %v4987_v46  ;;  %v5092_v4 = vadd.f32 %v5080_v19, %v8416_v41  ;;  %v4980_v12 = vmul.f32 0.5, %v8797_v1  ;;  %v4986_v52 = vmul.f32 0.5, %v8793_v10  ;;  %v7511_v41 = vld [vmem:[%s9132_s1 + $0x30] sm:$0xff] }
 0x93c   : > { %v5084_v51 = vmul.f32 %v5072_v44, %v4988_v38  ;;  %v5093_v50 = vadd.f32 %v5081_v3, %v8426_v62  ;;  %v7512_v62 = vld [vmem:[%s9132_s1 + $0x48] sm:$0xff]  ;;  %v4989_v0 = vmul.f32 0.5, %v8805_v15  ;;  %v4983_v27 = vmul.f32 0.5, %v8810_v45  ;;  %v7515_v45 = vld [vmem:[%s9132_s1 + $0x10] sm:$0xff] }
 0x93d   : > { %v5095_v32 = vadd.f32 %v5083_v40, %v8421_v31  ;;  %v5104_v11 = vmul.f32 %v7511_v41, %v5092_v4  ;;  %v7513_v31 = vld [vmem:[%s9132_s1 + $0x38] sm:$0xff] }
 0x93e   : > { %v7476_v28 = vpop.eup %7475  ;;  %v5096_v17 = vadd.f32 %v5084_v51, %v8431_v33  ;;  %v5105_v1 = vmul.f32 %v7513_v31, %v5093_v50  ;;  %v7514_v33 = vld [vmem:[%s9132_s1 + $0x50] sm:$0xff] }
 0x93f   : > { %v7478_v59 = vpop.eup %7477  ;;  %7337 = vrot.lane.b32.xlu0 %v7336_v6, %s7525_s19  ;;  %v5107_v13 = vmul.f32 %v7512_v62, %v5095_v32  ;;  %v5070_v57 = vadd.f32 1.0, %v7476_v28 }
 0x940   : > { %v5064_v37 = vadd.f32 1.0, %v7478_v59  ;;  %v7480_v5 = vpop.eup %7479  ;;  %v5108_v10 = vmul.f32 %v7514_v33, %v5096_v17 }
 0x941   : > { %v7331_v61 = vpack.i.bf16 %v5107_v13, %v5104_v11  ;;  %v8871_v43 = vpack.c.bf16 %v5107_v13, %v5104_v11  ;;  %v5073_v30 = vadd.f32 1.0, %v7480_v5  ;;  %v5082_v22 = vmul.f32 %v5070_v57, %v4986_v52 }
 0x942   : > { %v5076_v23 = vmul.f32 %v5064_v37, %v4980_v12  ;;  %v7482_v25 = vpop.eup %7481  ;;  %v7341_v56 = vpack.i.bf16 %v5108_v10, %v5105_v1  ;;  %v8874_v2 = vpack.c.bf16 %v5108_v10, %v5105_v1 }
 0x943   : > { %v5067_v35 = vadd.f32 1.0, %v7482_v25  ;;  %7332 = vrot.lane.b32.xlu1 %v7331_v61, %s7525_s19  ;;  %v5085_v29 = vmul.f32 %v5073_v30, %v4989_v0  ;;  %v5094_v49 = vadd.f32 %v5082_v22, %v8475_v21  ;;  %v8942_v61 = vld [vmem:[%s9139_s8 + $0x8] sm:$0x3] }
 0x944   : > { %7342 = vrot.lane.b32.xlu0 %v7341_v56, %s7525_s19  ;;  %v5088_v9 = vadd.f32 %v5076_v23, %v8452_v42  ;;  %v6148_v56 = vld [vmem:[%s9140_s9] sm:$0xf] }
 0x945   : > { %v5079_v7 = vmul.f32 %v5067_v35, %v4983_v27  ;;  %v5097_v20 = vadd.f32 %v5085_v29, %v8483_v55 }
 0x946   : > { %v5100_v26 = vmul.f32 %v7515_v45, %v5088_v9 }
 0x947   : > { %v5091_v15 = vadd.f32 %v5079_v7, %v8457_v24  ;;  %v5109_v42 = vmul.f32 %v8480_v53, %v5097_v20  ;;  %v5106_v24 = vmul.f32 %v8472_v34, %v5094_v49  ;;  %v6517_v49 = vld [vmem:[%s9139_s8 + $0x2] sm:$0x3] }
 0x949   : > { %v5103_v48 = vmul.f32 %v7516_v47, %v5091_v15  ;;  %v5612_v55 = vpack.c.bf16 %v5109_v42, %v5106_v24 }
 0x94b   : > { %v5609_v63 = vpack.c.bf16 %v5103_v48, %v5100_v26 }
 0x94d   : > { %6902 = vmatpush3.bf16.msra.mxu0 %v5609_v63 }
 0x94e   : > { %6903 = vmatprep.subr.bf16.mxu0 %v7535_v58 }
 0x951   : > { %6904 = vmatpush3.bf16.msra.mxu0 %v5612_v55 }
 0x952   : > { %6909 = vmatprep.subr.bf16.mxu0 %v7535_v58 }
 0x954   : > { %6906 = vmatmul.mubr.msk.bf16.vlgmr.msra.gmra.mrb[20].mxu0 %vm1994_vm11, %v8942_v61 }
 0x955   : > { %6913 = vmatprep.mubr.msk.bf16.mxu0 %vm7536_vm12, %v7535_v58 }
 0x9ad   : > { %v7328_v60 = vpop.permute.xlu0 %7327 }
 0x9ae   : > { %v7330_v39 = vunpack.i.h.bf16 %v7328_v60  ;;  %v7329_v14 = vunpack.i.l.bf16 %v7328_v60 }
 0x9b0   : > { %v5115_v19 = vsel %vm378_vm0, %v7330_v39, %v5103_v48  ;;  %v5112_v3 = vsel %vm378_vm0, %v7329_v14, %v5100_v26 }
 0x9b1   : > { %v7346_v21 = vpack.i.bf16 %v5115_v19, %v5112_v3  ;;  %v7338_v36 = vpop.permute.xlu0 %7337  ;;  %v8898_v28 = vpack.c.bf16 %v5115_v19, %v5112_v3 }
 0x9b2   : > { %v7340_v46 = vunpack.i.h.bf16 %v7338_v36  ;;  %v7339_v53 = vunpack.i.l.bf16 %v7338_v36 }
 0x9b3   : > { %7347 = vrot.lane.b32.xlu1 %v7346_v21, %s7525_s19 }
 0x9b4   : > { %v5138_v34 = vsel %vm378_vm0, %v7339_v53, %v7329_v14  ;;  %v5139_v6 = vsel %vm378_vm0, %v7340_v46, %v7330_v39 }
 0x9b5   : > { %v5148_v16 = vpack.c.bf16 %v5139_v6, %v5138_v34  ;;  %v7333_v38 = vpop.permute.xlu1 %7332 }
 0x9b6   : > { %v7335_v44 = vunpack.i.h.bf16 %v7333_v38  ;;  %v7334_v40 = vunpack.i.l.bf16 %v7333_v38  ;;  %v7343_v4 = vpop.permute.xlu0 %7342 }
 0x9b7   : > { %5163 = vrot.lane.b32.xlu0 %v5148_v16, %s7526_s20  ;;  %v7345_v51 = vunpack.i.h.bf16 %v7343_v4  ;;  %v7344_v50 = vunpack.i.l.bf16 %v7343_v4 }
 0x9b8   : > { %v5121_v59 = vsel %vm378_vm0, %v7335_v44, %v5109_v42  ;;  %v5118_v32 = vsel %vm378_vm0, %v7334_v40, %v5106_v24 }
 0x9b9   : > { %v7351_v12 = vpack.i.bf16 %v5121_v59, %v5118_v32  ;;  %v8902_v17 = vpack.c.bf16 %v5121_v59, %v5118_v32  ;;  %v5141_v37 = vsel %vm378_vm0, %v7345_v51, %v7335_v44  ;;  %v5140_v52 = vsel %vm378_vm0, %v7344_v50, %v7334_v40 }
 0x9ba   : > { %v5151_v41 = vpack.c.bf16 %v5141_v37, %v5140_v52 }
 0x9bb   : > { %5161 = vrot.lane.b32.xlu0 %v8898_v28, %s7526_s20  ;;  %7352 = vrot.lane.b32.xlu1 %v7351_v12, %s7525_s19  ;;  %v6522_v12 = vld [vmem:[%s9139_s8 + $0x4] sm:$0x3] }
 0xa25   : > { %v7348_v11 = vpop.permute.xlu1 %7347 }
 0xa26   : > { %v7350_v62 = vunpack.i.h.bf16 %v7348_v11  ;;  %v7349_v13 = vunpack.i.l.bf16 %v7348_v11 }
 0xa28   : > { %v5143_v5 = vsel %vm378_vm0, %v7350_v62, %v7340_v46  ;;  %v5142_v31 = vsel %vm378_vm0, %v7349_v13, %v7339_v53  ;;  %v5486_v30 = vpack.c.bf16 %v7350_v62, %v7349_v13  ;;  %v5146_v53 = vld [vmem:[%s9139_s8] sm:$0x3] }
 0xa29   : > { %v5149_v1 = vpack.c.bf16 %v5143_v5, %v5142_v31  ;;  %v5164_v35 = vpop.permute.xlu0 %5163 }
 0xa2b   : > { %5165 = vrot.lane.b32.xlu1 %v5149_v1, %s7526_s20 }
 0xa2d   : > { %v7353_v33 = vpop.permute.xlu1 %7352  ;;  %v5162_v29 = vpop.permute.xlu0 %5161 }
 0xa2e   : > { %v7355_v10 = vunpack.i.h.bf16 %v7353_v33  ;;  %v7354_v23 = vunpack.i.l.bf16 %v7353_v33  ;;  %v5173_v22 = vsel %vm419_vm3, %v5162_v29, %v5164_v35 }
 0xa2f   : > { %5169 = vrot.lane.b32.xlu1 %v5151_v41, %s7526_s20 }
 0xa30   : > { %v5145_v57 = vsel %vm378_vm0, %v7355_v10, %v7345_v51  ;;  %v5144_v25 = vsel %vm378_vm0, %v7354_v23, %v7344_v50  ;;  %v5487_v27 = vpack.c.bf16 %v7355_v10, %v7354_v23  ;;  %v6525_v23 = vld [vmem:[%s9139_s8 + $0x6] sm:$0x3] }
 0xa31   : > { %v5152_v0 = vpack.c.bf16 %v5145_v57, %v5144_v25  ;;  %v6531_v25 = vld [vmem:[%s9139_s8 + $0xa] sm:$0x3] }
 0xa33   : > { %5167 = vrot.lane.b32.xlu1 %v8902_v17, %s7526_s20  ;;  %5171 = vrot.lane.b32.xlu0 %v5152_v0, %s7526_s20 }
 0xa37   : > { %5271 = vrot.lane.b32.xlu1 %v5149_v1, %s7528_s23  ;;  %5269 = vrot.lane.b32.xlu0 %v5148_v16, %s7528_s23 }
 0xa3b   : > { %5275 = vrot.lane.b32.xlu1 %v5151_v41, %s7528_s23  ;;  %5267 = vrot.lane.b32.xlu0 %v8898_v28, %s7528_s23 }
 0xa3f   : > { %5273 = vrot.lane.b32.xlu1 %v8902_v17, %s7528_s23  ;;  %5277 = vrot.lane.b32.xlu0 %v5152_v0, %s7528_s23 }
 0xa43   : > { %5379 = vrot.lane.b32.xlu1 %v5149_v1, %s7529_s24  ;;  %5377 = vrot.lane.b32.xlu0 %v5148_v16, %s7529_s24 }
 0xa47   : > { %5383 = vrot.lane.b32.xlu1 %v5151_v41, %s7529_s24  ;;  %5375 = vrot.lane.b32.xlu0 %v8898_v28, %s7529_s24 }
 0xa4b   : > { %5381 = vrot.lane.b32.xlu1 %v8902_v17, %s7529_s24  ;;  %5385 = vrot.lane.b32.xlu0 %v5152_v0, %s7529_s24 }
 0xa4f   : > { %5494 = vrot.lane.b32.xlu1 %v5149_v1, %s7530_s25  ;;  %5492 = vrot.lane.b32.xlu0 %v5148_v16, %s7530_s25 }
 0xa53   : > { %5500 = vrot.lane.b32.xlu1 %v5151_v41, %s7530_s25  ;;  %5490 = vrot.lane.b32.xlu0 %v8898_v28, %s7530_s25 }
 0xa57   : > { %5498 = vrot.lane.b32.xlu1 %v8902_v17, %s7530_s25  ;;  %5496 = vrot.lane.b32.xlu0 %v5486_v30, %s7530_s25 }
 0xa5b   : > { %5504 = vrot.lane.b32.xlu1 %v5487_v27, %s7530_s25  ;;  %5502 = vrot.lane.b32.xlu0 %v5152_v0, %s7530_s25 }
 0xa5f   : > { %5710 = vrot.lane.b32.xlu1 %v8898_v28, %s7531_s26  ;;  %5708 = vrot.lane.b32.xlu0 %v8848_v18, %s7531_s26 }
 0xa63   : > { %5714 = vrot.lane.b32.xlu1 %v8874_v2, %s7531_s26  ;;  %5706 = vrot.lane.b32.xlu0 %v8841_v54, %s7531_s26 }
 0xa67   : > { %5712 = vrot.lane.b32.xlu1 %v8871_v43, %s7531_s26  ;;  %5716 = vrot.lane.b32.xlu0 %v8902_v17, %s7531_s26  ;;  %s359_s26 = scalar_lea.vmem %s9141_s10, %s7238_s15 }
 0xa6b   : > { %5821 = vrot.lane.b32.xlu1 %v8898_v28, %s7532_s27  ;;  %5819 = vrot.lane.b32.xlu0 %v8848_v18, %s7532_s27 }
 0xa6f   : > { %5825 = vrot.lane.b32.xlu1 %v8874_v2, %s7532_s27  ;;  %5817 = vrot.lane.b32.xlu0 %v8841_v54, %s7532_s27 }
 0xa73   : > { %5823 = vrot.lane.b32.xlu1 %v8871_v43, %s7532_s27  ;;  %5827 = vrot.lane.b32.xlu0 %v8902_v17, %s7532_s27 }
 0xa77   : > { %5932 = vrot.lane.b32.xlu1 %v8898_v28, %s7533_s28  ;;  %5930 = vrot.lane.b32.xlu0 %v8848_v18, %s7533_s28 }
 0xa7b   : > { %5936 = vrot.lane.b32.xlu1 %v8874_v2, %s7533_s28  ;;  %5928 = vrot.lane.b32.xlu0 %v8841_v54, %s7533_s28 }
 0xa7f   : > { %5934 = vrot.lane.b32.xlu1 %v8871_v43, %s7533_s28  ;;  %5938 = vrot.lane.b32.xlu0 %v8902_v17, %s7533_s28 }
 0xa83   : > { %6043 = vrot.lane.b32.xlu1 %v8898_v28, %s7534_s29  ;;  %6041 = vrot.lane.b32.xlu0 %v8848_v18, %s7534_s29 }
 0xa87   : > { %6047 = vrot.lane.b32.xlu1 %v8874_v2, %s7534_s29  ;;  %6039 = vrot.lane.b32.xlu0 %v8841_v54, %s7534_s29 }
 0xa8b   : > { %6045 = vrot.lane.b32.xlu1 %v8871_v43, %s7534_s29  ;;  %6049 = vrot.lane.b32.xlu0 %v8902_v17, %s7534_s29 }
 0xa8f   : > { %6151 = vperm.xlu0 %7265, %v6148_v56  }
 0xa9d   : > { %v5166_v7 = vpop.permute.xlu1 %5165 }
 0xa9e   : > { %v5174_v9 = vsel %vm419_vm3, %v5164_v35, %v5166_v7 }
 0xa9f   : > { %5186 = vmatprep.subr.bf16.mxu1 %v5174_v9 }
 0xaa0   : > { %5187 = vmatpush1.bf16.msra.mxu1 %v5173_v22  ;;  %v6534_v22 = vld [vmem:[%s9139_s8 + $0xc] sm:$0x3] }
 0xaa1   : > { %v5170_v15 = vpop.permute.xlu1 %5169 }
 0xaa5   : > { %v5168_v20 = vpop.permute.xlu1 %5167  ;;  %v5172_v26 = vpop.permute.xlu0 %5171 }
 0xaa6   : > { %v5175_v45 = vsel %vm419_vm3, %v5168_v20, %v5170_v15  ;;  %v5176_v47 = vsel %vm419_vm3, %v5170_v15, %v5172_v26 }
 0xaa7   : > { %5188 = vmatprep.subr.bf16.mxu1 %v5176_v47 }
 0xaa8   : > { %5189 = vmatpush1.bf16.msra.mxu1 %v5175_v45 }
 0xaa9   : > { %v5272_v48 = vpop.permute.xlu1 %5271  ;;  %v5270_v63 = vpop.permute.xlu0 %5269  ;;  %6869 = vmatprep.subr.bf16.mxu1 %v7535_v58 }
 0xaaa   : > { %v5280_v60 = vsel %vm557_vm4, %v5270_v63, %v5272_v48 }
 0xaab   : > { %6518 = vmatmul.mubr.msk.bf16.vlgmr.msra.gmra.mrb[16].mxu1 %vm1994_vm11, %v6517_v49 }
 0xaac   : > { %6870 = vmatpush3.bf16.msra.mxu1 %v5166_v7  ;;  %6873 = vmatprep.mubr.msk.bf16.mxu1 %vm7536_vm12, %v7535_v58 }
 0xaad   : > { %v5276_v42 = vpop.permute.xlu1 %5275  ;;  %v5268_v24 = vpop.permute.xlu0 %5267  ;;  %6871 = vmatprep.subr.bf16.mxu1 %v7535_v58 }
 0xaae   : > { %v5279_v14 = vsel %vm557_vm4, %v5268_v24, %v5270_v63 }
 0xab0   : > { %6872 = vmatpush3.bf16.msra.mxu1 %v5172_v26 }
 0xab1   : > { %v5274_v55 = vpop.permute.xlu1 %5273  ;;  %5292 = vmatprep.subr.bf16.mxu1 %v5280_v60  ;;  %v5278_v39 = vpop.permute.xlu0 %5277 }
 0xab2   : > { %v5282_v3 = vsel %vm557_vm4, %v5276_v42, %v5278_v39  ;;  %v5281_v36 = vsel %vm557_vm4, %v5274_v55, %v5276_v42 }
 0xab3   : > { %6874 = vmatmul.mubr.msk.bf16.vlgmr.msra.gmra.mrb[20].mxu1 %vm1994_vm11, %v6517_v49 }
 0xab4   : > { %5293 = vmatpush1.bf16.msra.mxu1 %v5279_v14  ;;  %5324 = vmatprep.mubr.bf16.mxu1 %v7527_v8 }
 0xab5   : > { %v5380_v19 = vpop.permute.xlu1 %5379  ;;  %5294 = vmatprep.subr.bf16.mxu1 %v5282_v3  ;;  %v5378_v21 = vpop.permute.xlu0 %5377 }
 0xab6   : > { %v5388_v44 = vsel %vm698_vm5, %v5378_v21, %v5380_v19 }
 0xab8   : > { %5295 = vmatpush1.bf16.msra.mxu1 %v5281_v36 }
 0xab9   : > { %v5384_v46 = vpop.permute.xlu1 %5383  ;;  %v5376_v34 = vpop.permute.xlu0 %5375  ;;  %6877 = vmatprep.subr.bf16.mxu1 %v7535_v58 }
 0xaba   : > { %v5387_v4 = vsel %vm698_vm5, %v5376_v34, %v5378_v21 }
 0xabb   : > { %6520 = vmatmul.mubr.msk.bf16.vlgmr.msra.gmra.mrb[24].mxu1 %vm1994_vm11, %v5146_v53 }
 0xabc   : > { %6878 = vmatpush3.bf16.msra.mxu1 %v5272_v48  ;;  %6881 = vmatprep.mubr.msk.bf16.mxu1 %vm7536_vm12, %v7535_v58 }
 0xabd   : > { %v5382_v6 = vpop.permute.xlu1 %5381  ;;  %v5386_v16 = vpop.permute.xlu0 %5385  ;;  %6879 = vmatprep.subr.bf16.mxu1 %v7535_v58 }
 0xabe   : > { %v5390_v51 = vsel %vm698_vm5, %v5384_v46, %v5386_v16  ;;  %v5389_v59 = vsel %vm698_vm5, %v5382_v6, %v5384_v46 }
 0xac0   : > { %6880 = vmatpush3.bf16.msra.mxu1 %v5278_v39 }
 0xac1   : > { %v5495_v38 = vpop.permute.xlu1 %5494  ;;  %5400 = vmatprep.subr.bf16.mxu1 %v5388_v44  ;;  %v5493_v40 = vpop.permute.xlu0 %5492 }
 0xac2   : > { %v5507_v11 = vsel %vm855_vm6, %v5493_v40, %v5495_v38  ;;  %v5691_v44 = vpop.f32.mrb[20].mxu0 }
 0xac3   : > { %6882 = vmatmul.mubr.msk.bf16.vlgmr.msra.gmra.mrb[28].mxu1 %vm1994_vm11, %v5146_v53 }
 0xac4   : > { %5401 = vmatpush1.bf16.msra.mxu1 %v5387_v4  ;;  %5432 = vmatprep.mubr.bf16.mxu1 %v7527_v8 }
 0xac5   : > { %v5501_v28 = vpop.permute.xlu1 %5500  ;;  %5402 = vmatprep.subr.bf16.mxu1 %v5390_v51  ;;  %v5491_v50 = vpop.permute.xlu0 %5490 }
 0xac6   : > { %v5506_v13 = vsel %vm855_vm6, %v5491_v50, %v5493_v40  ;;  %v6907_v40 = vpop.f32.mrb[21].mxu0 }
 0xac7   : > { %v5694_v4 = vpop.f32.mrb[22].mxu0 }
 0xac8   : > { %5403 = vmatpush1.bf16.msra.mxu1 %v5389_v59 }
 0xac9   : > { %v5499_v32 = vpop.permute.xlu1 %5498  ;;  %v5497_v17 = vpop.permute.xlu0 %5496  ;;  %6885 = vmatprep.subr.bf16.mxu1 %v7535_v58 }
 0xaca   : > { %v5509_v33 = vsel %vm855_vm6, %v5499_v32, %v5501_v28  ;;  %v5508_v0 = vsel %vm855_vm6, %v5495_v38, %v5497_v17 }
 0xacb   : > { %6523 = vmatmul.mubr.msk.bf16.vlgmr.msra.gmra.mrb[32].mxu1 %vm1994_vm11, %v6522_v12 }
 0xacc   : > { %6886 = vmatpush3.bf16.msra.mxu1 %v5380_v19  ;;  %6889 = vmatprep.mubr.msk.bf16.mxu1 %vm7536_vm12, %v7535_v58 }
 0xacd   : > { %v5505_v37 = vpop.permute.xlu1 %5504  ;;  %v5503_v52 = vpop.permute.xlu0 %5502  ;;  %6887 = vmatprep.subr.bf16.mxu1 %v7535_v58 }
 0xace   : > { %v5510_v31 = vsel %vm855_vm6, %v5501_v28, %v5503_v52  ;;  %v5511_v56 = vsel %vm855_vm6, %v5503_v52, %v5505_v37  ;;  %v6908_v28 = vpop.f32.mrb[23].mxu0 }
 0xad0   : > { %6888 = vmatpush3.bf16.msra.mxu1 %v5386_v16 }
 0xad1   : > { %v5711_v41 = vpop.permute.xlu1 %5710  ;;  %5521 = vmatprep.subr.bf16.mxu1 %v5507_v11  ;;  %v5709_v62 = vpop.permute.xlu0 %5708 }
 0xad2   : > { %6910 = vmatpush3.bf16.msra.mxu0 %v5711_v41 }
 0xad3   : > { %6911 = vmatprep.subr.bf16.mxu0 %v7535_v58  ;;  %6890 = vmatmul.mubr.msk.bf16.vlgmr.msra.gmra.mrb[36].mxu1 %vm1994_vm11, %v6522_v12 }
 0xad4   : > { %5522 = vmatpush1.bf16.msra.mxu1 %v5506_v13  ;;  %5553 = vmatprep.mubr.bf16.mxu1 %v7527_v8 }
 0xad5   : > { %v5715_v5 = vpop.permute.xlu1 %5714  ;;  %5523 = vmatprep.subr.bf16.mxu1 %v5510_v31  ;;  %v5707_v1 = vpop.permute.xlu0 %5706 }
 0xad8   : > { %5524 = vmatpush1.bf16.msra.mxu1 %v5509_v33 }
 0xad9   : > { %v5713_v10 = vpop.permute.xlu1 %5712  ;;  %v5717_v57 = vpop.permute.xlu0 %5716  ;;  %6893 = vmatprep.subr.bf16.mxu1 %v7535_v58 }
 0xada   : > { %6912 = vmatpush3.bf16.msra.mxu0 %v5717_v57  ;;  %v5720_v26 = vsel %vm1158_vm7, %v5713_v10, %v5715_v5 }
 0xadb   : > { %6526 = vmatmul.mubr.msk.bf16.vlgmr.msra.gmra.mrb[40].mxu1 %vm1994_vm11, %v6525_v23  ;;  %6917 = vmatprep.subr.bf16.mxu0 %v7535_v58 }
 0xadc   : > { %6894 = vmatpush3.bf16.msra.mxu1 %v5508_v0  ;;  %6897 = vmatprep.mubr.msk.bf16.mxu1 %vm7536_vm12, %v7535_v58 }
 0xadd   : > { %v5822_v30 = vpop.permute.xlu1 %5821  ;;  %v5820_v27 = vpop.permute.xlu0 %5819  ;;  %6914 = vmatmul.mubr.msk.bf16.vlgmr.msra.gmra.mrb[24].mxu0 %vm1994_vm11, %v6531_v25  ;;  %6895 = vmatprep.subr.bf16.mxu1 %v7535_v58 }
 0xade   : > { %6918 = vmatpush3.bf16.msra.mxu0 %v5822_v30  ;;  %6921 = vmatprep.mubr.msk.bf16.mxu0 %vm7536_vm12, %v7535_v58  ;;  %v5830_v48 = vsel %vm1311_vm8, %v5820_v27, %v5822_v30 }
 0xadf   : > { %6919 = vmatprep.subr.bf16.mxu0 %v7535_v58 }
 0xae0   : > { %6896 = vmatpush3.bf16.msra.mxu1 %v5511_v56 }
 0xae1   : > { %v5826_v35 = vpop.permute.xlu1 %5825  ;;  %5616 = vmatprep.subr.bf16.mxu1 %v8848_v18  ;;  %v5818_v29 = vpop.permute.xlu0 %5817  ;;  %v5719_v18 = vsel %vm1158_vm7, %v5709_v62, %v5711_v41 }
 0xae2   : > { %v5829_v63 = vsel %vm1311_vm8, %v5818_v29, %v5820_v27 }
 0xae3   : > { %6898 = vmatmul.mubr.msk.bf16.vlgmr.msra.gmra.mrb[44].mxu1 %vm1994_vm11, %v6525_v23 }
 0xae4   : > { %5617 = vmatpush1.bf16.msra.mxu1 %v8841_v54  ;;  %5648 = vmatprep.mubr.bf16.mxu1 %v7527_v8 }
 0xae5   : > { %v5824_v7 = vpop.permute.xlu1 %5823  ;;  %5618 = vmatprep.subr.bf16.mxu1 %v8874_v2  ;;  %v5828_v9 = vpop.permute.xlu0 %5827  ;;  %v5718_v2 = vsel %vm1158_vm7, %v5707_v1, %v5709_v62 }
 0xae6   : > { %6920 = vmatpush3.bf16.msra.mxu0 %v5828_v9  ;;  %v5832_v24 = vsel %vm1311_vm8, %v5826_v35, %v5828_v9  ;;  %v5831_v60 = vsel %vm1311_vm8, %v5824_v7, %v5826_v35 }
 0xae7   : > { %6925 = vmatprep.subr.bf16.mxu0 %v7535_v58 }
 0xae8   : > { %5619 = vmatpush1.bf16.msra.mxu1 %v8871_v43  ;;  %v5721_v43 = vsel %vm1158_vm7, %v5715_v5, %v5717_v57 }
 0xae9   : > { %v5933_v15 = vpop.permute.xlu1 %5932  ;;  %5731 = vmatprep.subr.bf16.mxu1 %v5719_v18  ;;  %6922 = vmatmul.mubr.msk.bf16.vlgmr.msra.gmra.mrb[28].mxu0 %vm1994_vm11, %v6534_v22  ;;  %v5931_v54 = vpop.permute.xlu0 %5930 }
 0xaea   : > { %6926 = vmatpush3.bf16.msra.mxu0 %v5933_v15  ;;  %6929 = vmatprep.mubr.msk.bf16.mxu0 %vm7536_vm12, %v7535_v58  ;;  %v5941_v39 = vsel %vm1464_vm9, %v5931_v54, %v5933_v15 }
 0xaeb   : > { %6529 = vmatmul.mubr.msk.bf16.vlgmr.msra.gmra.mrb[48].mxu1 %vm1994_vm11, %v8942_v61  ;;  %6927 = vmatprep.subr.bf16.mxu0 %v7535_v58  ;;  %v6537_v61 = vld [vmem:[%s9139_s8 + $0xe] sm:$0x3] }
 0xaec   : > { %5732 = vmatpush1.bf16.msra.mxu1 %v5718_v2  ;;  %5763 = vmatprep.mubr.bf16.mxu1 %v7527_v8 }
 0xaed   : > { %v5937_v20 = vpop.permute.xlu1 %5936  ;;  %5733 = vmatprep.subr.bf16.mxu1 %v5721_v43  ;;  %v5929_v45 = vpop.permute.xlu0 %5928 }
 0xaee   : > { %v5940_v19 = vsel %vm1464_vm9, %v5929_v45, %v5931_v54 }
 0xaf0   : > { %5734 = vmatpush1.bf16.msra.mxu1 %v5720_v26 }
 0xaf1   : > { %v5935_v47 = vpop.permute.xlu1 %5934  ;;  %5842 = vmatprep.subr.bf16.mxu1 %v5830_v48  ;;  %v5939_v49 = vpop.permute.xlu0 %5938 }
 0xaf2   : > { %6928 = vmatpush3.bf16.msra.mxu0 %v5939_v49  ;;  %v5943_v3 = vsel %vm1464_vm9, %v5937_v20, %v5939_v49  ;;  %v5942_v46 = vsel %vm1464_vm9, %v5935_v47, %v5937_v20 }
 0xaf3   : > { %6532 = vmatmul.mubr.msk.bf16.vlgmr.msra.gmra.mrb[52].mxu1 %vm1994_vm11, %v6531_v25  ;;  %6933 = vmatprep.subr.bf16.mxu0 %v7535_v58 }
 0xaf4   : > { %5843 = vmatpush1.bf16.msra.mxu1 %v5829_v63  ;;  %5874 = vmatprep.mubr.bf16.mxu1 %v7527_v8 }
 0xaf5   : > { %v6044_v42 = vpop.permute.xlu1 %6043  ;;  %5844 = vmatprep.subr.bf16.mxu1 %v5832_v24  ;;  %6930 = vmatmul.mubr.msk.bf16.vlgmr.msra.gmra.mrb[32].mxu0 %vm1994_vm11, %v6537_v61  ;;  %v6042_v55 = vpop.permute.xlu0 %6041 }
 0xaf6   : > { %6934 = vmatpush3.bf16.msra.mxu0 %v6044_v42  ;;  %6937 = vmatprep.mubr.msk.bf16.mxu0 %vm7536_vm12, %v7535_v58  ;;  %v6052_v53 = vsel %vm1617_vm10, %v6042_v55, %v6044_v42 }
 0xaf7   : > { %6935 = vmatprep.subr.bf16.mxu0 %v7535_v58  ;;  %v6540_v58 = vld [vmem:[%s9139_s8 + $0x10] sm:$0x3] }
 0xaf8   : > { %5845 = vmatpush1.bf16.msra.mxu1 %v5831_v60 }
 0xaf9   : > { %5953 = vmatprep.subr.bf16.mxu1 %v5941_v39  ;;  %v6040_v14 = vpop.permute.xlu0 %6039  ;;  %v6048_v36 = vpop.permute.xlu1 %6047 }
 0xafa   : > { %v6051_v34 = vsel %vm1617_vm10, %v6040_v14, %v6042_v55 }
 0xafb   : > { %6535 = vmatmul.mubr.msk.bf16.vlgmr.msra.gmra.mrb[56].mxu1 %vm1994_vm11, %v6534_v22 }
 0xafc   : > { %5954 = vmatpush1.bf16.msra.mxu1 %v5940_v19  ;;  %5985 = vmatprep.mubr.bf16.mxu1 %v7527_v8 }
 0xafd   : > { %5955 = vmatprep.subr.bf16.mxu1 %v5943_v3  ;;  %v6050_v21 = vpop.permute.xlu0 %6049  ;;  %v6046_v6 = vpop.permute.xlu1 %6045 }
 0xafe   : > { %6936 = vmatpush3.bf16.msra.mxu0 %v6050_v21  ;;  %v6054_v16 = vsel %vm1617_vm10, %v6048_v36, %v6050_v21  ;;  %v6053_v38 = vsel %vm1617_vm10, %v6046_v6, %v6048_v36 }
 0xb00   : > { %5956 = vmatpush1.bf16.msra.mxu1 %v5942_v46 }
 0xb01   : > { %6064 = vmatprep.subr.bf16.mxu1 %v6052_v53  ;;  %6938 = vmatmul.mubr.msk.bf16.vlgmr.msra.gmra.mrb[36].mxu0 %vm1994_vm11, %v6540_v58 }
 0xb03   : > { %6538 = vmatmul.mubr.msk.bf16.vlgmr.msra.gmra.mrb[60].mxu1 %vm1994_vm11, %v6537_v61 }
 0xb04   : > { %6065 = vmatpush1.bf16.msra.mxu1 %v6051_v34  ;;  %6096 = vmatprep.mubr.bf16.mxu1 %v7527_v8 }
 0xb05   : > { %6066 = vmatprep.subr.bf16.mxu1 %v6054_v16 }
 0xb08   : > { %6067 = vmatpush1.bf16.msra.mxu1 %v6053_v38 }
 0xb0b   : > { %6541 = vmatmul.mubr.msk.bf16.vlgmr.msra.gmra.mrb[64].mxu1 %vm1994_vm11, %v6540_v58 }
 0xb7e   : > { %v5220_v51 = vpop.f32.mrb[16].mxu1 }
 0xb7f   : > { %v5222_v50 = vpop.f32.mrb[17].mxu1 }
 0xb80   : > { %v5224_v59 = vpop.f32.mrb[18].mxu1 }
 0xb81   : > { %v5225_v32 = vpop.f32.mrb[19].mxu1 }
 0xb86   : > { %v5261_v12 = vpop.f32.mrb[20].mxu1 }
 0xb87   : > { %v6875_v17 = vpop.f32.mrb[21].mxu1 }
 0xb88   : > { %v5264_v37 = vpop.f32.mrb[22].mxu1 }
 0xb89   : > { %v6876_v52 = vpop.f32.mrb[23].mxu1 }
 0xb8e   : > { %v5326_v41 = vpop.f32.mrb[24].mxu1 }
 0xb8f   : > { %v5327_v8 = vadd.f32 %v5326_v41, %v5220_v51  ;;  %v5328_v11 = vpop.f32.mrb[25].mxu1 }
 0xb90   : > { %v5329_v62 = vadd.f32 %v5328_v11, %v5222_v50  ;;  %v5330_v13 = vpop.f32.mrb[26].mxu1 }
 0xb91   : > { %v5331_v5 = vpop.f32.mrb[27].mxu1  ;;  %v6152_v13 = vpop.permute.xlu0 %6151 }
 0xb96   : > { %v5367_v31 = vpop.f32.mrb[28].mxu1 }
 0xb97   : > { %v5368_v1 = vadd.f32 %v5367_v31, %v5261_v12  ;;  %v6883_v33 = vpop.f32.mrb[29].mxu1 }
 0xb98   : > { %v5370_v10 = vpop.f32.mrb[30].mxu1 }
 0xb99   : > { %v6884_v23 = vpop.f32.mrb[31].mxu1 }
 0xb9e   : > { %v5434_v57 = vpop.f32.mrb[32].mxu1 }
 0xb9f   : > { %v5481_v25 = vadd.f32 %v5434_v57, %v5327_v8  ;;  %v5436_v0 = vpop.f32.mrb[33].mxu1 }
 0xba0   : > { %v5482_v30 = vadd.f32 %v5436_v0, %v5329_v62  ;;  %v5438_v27 = vpop.f32.mrb[34].mxu1 }
 0xba1   : > { %v5439_v56 = vpop.f32.mrb[35].mxu1 }
 0xba6   : > { %v5475_v35 = vpop.f32.mrb[36].mxu1 }
 0xba7   : > { %v5483_v29 = vadd.f32 %v5475_v35, %v5368_v1  ;;  %v6891_v7 = vpop.f32.mrb[37].mxu1 }
 0xba8   : > { %v5478_v9 = vpop.f32.mrb[38].mxu1 }
 0xba9   : > { %v6892_v22 = vpop.f32.mrb[39].mxu1 }
 0xbae   : > { %v5555_v15 = vpop.f32.mrb[40].mxu1 }
 0xbaf   : > { %v5602_v18 = vadd.f32 %v5555_v15, %v5481_v25  ;;  %v5557_v54 = vpop.f32.mrb[41].mxu1 }
 0xbb0   : > { %v5603_v2 = vadd.f32 %v5557_v54, %v5482_v30  ;;  %v5559_v20 = vpop.f32.mrb[42].mxu1  ;;  %v5806_v43 = vpop.f32.mrb[24].mxu0 }
 0xbb1   : > { %v5560_v45 = vpop.f32.mrb[43].mxu1  ;;  %v6915_v26 = vpop.f32.mrb[25].mxu0 }
 0xbb2   : > { %v5809_v47 = vpop.f32.mrb[26].mxu0 }
 0xbb3   : > { %v6916_v48 = vpop.f32.mrb[27].mxu0 }
 0xbb6   : > { %v5596_v49 = vpop.f32.mrb[44].mxu1 }
 0xbb7   : > { %v5604_v61 = vadd.f32 %v5596_v49, %v5483_v29  ;;  %v6899_v63 = vpop.f32.mrb[45].mxu1 }
 0xbb8   : > { %v5599_v42 = vpop.f32.mrb[46].mxu1 }
 0xbb9   : > { %v5699_v24 = vadd.f32 %v5691_v44, %v5604_v61  ;;  %v6900_v55 = vpop.f32.mrb[47].mxu1 }
 0xbbb   : > { %v5814_v60 = vadd.f32 %v5806_v43, %v5699_v24 }
 0xbbc   : > { %v5917_v39 = vpop.f32.mrb[28].mxu0 }
 0xbbd   : > { %v5925_v14 = vadd.f32 %v5917_v39, %v5814_v60  ;;  %v6923_v19 = vpop.f32.mrb[29].mxu0 }
 0xbbe   : > { %v5650_v3 = vpop.f32.mrb[48].mxu1  ;;  %v5920_v21 = vpop.f32.mrb[30].mxu0 }
 0xbbf   : > { %v5697_v36 = vadd.f32 %v5650_v3, %v5602_v18  ;;  %v5652_v58 = vpop.f32.mrb[49].mxu1  ;;  %v6924_v46 = vpop.f32.mrb[31].mxu0 }
 0xbc0   : > { %v5698_v53 = vadd.f32 %v5652_v58, %v5603_v2  ;;  %v5654_v34 = vpop.f32.mrb[50].mxu1 }
 0xbc1   : > { %v5655_v6 = vpop.f32.mrb[51].mxu1 }
 0xbc6   : > { %v5765_v16 = vpop.f32.mrb[52].mxu1 }
 0xbc7   : > { %v5812_v38 = vadd.f32 %v5765_v16, %v5697_v36  ;;  %v5767_v40 = vpop.f32.mrb[53].mxu1 }
 0xbc8   : > { %v5813_v4 = vadd.f32 %v5767_v40, %v5698_v53  ;;  %v6028_v28 = vpop.f32.mrb[32].mxu0  ;;  %v5769_v51 = vpop.f32.mrb[54].mxu1 }
 0xbc9   : > { %v6036_v44 = vadd.f32 %v6028_v28, %v5925_v14  ;;  %v5770_v50 = vpop.f32.mrb[55].mxu1  ;;  %v6931_v59 = vpop.f32.mrb[33].mxu0 }
 0xbca   : > { %v6031_v32 = vpop.f32.mrb[34].mxu0 }
 0xbcb   : > { %v6932_v12 = vpop.f32.mrb[35].mxu0 }
 0xbce   : > { %v5876_v17 = vpop.f32.mrb[56].mxu1 }
 0xbcf   : > { %v5923_v37 = vadd.f32 %v5876_v17, %v5812_v38  ;;  %v5878_v52 = vpop.f32.mrb[57].mxu1 }
 0xbd0   : > { %v5924_v41 = vadd.f32 %v5878_v52, %v5813_v4  ;;  %v5880_v8 = vpop.f32.mrb[58].mxu1 }
 0xbd1   : > { %v5881_v11 = vpop.f32.mrb[59].mxu1 }
 0xbd4   : > { %v6139_v62 = vpop.f32.mrb[36].mxu0 }
 0xbd5   : > { %v6147_v5 = vadd.f32 %v6139_v62, %v6036_v44  ;;  %v6939_v31 = vpop.f32.mrb[37].mxu0 }
 0xbd6   : > { %v5987_v1 = vpop.f32.mrb[60].mxu1  ;;  %v6142_v33 = vpop.f32.mrb[38].mxu0 }
 0xbd7   : > { %v6156_v10 = vadd.f32 %v6152_v13, %v6147_v5  ;;  %v6034_v23 = vadd.f32 %v5987_v1, %v5923_v37  ;;  %v5989_v57 = vpop.f32.mrb[61].mxu1  ;;  %v6940_v25 = vpop.f32.mrb[39].mxu0 }
 0xbd8   : > { %v6035_v0 = vadd.f32 %v5989_v57, %v5924_v41  ;;  %v5991_v30 = vpop.f32.mrb[62].mxu1 }
 0xbd9   : > { %v6162_v27 = vmin.f32 %v6156_v10, 20.0  ;;  %v5992_v56 = vpop.f32.mrb[63].mxu1  ;;  %vm6159_vm14 = vcmp.gt.f32.partialorder %v6156_v10, 20.0 }
 0xbdb   : > { %v6167_v35 = vmul.f32 1.442695, %v6162_v27 }
 0xbdd   : > { %7483 = vpow2.f32 %v6167_v35 }
 0xbde   : > { %v6098_v29 = vpop.f32.mrb[64].mxu1 }
 0xbdf   : > { %v6145_v7 = vadd.f32 %v6098_v29, %v6034_v23  ;;  %v6100_v9 = vpop.f32.mrb[65].mxu1 }
 0xbe0   : > { %v6146_v22 = vadd.f32 %v6100_v9, %v6035_v0  ;;  %v6102_v15 = vpop.f32.mrb[66].mxu1 }
 0xbe1   : > { %v6154_v18 = vadd.f32 %v6152_v13, %v6145_v7  ;;  %v6103_v54 = vpop.f32.mrb[67].mxu1 }
 0xbe2   : > { %v6155_v2 = vadd.f32 %v6152_v13, %v6146_v22 }
 0xbe3   : > { %v6160_v20 = vmin.f32 %v6154_v18, 20.0  ;;  %vm6157_vm15 = vcmp.gt.f32.partialorder %v6154_v18, 20.0 }
 0xbe4   : > { %v6161_v43 = vmin.f32 %v6155_v2, 20.0  ;;  %vm6158_vm0 = vcmp.gt.f32.partialorder %v6155_v2, 20.0 }
 0xbe5   : > { %v6163_v45 = vmul.f32 1.442695, %v6160_v20 }
 0xbe6   : > { %v6165_v26 = vmul.f32 1.442695, %v6161_v43 }
 0xbe7   : > { %v7484_v47 = vpop.eup %7483  ;;  %7485 = vpow2.f32 %v6163_v45 }
 0xbe8   : > { %v6171_v48 = vadd.f32 1.0, %v7484_v47  ;;  %7487 = vpow2.f32 %v6165_v26 }
 0xbea   : > { %7489 = vlog2.f32 %v6171_v48 }
 0xbf1   : > { %v7486_v49 = vpop.eup %7485 }
 0xbf2   : > { %v7488_v61 = vpop.eup %7487  ;;  %v6169_v63 = vadd.f32 1.0, %v7486_v49 }
 0xbf3   : > { %v6170_v42 = vadd.f32 1.0, %v7488_v61 }
 0xbf4   : > { %v7490_v24 = vpop.eup %7489  ;;  %7491 = vlog2.f32 %v6169_v63 }
 0xbf5   : > { %v6177_v55 = vmul.f32 0.6931472, %v7490_v24  ;;  %7493 = vlog2.f32 %v6170_v42 }
 0xbf7   : > { %v6180_v60 = vsel %vm6159_vm14, %v6156_v10, %v6177_v55 }
 0xbf8   : > { %6187 = vst.msk [vmem:[%s359_s26 + $0x8] sm:$0xf] %vm6186_vm13, %v6180_v60 }
 0xbfe   : > { %v7492_v39 = vpop.eup %7491 }
 0xbff   : > { %v7494_v14 = vpop.eup %7493  ;;  %v6173_v19 = vmul.f32 0.6931472, %v7492_v39 }
 0xc00   : > { %v6175_v3 = vmul.f32 0.6931472, %v7494_v14 }
 0xc01   : > { %v6178_v21 = vsel %vm6157_vm15, %v6154_v18, %v6173_v19 }
 0xc02   : > { %v6179_v36 = vsel %vm6158_vm0, %v6155_v2, %v6175_v3 }
 0xc03   : > { %v6183_v58 = vcombine.low %v6178_v21, %v6179_v36 }
 0xc05   : > { %6185 = vst [vmem:[%s359_s26] sm:$0xff] %v6183_v58 }
 0xc06 PF: > { %s20_s13 = sadd.s32 1, %s7523_s13  }
 0xc07   : > { %p17_p4 = scmp.ge.s32.totalorder %s20_s13, 4  }
 0xc09   :  { %19 = sbr.rel (!%p17_p4) target bundleno = 1 (0x1), region = 122 }

</bundles_post_ra>
